<compile_context>
chip_gen: v7x
topology: tpu7x:2x2x1
jax: 0.10.0
libtpu: 0.0.40
codegen_flags: <defaults>
</compile_context>

<pallas_src>
import functools

import numpy as np
import jax
import jax.numpy as jnp
from jax.experimental import pallas as pl
from jax.experimental.pallas import tpu as pltpu

_VMEM = pl.BlockSpec(memory_space=pltpu.MemorySpace.VMEM)
_EPS = 1e-5


# ---------------------------------------------------------------------------
# Single fused kernel
# ---------------------------------------------------------------------------
def _fused_kernel(
    x_ref, a_edge_ref, a_knn_ref, adj_ref,
    gcn_w_ref, gcn_b_ref,
    fc_blk_ref, emb_bias_ref,
    hopmean_ref, hopbcast_ref,
    lnw_ref, lnb_ref,
    qkv_bd_ref, headsum_ref,
    mlp_wa_ref, mlp_wb_ref, mlp_b_ref,
    out_slab_ref, y_ref,
    *, hops, nlayers, hidden):
  f32 = jnp.float32
  D = hidden

  x = x_ref[...]
  a_edge = a_edge_ref[...]
  a_knn = a_knn_ref[...]
  adj = adj_ref[...]

  # ------------------- merged GCN branches (s1 | f2) ------------------------
  # xw lanes: [0:D] = s1 branch, [D:2D] = f2 branch.
  xw = jnp.dot(x, gcn_w_ref[...], preferred_element_type=f32) + gcn_b_ref[...]
  p1 = jnp.dot(a_edge, xw, preferred_element_type=f32)
  p2 = jnp.dot(a_edge, p1, preferred_element_type=f32)   # K=2 on A_edge
  pk = jnp.dot(a_knn, xw, preferred_element_type=f32)    # K=1 on A_knn
  h0 = p2[:, :D]
  z0 = p2[:, D:]
  z1 = pk[:, D:]

  # ------------------- TransformerModel branch ------------------------------
  # build_hops: hop k features = adj^k @ x, lane-concatenated into one slab.
  hop_feats = [x]
  cur = x
  for _ in range(hops - 1):
    cur = jnp.dot(adj, cur, preferred_element_type=f32)
    hop_feats.append(cur)
  slab_pre = jnp.concatenate(hop_feats, axis=1)           # [N, hops*F]

  lnw = lnw_ref[...]                                      # [nlayers+1, hops*D]
  lnb = lnb_ref[...]
  hopmean = hopmean_ref[...]                              # [hops*D, hops], 1/D
  hopbcast = hopbcast_ref[...]                            # [hops, hops*D], 1
  headsum = headsum_ref[...]                              # [hops*D, hops*D], scale per (hop,head) block

  def ln_slab(v, t):
    # per-hop LayerNorm over D lanes, done on the full slab via segment matmuls
    mu = jnp.dot(v, hopmean, preferred_element_type=f32)          # [N, hops]
    mu_full = jnp.dot(mu, hopbcast, preferred_element_type=f32)   # [N, hops*D]
    c = v - mu_full
    var = jnp.dot(c * c, hopmean, preferred_element_type=f32)
    var_full = jnp.dot(var, hopbcast, preferred_element_type=f32)
    return (c * jax.lax.rsqrt(var_full + _EPS)
            * lnw[t:t + 1, :] + lnb[t:t + 1, :])

  # embedding: fc (block-diagonal, all hops at once) + (fc_b + pos) + LN(0)
  h = jnp.dot(slab_pre, fc_blk_ref[...],
              preferred_element_type=f32) + emb_bias_ref[...]     # [N, hops*D]
  h = ln_slab(h, 0)

  # interaction layers: per-hop multi-head attention over the hop axis
  for li in range(nlayers):
    q_slab = jnp.dot(h, qkv_bd_ref[3 * li + 0], preferred_element_type=f32)
    k_slab = jnp.dot(h, qkv_bd_ref[3 * li + 1], preferred_element_type=f32)
    v_slab = jnp.dot(h, qkv_bd_ref[3 * li + 2], preferred_element_type=f32)

    outs = []
    for i in range(hops):
      q_i = q_slab[:, i * D:(i + 1) * D]
      q_rep = jnp.concatenate([q_i] * hops, axis=1)                # [N, hops*D]
      # scores (already scaled), replicated over each head's dh lanes
      scores = jnp.dot(q_rep * k_slab, headsum,
                       preferred_element_type=f32)                 # [N, hops*D]

      segs = [scores[:, j * D:(j + 1) * D] for j in range(hops)]
      m = segs[0]
      for j in range(1, hops):
        m = jnp.maximum(m, segs[j])
      e = [jnp.exp(s - m) for s in segs]
      denom = e[0]
      for j in range(1, hops):
        denom = denom + e[j]
      inv = pl.reciprocal(denom, approx=True)

      out_i = (e[0] * inv) * v_slab[:, :D]
      for j in range(1, hops):
        out_i = out_i + (e[j] * inv) * v_slab[:, j * D:(j + 1) * D]
      outs.append(out_i)

    attn_out = jnp.concatenate(outs, axis=1)                       # [N, hops*D]
    h = ln_slab(jnp.maximum(attn_out, 0.0) + h, li + 1)            # ReLU+res+LN

  # fusion: mean over hops
  h1 = h[:, :D]
  for j in range(1, hops):
    h1 = h1 + h[:, j * D:(j + 1) * D]
  h1 = h1 * (1.0 / hops)

  # ------------------- final MLP + packed outputs ---------------------------
  y = (jnp.dot(h1, mlp_wa_ref[...], preferred_element_type=f32)
       + jnp.dot(z1, mlp_wb_ref[...], preferred_element_type=f32)
       + mlp_b_ref[...])

  out_slab_ref[...] = jnp.concatenate(
      [h0, h0 + h1, z0, z0 + z1], axis=1).astype(out_slab_ref.dtype)
  y_ref[...] = y.astype(y_ref.dtype)


# ---------------------------------------------------------------------------
# One-time parameter preparation (numpy, zero per-call cost)
# ---------------------------------------------------------------------------
def prepare_params(params, *, hops, heads, nlayers, num_features, num_hidden):
  D, F = num_hidden, num_features
  dh = D // heads
  scale = dh ** -0.5
  f32 = np.float32

  s1_w = np.asarray(params["s1_w"], f32)               # [H, F]
  f2_w = np.asarray(params["f2_w"], f32)
  gcn_w = np.concatenate([s1_w.T, f2_w.T], axis=1)     # [F, 2H]
  gcn_b = np.concatenate([np.asarray(params["s1_b"], f32),
                          np.asarray(params["f2_b"], f32)]).reshape(1, 2 * D)

  fcw = np.asarray(params["fc_w"], f32).T               # [F, D]
  fcb = np.asarray(params["fc_b"], f32)                 # [D]
  pos = np.asarray(params["pos"], f32).reshape(hops, D)

  fc_blk = np.zeros((hops * F, hops * D), f32)
  emb_bias = np.zeros((1, hops * D), f32)
  for k in range(hops):
    fc_blk[k * F:(k + 1) * F, k * D:(k + 1) * D] = fcw
    emb_bias[0, k * D:(k + 1) * D] = fcb + pos[k]

  hopmean = np.zeros((hops * D, hops), f32)
  hopbcast = np.zeros((hops, hops * D), f32)
  for k in range(hops):
    hopmean[k * D:(k + 1) * D, k] = 1.0 / D
    hopbcast[k, k * D:(k + 1) * D] = 1.0

  lnw = np.stack([np.tile(np.asarray(w, f32), hops)
                  for (w, _) in params["ln"][:nlayers + 1]])
  lnb = np.stack([np.tile(np.asarray(b, f32), hops)
                  for (_, b) in params["ln"][:nlayers + 1]])

  qkv_bd = np.zeros((3 * nlayers, hops * D, hops * D), f32)
  for li, w in enumerate(params["qkv_ws"]):
    wt = np.asarray(w, f32).T                           # [D, 3D] -> Q|K|V lanes
    for s in range(3):
      ws = wt[:, s * D:(s + 1) * D]
      for k in range(hops):
        qkv_bd[3 * li + s, k * D:(k + 1) * D, k * D:(k + 1) * D] = ws

  headsum = np.zeros((hops * D, hops * D), f32)
  for k in range(hops):
    for hh in range(heads):
      lo = k * D + hh * dh
      headsum[lo:lo + dh, lo:lo + dh] = scale           # scale folded in

  mlp_w = np.asarray(params["mlp_w"], f32)              # [1, 2H]
  mlp_wa = mlp_w[:, :D].T                               # [H, 1]
  mlp_wb = mlp_w[:, D:].T
  mlp_b = np.asarray(params["mlp_b"], f32).reshape(1, 1)

  prep = dict(gcn_w=gcn_w, gcn_b=gcn_b, fc_blk=fc_blk, emb_bias=emb_bias,
              hopmean=hopmean, hopbcast=hopbcast, lnw=lnw, lnb=lnb,
              qkv_bd=qkv_bd, headsum=headsum,
              mlp_wa=mlp_wa, mlp_wb=mlp_wb, mlp_b=mlp_b)
  return {k: jnp.asarray(v) for k, v in prep.items()}


# ---------------------------------------------------------------------------
# Graph glue (dense adjacency construction) — plain JAX scatter, not kernels
# ---------------------------------------------------------------------------
def gcn_norm_dense(edge_index, num_nodes):
  """Dense D^{-1/2}(A+I)D^{-1/2} matching PyG gcn_norm + sum aggregation.

  Assumes the input edge_index has no self loops (then add_remaining_self_loops
  is equivalent to appending one self loop per node with weight 1.0).
  """
  row, col = edge_index[0], edge_index[1]
  loop = jnp.arange(num_nodes, dtype=row.dtype)
  row = jnp.concatenate([row, loop])
  col = jnp.concatenate([col, loop])
  w = jnp.ones(row.shape[0], jnp.float32)
  deg = jnp.zeros((num_nodes,), jnp.float32).at[col].add(w)
  dinv = jnp.where(deg > 0, deg ** -0.5, 0.0)
  norm = dinv[row] * w * dinv[col]
  # message flows source(row) -> target(col): out[i] = sum_j A_hat[i, j] x[j]
  return jnp.zeros((num_nodes, num_nodes), jnp.float32).at[col, row].add(norm)


def edge_index_to_adj(edge_index, num_nodes):
  # TODO(synk): edge_index_to_adj is not defined in the source; assume a dense
  # binary adjacency with adj[src, dst] = 1 (no self loops, no normalization).
  return jnp.zeros((num_nodes, num_nodes), jnp.float32).at[
      edge_index[0], edge_index[1]].set(1.0)


# ---------------------------------------------------------------------------
# Full model forward: one pallas_call
# ---------------------------------------------------------------------------
@functools.partial(jax.jit, static_argnames=("hops", "nlayers", "hidden"))
def model_forward(prep, x, edge_index, knn_graph, *, hops, nlayers, hidden):
  N = x.shape[0]
  a_edge = gcn_norm_dense(edge_index, N)
  a_knn = gcn_norm_dense(knn_graph, N)
  adj_bin = edge_index_to_adj(edge_index, N)

  kernel = functools.partial(_fused_kernel, hops=hops, nlayers=nlayers,
                             hidden=hidden)
  out_slab, y = pl.pallas_call(
      kernel,
      out_shape=(jax.ShapeDtypeStruct((N, 4 * hidden), jnp.float32),
                 jax.ShapeDtypeStruct((N, 1), jnp.float32)),
      in_specs=[_VMEM] * 17,
      out_specs=(_VMEM, _VMEM),
  )(x.astype(jnp.float32), a_edge, a_knn, adj_bin,
    prep["gcn_w"], prep["gcn_b"], prep["fc_blk"], prep["emb_bias"],
    prep["hopmean"], prep["hopbcast"], prep["lnw"], prep["lnb"],
    prep["qkv_bd"], prep["headsum"],
    prep["mlp_wa"], prep["mlp_wb"], prep["mlp_b"])

  H = hidden
  h0 = out_slab[:, :H]
  h0h1 = out_slab[:, H:2 * H]
  z0 = out_slab[:, 2 * H:3 * H]
  z0z1 = out_slab[:, 3 * H:]
  return h0, h0h1, z0, z0z1, y


# ---------------------------------------------------------------------------
# Deterministic parameter init (synthetic; shapes follow the PyTorch module)
# ---------------------------------------------------------------------------
def init_params(key, num_features, num_hidden, nlayers, hops):
  ks = jax.random.split(key, 8 + nlayers)
  p = {
      "s1_w": jax.random.normal(ks[0], (num_hidden, num_features)) * 0.05,
      "s1_b": jnp.zeros((num_hidden,), jnp.float32),
      "f2_w": jax.random.normal(ks[1], (num_hidden, num_features)) * 0.05,
      "f2_b": jnp.zeros((num_hidden,), jnp.float32),
      "fc_w": jax.random.normal(ks[2], (num_hidden, num_features)) * 0.05,
      "fc_b": jnp.zeros((num_hidden,), jnp.float32),
      "pos": jax.random.normal(ks[3], (1, hops, num_hidden)) * 0.05,
      "qkv_ws": [jax.random.normal(ks[4 + i], (3 * num_hidden, num_hidden)) * 0.05
                 for i in range(nlayers)],
      "ln": [(jnp.ones((num_hidden,), jnp.float32),
              jnp.zeros((num_hidden,), jnp.float32))
             for _ in range(nlayers * 2 + 2)],
      "mlp_w": jax.random.normal(ks[4 + nlayers], (1, 2 * num_hidden)) * 0.05,
      "mlp_b": jnp.zeros((1,), jnp.float32),
  }
  return jax.tree_util.tree_map(lambda t: t.astype(jnp.float32), p)


if __name__ == "__main__":
  key = jax.random.PRNGKey(0)
  N, FEATS, HIDDEN = 16, 32, 32          # num nodes, num_features, num_hidden
  HOPS, NLAYERS, HEADS = 4, 2, 4         # global_structure_hops, nlayers, n_head

  kx, kp = jax.random.split(key)
  x = jax.random.normal(kx, (N, FEATS), jnp.float32)

  # deterministic ring graphs (no self loops, see gcn_norm_dense assumption)
  src = jnp.arange(N, dtype=jnp.int32)
  edge_index = jnp.stack([jnp.concatenate([src, (src + 1) % N]),
                          jnp.concatenate([(src + 1) % N, src])])
  knn_graph = jnp.stack([jnp.concatenate([src, (src + 2) % N]),
                         jnp.concatenate([(src + 2) % N, src])])

  params = init_params(kp, FEATS, HIDDEN, NLAYERS, HOPS)
  prep = prepare_params(params, hops=HOPS, heads=HEADS, nlayers=NLAYERS,
                        num_features=FEATS, num_hidden=HIDDEN)

  outs = model_forward(prep, x, edge_index, knn_graph,
                       hops=HOPS, nlayers=NLAYERS, hidden=HIDDEN)
  jax.block_until_ready(outs)

  h0, h0h1, z0, z0z1, y = outs
  assert h0.shape == (N, HIDDEN) and h0h1.shape == (N, HIDDEN)
  assert z0.shape == (N, HIDDEN) and z0z1.shape == (N, HIDDEN)
  assert y.shape == (N, 1)
  assert all(bool(jnp.all(jnp.isfinite(o))) for o in outs)
  print("KERNEL_OK")
</pallas_src>

<mosaic_0001>
module attributes {stable_mosaic.version = 11 : i64} {
  func.func private @main(%arg0: i32) attributes {dimension_semantics = [#tpu.dimension_semantics<core_parallel>], iteration_bounds = array<i64: 2>, tpu.core_type = #tpu.core_type<sc_scalar_subcore>, window_params = []} {
    return
  }
}

module attributes {stable_mosaic.version = 11 : i64} {
  func.func private @main(%arg0: i32) attributes {dimension_semantics = [#tpu.dimension_semantics<core_parallel>], iteration_bounds = array<i64: 2>, tpu.core_type = #tpu.core_type<sc_scalar_subcore>, window_params = []} {
    return
  }
}

module attributes {stable_mosaic.version = 11 : i64} {
  func.func @_fused_kernel(%arg0: memref<16x32xf32, #tpu.memory_space<vmem>>, %arg1: memref<16x16xf32, #tpu.memory_space<vmem>>, %arg2: memref<16x16xf32, #tpu.memory_space<vmem>>, %arg3: memref<16x16xf32, #tpu.memory_space<vmem>>, %arg4: memref<32x64xf32, #tpu.memory_space<vmem>>, %arg5: memref<1x64xf32, #tpu.memory_space<vmem>>, %arg6: memref<128x128xf32, #tpu.memory_space<vmem>>, %arg7: memref<1x128xf32, #tpu.memory_space<vmem>>, %arg8: memref<128x4xf32, #tpu.memory_space<vmem>>, %arg9: memref<4x128xf32, #tpu.memory_space<vmem>>, %arg10: memref<3x128xf32, #tpu.memory_space<vmem>>, %arg11: memref<3x128xf32, #tpu.memory_space<vmem>>, %arg12: memref<6x128x128xf32, #tpu.memory_space<vmem>>, %arg13: memref<128x128xf32, #tpu.memory_space<vmem>>, %arg14: memref<32x1xf32, #tpu.memory_space<vmem>>, %arg15: memref<32x1xf32, #tpu.memory_space<vmem>>, %arg16: memref<1x1xf32, #tpu.memory_space<vmem>>, %arg17: memref<16x128xf32, #tpu.memory_space<vmem>>, %arg18: memref<16x1xf32, #tpu.memory_space<vmem>>) attributes {dimension_semantics = [], scalar_prefetch = 0 : i64, scratch_operands = 0 : i64, tpu.core_type = #tpu.core_type<tc>} {
    %c0 = arith.constant 0 : index
    %c0_0 = arith.constant 0 : index
    %0 = vector.load %arg0[%c0, %c0_0] : memref<16x32xf32, #tpu.memory_space<vmem>>, vector<16x32xf32>
    %c0_1 = arith.constant 0 : index
    %c0_2 = arith.constant 0 : index
    %1 = vector.load %arg1[%c0_1, %c0_2] : memref<16x16xf32, #tpu.memory_space<vmem>>, vector<16x16xf32>
    %c0_3 = arith.constant 0 : index
    %c0_4 = arith.constant 0 : index
    %2 = vector.load %arg2[%c0_3, %c0_4] : memref<16x16xf32, #tpu.memory_space<vmem>>, vector<16x16xf32>
    %c0_5 = arith.constant 0 : index
    %c0_6 = arith.constant 0 : index
    %3 = vector.load %arg3[%c0_5, %c0_6] : memref<16x16xf32, #tpu.memory_space<vmem>>, vector<16x16xf32>
    %c0_7 = arith.constant 0 : index
    %c0_8 = arith.constant 0 : index
    %4 = vector.load %arg4[%c0_7, %c0_8] : memref<32x64xf32, #tpu.memory_space<vmem>>, vector<32x64xf32>
    %cst = arith.constant dense<0.000000e+00> : vector<16x64xf32>
    %5 = tpu.matmul %0, %4, %cst {dimension_numbers = #tpu.dot_dimension_numbers<[1], [0], [0], [1], [0, 0, 1, 1], [], []>} : vector<16x32xf32>, vector<32x64xf32>, vector<16x64xf32> -> vector<16x64xf32>
    %c0_9 = arith.constant 0 : index
    %c0_10 = arith.constant 0 : index
    %6 = vector.load %arg5[%c0_9, %c0_10] : memref<1x64xf32, #tpu.memory_space<vmem>>, vector<1x64xf32>
    %7 = vector.broadcast %6 : vector<1x64xf32> to vector<16x64xf32>
    %8 = arith.addf %5, %7 : vector<16x64xf32>
    %cst_11 = arith.constant dense<0.000000e+00> : vector<16x64xf32>
    %9 = tpu.matmul %1, %8, %cst_11 {dimension_numbers = #tpu.dot_dimension_numbers<[1], [0], [0], [1], [0, 0, 1, 1], [], []>} : vector<16x16xf32>, vector<16x64xf32>, vector<16x64xf32> -> vector<16x64xf32>
    %cst_12 = arith.constant dense<0.000000e+00> : vector<16x64xf32>
    %10 = tpu.matmul %1, %9, %cst_12 {dimension_numbers = #tpu.dot_dimension_numbers<[1], [0], [0], [1], [0, 0, 1, 1], [], []>} : vector<16x16xf32>, vector<16x64xf32>, vector<16x64xf32> -> vector<16x64xf32>
    %cst_13 = arith.constant dense<0.000000e+00> : vector<16x64xf32>
    %11 = tpu.matmul %2, %8, %cst_13 {dimension_numbers = #tpu.dot_dimension_numbers<[1], [0], [0], [1], [0, 0, 1, 1], [], []>} : vector<16x16xf32>, vector<16x64xf32>, vector<16x64xf32> -> vector<16x64xf32>
    %12 = vector.extract_strided_slice %10 {offsets = [0, 0], sizes = [16, 32], strides = [1, 1]} : vector<16x64xf32> to vector<16x32xf32>
    %13 = vector.extract_strided_slice %10 {offsets = [0, 32], sizes = [16, 32], strides = [1, 1]} : vector<16x64xf32> to vector<16x32xf32>
    %14 = vector.extract_strided_slice %11 {offsets = [0, 32], sizes = [16, 32], strides = [1, 1]} : vector<16x64xf32> to vector<16x32xf32>
    %cst_14 = arith.constant dense<0.000000e+00> : vector<16x32xf32>
    %15 = tpu.matmul %3, %0, %cst_14 {dimension_numbers = #tpu.dot_dimension_numbers<[1], [0], [0], [1], [0, 0, 1, 1], [], []>} : vector<16x16xf32>, vector<16x32xf32>, vector<16x32xf32> -> vector<16x32xf32>
    %cst_15 = arith.constant dense<0.000000e+00> : vector<16x32xf32>
    %16 = tpu.matmul %3, %15, %cst_15 {dimension_numbers = #tpu.dot_dimension_numbers<[1], [0], [0], [1], [0, 0, 1, 1], [], []>} : vector<16x16xf32>, vector<16x32xf32>, vector<16x32xf32> -> vector<16x32xf32>
    %cst_16 = arith.constant dense<0.000000e+00> : vector<16x32xf32>
    %17 = tpu.matmul %3, %16, %cst_16 {dimension_numbers = #tpu.dot_dimension_numbers<[1], [0], [0], [1], [0, 0, 1, 1], [], []>} : vector<16x16xf32>, vector<16x32xf32>, vector<16x32xf32> -> vector<16x32xf32>
    %18 = tpu.concatenate %0, %15, %16, %17 in 1 : vector<16x32xf32>, vector<16x32xf32>, vector<16x32xf32>, vector<16x32xf32> -> vector<16x128xf32>
    %c0_17 = arith.constant 0 : index
    %c0_18 = arith.constant 0 : index
    %19 = vector.load %arg10[%c0_17, %c0_18] : memref<3x128xf32, #tpu.memory_space<vmem>>, vector<3x128xf32>
    %c0_19 = arith.constant 0 : index
    %c0_20 = arith.constant 0 : index
    %20 = vector.load %arg11[%c0_19, %c0_20] : memref<3x128xf32, #tpu.memory_space<vmem>>, vector<3x128xf32>
    %c0_21 = arith.constant 0 : index
    %c0_22 = arith.constant 0 : index
    %21 = vector.load %arg8[%c0_21, %c0_22] : memref<128x4xf32, #tpu.memory_space<vmem>>, vector<128x4xf32>
    %c0_23 = arith.constant 0 : index
    %c0_24 = arith.constant 0 : index
    %22 = vector.load %arg9[%c0_23, %c0_24] : memref<4x128xf32, #tpu.memory_space<vmem>>, vector<4x128xf32>
    %c0_25 = arith.constant 0 : index
    %c0_26 = arith.constant 0 : index
    %23 = vector.load %arg13[%c0_25, %c0_26] : memref<128x128xf32, #tpu.memory_space<vmem>>, vector<128x128xf32>
    %c0_27 = arith.constant 0 : index
    %c0_28 = arith.constant 0 : index
    %24 = vector.load %arg6[%c0_27, %c0_28] : memref<128x128xf32, #tpu.memory_space<vmem>>, vector<128x128xf32>
    %cst_29 = arith.constant dense<0.000000e+00> : vector<16x128xf32>
    %25 = tpu.matmul %18, %24, %cst_29 {dimension_numbers = #tpu.dot_dimension_numbers<[1], [0], [0], [1], [0, 0, 1, 1], [], []>} : vector<16x128xf32>, vector<128x128xf32>, vector<16x128xf32> -> vector<16x128xf32>
    %c0_30 = arith.constant 0 : index
    %c0_31 = arith.constant 0 : index
    %26 = vector.load %arg7[%c0_30, %c0_31] : memref<1x128xf32, #tpu.memory_space<vmem>>, vector<1x128xf32>
    %27 = vector.broadcast %26 : vector<1x128xf32> to vector<16x128xf32>
    %28 = arith.addf %25, %27 : vector<16x128xf32>
    %cst_32 = arith.constant dense<0.000000e+00> : vector<16x4xf32>
    %29 = tpu.matmul %28, %21, %cst_32 {dimension_numbers = #tpu.dot_dimension_numbers<[1], [0], [0], [1], [0, 0, 1, 1], [], []>} : vector<16x128xf32>, vector<128x4xf32>, vector<16x4xf32> -> vector<16x4xf32>
    %cst_33 = arith.constant dense<0.000000e+00> : vector<16x128xf32>
    %30 = tpu.matmul %29, %22, %cst_33 {dimension_numbers = #tpu.dot_dimension_numbers<[1], [0], [0], [1], [0, 0, 1, 1], [], []>} : vector<16x4xf32>, vector<4x128xf32>, vector<16x128xf32> -> vector<16x128xf32>
    %31 = arith.subf %28, %30 : vector<16x128xf32>
    %32 = arith.mulf %31, %31 : vector<16x128xf32>
    %cst_34 = arith.constant dense<0.000000e+00> : vector<16x4xf32>
    %33 = tpu.matmul %32, %21, %cst_34 {dimension_numbers = #tpu.dot_dimension_numbers<[1], [0], [0], [1], [0, 0, 1, 1], [], []>} : vector<16x128xf32>, vector<128x4xf32>, vector<16x4xf32> -> vector<16x4xf32>
    %cst_35 = arith.constant dense<0.000000e+00> : vector<16x128xf32>
    %34 = tpu.matmul %33, %22, %cst_35 {dimension_numbers = #tpu.dot_dimension_numbers<[1], [0], [0], [1], [0, 0, 1, 1], [], []>} : vector<16x4xf32>, vector<4x128xf32>, vector<16x128xf32> -> vector<16x128xf32>
    %cst_36 = arith.constant 9.99999974E-6 : f32
    %35 = vector.broadcast %cst_36 : f32 to vector<16x128xf32>
    %36 = arith.addf %34, %35 : vector<16x128xf32>
    %37 = math.rsqrt %36 : vector<16x128xf32>
    %38 = arith.mulf %31, %37 : vector<16x128xf32>
    %39 = vector.extract_strided_slice %19 {offsets = [0, 0], sizes = [1, 128], strides = [1, 1]} : vector<3x128xf32> to vector<1x128xf32>
    %40 = vector.broadcast %39 : vector<1x128xf32> to vector<16x128xf32>
    %41 = arith.mulf %38, %40 : vector<16x128xf32>
    %42 = vector.extract_strided_slice %20 {offsets = [0, 0], sizes = [1, 128], strides = [1, 1]} : vector<3x128xf32> to vector<1x128xf32>
    %43 = vector.broadcast %42 : vector<1x128xf32> to vector<16x128xf32>
    %44 = arith.addf %41, %43 : vector<16x128xf32>
    %c0_37 = arith.constant 0 : index
    %c0_38 = arith.constant 0 : index
    %c0_39 = arith.constant 0 : index
    %45 = vector.load %arg12[%c0_37, %c0_38, %c0_39] : memref<6x128x128xf32, #tpu.memory_space<vmem>>, vector<1x128x128xf32>
    %46 = vector.shape_cast %45 : vector<1x128x128xf32> to vector<128x128xf32>
    %cst_40 = arith.constant dense<0.000000e+00> : vector<16x128xf32>
    %47 = tpu.matmul %44, %46, %cst_40 {dimension_numbers = #tpu.dot_dimension_numbers<[1], [0], [0], [1], [0, 0, 1, 1], [], []>} : vector<16x128xf32>, vector<128x128xf32>, vector<16x128xf32> -> vector<16x128xf32>
    %c1 = arith.constant 1 : index
    %c0_41 = arith.constant 0 : index
    %c0_42 = arith.constant 0 : index
    %48 = vector.load %arg12[%c1, %c0_41, %c0_42] : memref<6x128x128xf32, #tpu.memory_space<vmem>>, vector<1x128x128xf32>
    %49 = vector.shape_cast %48 : vector<1x128x128xf32> to vector<128x128xf32>
    %cst_43 = arith.constant dense<0.000000e+00> : vector<16x128xf32>
    %50 = tpu.matmul %44, %49, %cst_43 {dimension_numbers = #tpu.dot_dimension_numbers<[1], [0], [0], [1], [0, 0, 1, 1], [], []>} : vector<16x128xf32>, vector<128x128xf32>, vector<16x128xf32> -> vector<16x128xf32>
    %c2 = arith.constant 2 : index
    %c0_44 = arith.constant 0 : index
    %c0_45 = arith.constant 0 : index
    %51 = vector.load %arg12[%c2, %c0_44, %c0_45] : memref<6x128x128xf32, #tpu.memory_space<vmem>>, vector<1x128x128xf32>
    %52 = vector.shape_cast %51 : vector<1x128x128xf32> to vector<128x128xf32>
    %cst_46 = arith.constant dense<0.000000e+00> : vector<16x128xf32>
    %53 = tpu.matmul %44, %52, %cst_46 {dimension_numbers = #tpu.dot_dimension_numbers<[1], [0], [0], [1], [0, 0, 1, 1], [], []>} : vector<16x128xf32>, vector<128x128xf32>, vector<16x128xf32> -> vector<16x128xf32>
    %54 = vector.extract_strided_slice %47 {offsets = [0, 0], sizes = [16, 32], strides = [1, 1]} : vector<16x128xf32> to vector<16x32xf32>
    %55 = tpu.concatenate %54, %54, %54, %54 in 1 : vector<16x32xf32>, vector<16x32xf32>, vector<16x32xf32>, vector<16x32xf32> -> vector<16x128xf32>
    %56 = arith.mulf %55, %50 : vector<16x128xf32>
    %cst_47 = arith.constant dense<0.000000e+00> : vector<16x128xf32>
    %57 = tpu.matmul %56, %23, %cst_47 {dimension_numbers = #tpu.dot_dimension_numbers<[1], [0], [0], [1], [0, 0, 1, 1], [], []>} : vector<16x128xf32>, vector<128x128xf32>, vector<16x128xf32> -> vector<16x128xf32>
    %58 = vector.extract_strided_slice %57 {offsets = [0, 0], sizes = [16, 32], strides = [1, 1]} : vector<16x128xf32> to vector<16x32xf32>
    %59 = vector.extract_strided_slice %57 {offsets = [0, 32], sizes = [16, 32], strides = [1, 1]} : vector<16x128xf32> to vector<16x32xf32>
    %60 = vector.extract_strided_slice %57 {offsets = [0, 64], sizes = [16, 32], strides = [1, 1]} : vector<16x128xf32> to vector<16x32xf32>
    %61 = vector.extract_strided_slice %57 {offsets = [0, 96], sizes = [16, 32], strides = [1, 1]} : vector<16x128xf32> to vector<16x32xf32>
    %62 = arith.maximumf %58, %59 : vector<16x32xf32>
    %63 = arith.maximumf %62, %60 : vector<16x32xf32>
    %64 = arith.maximumf %63, %61 : vector<16x32xf32>
    %65 = arith.subf %58, %64 : vector<16x32xf32>
    %66 = math.exp %65 : vector<16x32xf32>
    %67 = arith.subf %59, %64 : vector<16x32xf32>
    %68 = math.exp %67 : vector<16x32xf32>
    %69 = arith.subf %60, %64 : vector<16x32xf32>
    %70 = math.exp %69 : vector<16x32xf32>
    %71 = arith.subf %61, %64 : vector<16x32xf32>
    %72 = math.exp %71 : vector<16x32xf32>
    %73 = arith.addf %66, %68 : vector<16x32xf32>
    %74 = arith.addf %73, %70 : vector<16x32xf32>
    %75 = arith.addf %74, %72 : vector<16x32xf32>
    %76 = tpu.reciprocal %75 {approx = true} : vector<16x32xf32> -> vector<16x32xf32>
    %77 = arith.mulf %66, %76 : vector<16x32xf32>
    %78 = vector.extract_strided_slice %53 {offsets = [0, 0], sizes = [16, 32], strides = [1, 1]} : vector<16x128xf32> to vector<16x32xf32>
    %79 = arith.mulf %77, %78 : vector<16x32xf32>
    %80 = arith.mulf %68, %76 : vector<16x32xf32>
    %81 = vector.extract_strided_slice %53 {offsets = [0, 32], sizes = [16, 32], strides = [1, 1]} : vector<16x128xf32> to vector<16x32xf32>
    %82 = arith.mulf %80, %81 : vector<16x32xf32>
    %83 = arith.addf %79, %82 : vector<16x32xf32>
    %84 = arith.mulf %70, %76 : vector<16x32xf32>
    %85 = vector.extract_strided_slice %53 {offsets = [0, 64], sizes = [16, 32], strides = [1, 1]} : vector<16x128xf32> to vector<16x32xf32>
    %86 = arith.mulf %84, %85 : vector<16x32xf32>
    %87 = arith.addf %83, %86 : vector<16x32xf32>
    %88 = arith.mulf %72, %76 : vector<16x32xf32>
    %89 = vector.extract_strided_slice %53 {offsets = [0, 96], sizes = [16, 32], strides = [1, 1]} : vector<16x128xf32> to vector<16x32xf32>
    %90 = arith.mulf %88, %89 : vector<16x32xf32>
    %91 = arith.addf %87, %90 : vector<16x32xf32>
    %92 = vector.extract_strided_slice %47 {offsets = [0, 32], sizes = [16, 32], strides = [1, 1]} : vector<16x128xf32> to vector<16x32xf32>
    %93 = tpu.concatenate %92, %92, %92, %92 in 1 : vector<16x32xf32>, vector<16x32xf32>, vector<16x32xf32>, vector<16x32xf32> -> vector<16x128xf32>
    %94 = arith.mulf %93, %50 : vector<16x128xf32>
    %cst_48 = arith.constant dense<0.000000e+00> : vector<16x128xf32>
    %95 = tpu.matmul %94, %23, %cst_48 {dimension_numbers = #tpu.dot_dimension_numbers<[1], [0], [0], [1], [0, 0, 1, 1], [], []>} : vector<16x128xf32>, vector<128x128xf32>, vector<16x128xf32> -> vector<16x128xf32>
    %96 = vector.extract_strided_slice %95 {offsets = [0, 0], sizes = [16, 32], strides = [1, 1]} : vector<16x128xf32> to vector<16x32xf32>
    %97 = vector.extract_strided_slice %95 {offsets = [0, 32], sizes = [16, 32], strides = [1, 1]} : vector<16x128xf32> to vector<16x32xf32>
    %98 = vector.extract_strided_slice %95 {offsets = [0, 64], sizes = [16, 32], strides = [1, 1]} : vector<16x128xf32> to vector<16x32xf32>
    %99 = vector.extract_strided_slice %95 {offsets = [0, 96], sizes = [16, 32], strides = [1, 1]} : vector<16x128xf32> to vector<16x32xf32>
    %100 = arith.maximumf %96, %97 : vector<16x32xf32>
    %101 = arith.maximumf %100, %98 : vector<16x32xf32>
    %102 = arith.maximumf %101, %99 : vector<16x32xf32>
    %103 = arith.subf %96, %102 : vector<16x32xf32>
    %104 = math.exp %103 : vector<16x32xf32>
    %105 = arith.subf %97, %102 : vector<16x32xf32>
    %106 = math.exp %105 : vector<16x32xf32>
    %107 = arith.subf %98, %102 : vector<16x32xf32>
    %108 = math.exp %107 : vector<16x32xf32>
    %109 = arith.subf %99, %102 : vector<16x32xf32>
    %110 = math.exp %109 : vector<16x32xf32>
    %111 = arith.addf %104, %106 : vector<16x32xf32>
    %112 = arith.addf %111, %108 : vector<16x32xf32>
    %113 = arith.addf %112, %110 : vector<16x32xf32>
    %114 = tpu.reciprocal %113 {approx = true} : vector<16x32xf32> -> vector<16x32xf32>
    %115 = arith.mulf %104, %114 : vector<16x32xf32>
    %116 = vector.extract_strided_slice %53 {offsets = [0, 0], sizes = [16, 32], strides = [1, 1]} : vector<16x128xf32> to vector<16x32xf32>
    %117 = arith.mulf %115, %116 : vector<16x32xf32>
    %118 = arith.mulf %106, %114 : vector<16x32xf32>
    %119 = vector.extract_strided_slice %53 {offsets = [0, 32], sizes = [16, 32], strides = [1, 1]} : vector<16x128xf32> to vector<16x32xf32>
    %120 = arith.mulf %118, %119 : vector<16x32xf32>
    %121 = arith.addf %117, %120 : vector<16x32xf32>
    %122 = arith.mulf %108, %114 : vector<16x32xf32>
    %123 = vector.extract_strided_slice %53 {offsets = [0, 64], sizes = [16, 32], strides = [1, 1]} : vector<16x128xf32> to vector<16x32xf32>
    %124 = arith.mulf %122, %123 : vector<16x32xf32>
    %125 = arith.addf %121, %124 : vector<16x32xf32>
    %126 = arith.mulf %110, %114 : vector<16x32xf32>
    %127 = vector.extract_strided_slice %53 {offsets = [0, 96], sizes = [16, 32], strides = [1, 1]} : vector<16x128xf32> to vector<16x32xf32>
    %128 = arith.mulf %126, %127 : vector<16x32xf32>
    %129 = arith.addf %125, %128 : vector<16x32xf32>
    %130 = vector.extract_strided_slice %47 {offsets = [0, 64], sizes = [16, 32], strides = [1, 1]} : vector<16x128xf32> to vector<16x32xf32>
    %131 = tpu.concatenate %130, %130, %130, %130 in 1 : vector<16x32xf32>, vector<16x32xf32>, vector<16x32xf32>, vector<16x32xf32> -> vector<16x128xf32>
    %132 = arith.mulf %131, %50 : vector<16x128xf32>
    %cst_49 = arith.constant dense<0.000000e+00> : vector<16x128xf32>
    %133 = tpu.matmul %132, %23, %cst_49 {dimension_numbers = #tpu.dot_dimension_numbers<[1], [0], [0], [1], [0, 0, 1, 1], [], []>} : vector<16x128xf32>, vector<128x128xf32>, vector<16x128xf32> -> vector<16x128xf32>
    %134 = vector.extract_strided_slice %133 {offsets = [0, 0], sizes = [16, 32], strides = [1, 1]} : vector<16x128xf32> to vector<16x32xf32>
    %135 = vector.extract_strided_slice %133 {offsets = [0, 32], sizes = [16, 32], strides = [1, 1]} : vector<16x128xf32> to vector<16x32xf32>
    %136 = vector.extract_strided_slice %133 {offsets = [0, 64], sizes = [16, 32], strides = [1, 1]} : vector<16x128xf32> to vector<16x32xf32>
    %137 = vector.extract_strided_slice %133 {offsets = [0, 96], sizes = [16, 32], strides = [1, 1]} : vector<16x128xf32> to vector<16x32xf32>
    %138 = arith.maximumf %134, %135 : vector<16x32xf32>
    %139 = arith.maximumf %138, %136 : vector<16x32xf32>
    %140 = arith.maximumf %139, %137 : vector<16x32xf32>
    %141 = arith.subf %134, %140 : vector<16x32xf32>
    %142 = math.exp %141 : vector<16x32xf32>
    %143 = arith.subf %135, %140 : vector<16x32xf32>
    %144 = math.exp %143 : vector<16x32xf32>
    %145 = arith.subf %136, %140 : vector<16x32xf32>
    %146 = math.exp %145 : vector<16x32xf32>
    %147 = arith.subf %137, %140 : vector<16x32xf32>
    %148 = math.exp %147 : vector<16x32xf32>
    %149 = arith.addf %142, %144 : vector<16x32xf32>
    %150 = arith.addf %149, %146 : vector<16x32xf32>
    %151 = arith.addf %150, %148 : vector<16x32xf32>
    %152 = tpu.reciprocal %151 {approx = true} : vector<16x32xf32> -> vector<16x32xf32>
    %153 = arith.mulf %142, %152 : vector<16x32xf32>
    %154 = vector.extract_strided_slice %53 {offsets = [0, 0], sizes = [16, 32], strides = [1, 1]} : vector<16x128xf32> to vector<16x32xf32>
    %155 = arith.mulf %153, %154 : vector<16x32xf32>
    %156 = arith.mulf %144, %152 : vector<16x32xf32>
    %157 = vector.extract_strided_slice %53 {offsets = [0, 32], sizes = [16, 32], strides = [1, 1]} : vector<16x128xf32> to vector<16x32xf32>
    %158 = arith.mulf %156, %157 : vector<16x32xf32>
    %159 = arith.addf %155, %158 : vector<16x32xf32>
    %160 = arith.mulf %146, %152 : vector<16x32xf32>
    %161 = vector.extract_strided_slice %53 {offsets = [0, 64], sizes = [16, 32], strides = [1, 1]} : vector<16x128xf32> to vector<16x32xf32>
    %162 = arith.mulf %160, %161 : vector<16x32xf32>
    %163 = arith.addf %159, %162 : vector<16x32xf32>
    %164 = arith.mulf %148, %152 : vector<16x32xf32>
    %165 = vector.extract_strided_slice %53 {offsets = [0, 96], sizes = [16, 32], strides = [1, 1]} : vector<16x128xf32> to vector<16x32xf32>
    %166 = arith.mulf %164, %165 : vector<16x32xf32>
    %167 = arith.addf %163, %166 : vector<16x32xf32>
    %168 = vector.extract_strided_slice %47 {offsets = [0, 96], sizes = [16, 32], strides = [1, 1]} : vector<16x128xf32> to vector<16x32xf32>
    %169 = tpu.concatenate %168, %168, %168, %168 in 1 : vector<16x32xf32>, vector<16x32xf32>, vector<16x32xf32>, vector<16x32xf32> -> vector<16x128xf32>
    %170 = arith.mulf %169, %50 : vector<16x128xf32>
    %cst_50 = arith.constant dense<0.000000e+00> : vector<16x128xf32>
    %171 = tpu.matmul %170, %23, %cst_50 {dimension_numbers = #tpu.dot_dimension_numbers<[1], [0], [0], [1], [0, 0, 1, 1], [], []>} : vector<16x128xf32>, vector<128x128xf32>, vector<16x128xf32> -> vector<16x128xf32>
    %172 = vector.extract_strided_slice %171 {offsets = [0, 0], sizes = [16, 32], strides = [1, 1]} : vector<16x128xf32> to vector<16x32xf32>
    %173 = vector.extract_strided_slice %171 {offsets = [0, 32], sizes = [16, 32], strides = [1, 1]} : vector<16x128xf32> to vector<16x32xf32>
    %174 = vector.extract_strided_slice %171 {offsets = [0, 64], sizes = [16, 32], strides = [1, 1]} : vector<16x128xf32> to vector<16x32xf32>
    %175 = vector.extract_strided_slice %171 {offsets = [0, 96], sizes = [16, 32], strides = [1, 1]} : vector<16x128xf32> to vector<16x32xf32>
    %176 = arith.maximumf %172, %173 : vector<16x32xf32>
    %177 = arith.maximumf %176, %174 : vector<16x32xf32>
    %178 = arith.maximumf %177, %175 : vector<16x32xf32>
    %179 = arith.subf %172, %178 : vector<16x32xf32>
    %180 = math.exp %179 : vector<16x32xf32>
    %181 = arith.subf %173, %178 : vector<16x32xf32>
    %182 = math.exp %181 : vector<16x32xf32>
    %183 = arith.subf %174, %178 : vector<16x32xf32>
    %184 = math.exp %183 : vector<16x32xf32>
    %185 = arith.subf %175, %178 : vector<16x32xf32>
    %186 = math.exp %185 : vector<16x32xf32>
    %187 = arith.addf %180, %182 : vector<16x32xf32>
    %188 = arith.addf %187, %184 : vector<16x32xf32>
    %189 = arith.addf %188, %186 : vector<16x32xf32>
    %190 = tpu.reciprocal %189 {approx = true} : vector<16x32xf32> -> vector<16x32xf32>
    %191 = arith.mulf %180, %190 : vector<16x32xf32>
    %192 = vector.extract_strided_slice %53 {offsets = [0, 0], sizes = [16, 32], strides = [1, 1]} : vector<16x128xf32> to vector<16x32xf32>
    %193 = arith.mulf %191, %192 : vector<16x32xf32>
    %194 = arith.mulf %182, %190 : vector<16x32xf32>
    %195 = vector.extract_strided_slice %53 {offsets = [0, 32], sizes = [16, 32], strides = [1, 1]} : vector<16x128xf32> to vector<16x32xf32>
    %196 = arith.mulf %194, %195 : vector<16x32xf32>
    %197 = arith.addf %193, %196 : vector<16x32xf32>
    %198 = arith.mulf %184, %190 : vector<16x32xf32>
    %199 = vector.extract_strided_slice %53 {offsets = [0, 64], sizes = [16, 32], strides = [1, 1]} : vector<16x128xf32> to vector<16x32xf32>
    %200 = arith.mulf %198, %199 : vector<16x32xf32>
    %201 = arith.addf %197, %200 : vector<16x32xf32>
    %202 = arith.mulf %186, %190 : vector<16x32xf32>
    %203 = vector.extract_strided_slice %53 {offsets = [0, 96], sizes = [16, 32], strides = [1, 1]} : vector<16x128xf32> to vector<16x32xf32>
    %204 = arith.mulf %202, %203 : vector<16x32xf32>
    %205 = arith.addf %201, %204 : vector<16x32xf32>
    %206 = tpu.concatenate %91, %129, %167, %205 in 1 : vector<16x32xf32>, vector<16x32xf32>, vector<16x32xf32>, vector<16x32xf32> -> vector<16x128xf32>
    %cst_51 = arith.constant 0.000000e+00 : f32
    %207 = vector.broadcast %cst_51 : f32 to vector<16x128xf32>
    %208 = arith.maximumf %206, %207 : vector<16x128xf32>
    %209 = arith.addf %208, %44 : vector<16x128xf32>
    %cst_52 = arith.constant dense<0.000000e+00> : vector<16x4xf32>
    %210 = tpu.matmul %209, %21, %cst_52 {dimension_numbers = #tpu.dot_dimension_numbers<[1], [0], [0], [1], [0, 0, 1, 1], [], []>} : vector<16x128xf32>, vector<128x4xf32>, vector<16x4xf32> -> vector<16x4xf32>
    %cst_53 = arith.constant dense<0.000000e+00> : vector<16x128xf32>
    %211 = tpu.matmul %210, %22, %cst_53 {dimension_numbers = #tpu.dot_dimension_numbers<[1], [0], [0], [1], [0, 0, 1, 1], [], []>} : vector<16x4xf32>, vector<4x128xf32>, vector<16x128xf32> -> vector<16x128xf32>
    %212 = arith.subf %209, %211 : vector<16x128xf32>
    %213 = arith.mulf %212, %212 : vector<16x128xf32>
    %cst_54 = arith.constant dense<0.000000e+00> : vector<16x4xf32>
    %214 = tpu.matmul %213, %21, %cst_54 {dimension_numbers = #tpu.dot_dimension_numbers<[1], [0], [0], [1], [0, 0, 1, 1], [], []>} : vector<16x128xf32>, vector<128x4xf32>, vector<16x4xf32> -> vector<16x4xf32>
    %cst_55 = arith.constant dense<0.000000e+00> : vector<16x128xf32>
    %215 = tpu.matmul %214, %22, %cst_55 {dimension_numbers = #tpu.dot_dimension_numbers<[1], [0], [0], [1], [0, 0, 1, 1], [], []>} : vector<16x4xf32>, vector<4x128xf32>, vector<16x128xf32> -> vector<16x128xf32>
    %cst_56 = arith.constant 9.99999974E-6 : f32
    %216 = vector.broadcast %cst_56 : f32 to vector<16x128xf32>
    %217 = arith.addf %215, %216 : vector<16x128xf32>
    %218 = math.rsqrt %217 : vector<16x128xf32>
    %219 = arith.mulf %212, %218 : vector<16x128xf32>
    %220 = vector.extract_strided_slice %19 {offsets = [1, 0], sizes = [1, 128], strides = [1, 1]} : vector<3x128xf32> to vector<1x128xf32>
    %221 = vector.broadcast %220 : vector<1x128xf32> to vector<16x128xf32>
    %222 = arith.mulf %219, %221 : vector<16x128xf32>
    %223 = vector.extract_strided_slice %20 {offsets = [1, 0], sizes = [1, 128], strides = [1, 1]} : vector<3x128xf32> to vector<1x128xf32>
    %224 = vector.broadcast %223 : vector<1x128xf32> to vector<16x128xf32>
    %225 = arith.addf %222, %224 : vector<16x128xf32>
    %c3 = arith.constant 3 : index
    %c0_57 = arith.constant 0 : index
    %c0_58 = arith.constant 0 : index
    %226 = vector.load %arg12[%c3, %c0_57, %c0_58] : memref<6x128x128xf32, #tpu.memory_space<vmem>>, vector<1x128x128xf32>
    %227 = vector.shape_cast %226 : vector<1x128x128xf32> to vector<128x128xf32>
    %cst_59 = arith.constant dense<0.000000e+00> : vector<16x128xf32>
    %228 = tpu.matmul %225, %227, %cst_59 {dimension_numbers = #tpu.dot_dimension_numbers<[1], [0], [0], [1], [0, 0, 1, 1], [], []>} : vector<16x128xf32>, vector<128x128xf32>, vector<16x128xf32> -> vector<16x128xf32>
    %c4 = arith.constant 4 : index
    %c0_60 = arith.constant 0 : index
    %c0_61 = arith.constant 0 : index
    %229 = vector.load %arg12[%c4, %c0_60, %c0_61] : memref<6x128x128xf32, #tpu.memory_space<vmem>>, vector<1x128x128xf32>
    %230 = vector.shape_cast %229 : vector<1x128x128xf32> to vector<128x128xf32>
    %cst_62 = arith.constant dense<0.000000e+00> : vector<16x128xf32>
    %231 = tpu.matmul %225, %230, %cst_62 {dimension_numbers = #tpu.dot_dimension_numbers<[1], [0], [0], [1], [0, 0, 1, 1], [], []>} : vector<16x128xf32>, vector<128x128xf32>, vector<16x128xf32> -> vector<16x128xf32>
    %c5 = arith.constant 5 : index
    %c0_63 = arith.constant 0 : index
    %c0_64 = arith.constant 0 : index
    %232 = vector.load %arg12[%c5, %c0_63, %c0_64] : memref<6x128x128xf32, #tpu.memory_space<vmem>>, vector<1x128x128xf32>
    %233 = vector.shape_cast %232 : vector<1x128x128xf32> to vector<128x128xf32>
    %cst_65 = arith.constant dense<0.000000e+00> : vector<16x128xf32>
    %234 = tpu.matmul %225, %233, %cst_65 {dimension_numbers = #tpu.dot_dimension_numbers<[1], [0], [0], [1], [0, 0, 1, 1], [], []>} : vector<16x128xf32>, vector<128x128xf32>, vector<16x128xf32> -> vector<16x128xf32>
    %235 = vector.extract_strided_slice %228 {offsets = [0, 0], sizes = [16, 32], strides = [1, 1]} : vector<16x128xf32> to vector<16x32xf32>
    %236 = tpu.concatenate %235, %235, %235, %235 in 1 : vector<16x32xf32>, vector<16x32xf32>, vector<16x32xf32>, vector<16x32xf32> -> vector<16x128xf32>
    %237 = arith.mulf %236, %231 : vector<16x128xf32>
    %cst_66 = arith.constant dense<0.000000e+00> : vector<16x128xf32>
    %238 = tpu.matmul %237, %23, %cst_66 {dimension_numbers = #tpu.dot_dimension_numbers<[1], [0], [0], [1], [0, 0, 1, 1], [], []>} : vector<16x128xf32>, vector<128x128xf32>, vector<16x128xf32> -> vector<16x128xf32>
    %239 = vector.extract_strided_slice %238 {offsets = [0, 0], sizes = [16, 32], strides = [1, 1]} : vector<16x128xf32> to vector<16x32xf32>
    %240 = vector.extract_strided_slice %238 {offsets = [0, 32], sizes = [16, 32], strides = [1, 1]} : vector<16x128xf32> to vector<16x32xf32>
    %241 = vector.extract_strided_slice %238 {offsets = [0, 64], sizes = [16, 32], strides = [1, 1]} : vector<16x128xf32> to vector<16x32xf32>
    %242 = vector.extract_strided_slice %238 {offsets = [0, 96], sizes = [16, 32], strides = [1, 1]} : vector<16x128xf32> to vector<16x32xf32>
    %243 = arith.maximumf %239, %240 : vector<16x32xf32>
    %244 = arith.maximumf %243, %241 : vector<16x32xf32>
    %245 = arith.maximumf %244, %242 : vector<16x32xf32>
    %246 = arith.subf %239, %245 : vector<16x32xf32>
    %247 = math.exp %246 : vector<16x32xf32>
    %248 = arith.subf %240, %245 : vector<16x32xf32>
    %249 = math.exp %248 : vector<16x32xf32>
    %250 = arith.subf %241, %245 : vector<16x32xf32>
    %251 = math.exp %250 : vector<16x32xf32>
    %252 = arith.subf %242, %245 : vector<16x32xf32>
    %253 = math.exp %252 : vector<16x32xf32>
    %254 = arith.addf %247, %249 : vector<16x32xf32>
    %255 = arith.addf %254, %251 : vector<16x32xf32>
    %256 = arith.addf %255, %253 : vector<16x32xf32>
    %257 = tpu.reciprocal %256 {approx = true} : vector<16x32xf32> -> vector<16x32xf32>
    %258 = arith.mulf %247, %257 : vector<16x32xf32>
    %259 = vector.extract_strided_slice %234 {offsets = [0, 0], sizes = [16, 32], strides = [1, 1]} : vector<16x128xf32> to vector<16x32xf32>
    %260 = arith.mulf %258, %259 : vector<16x32xf32>
    %261 = arith.mulf %249, %257 : vector<16x32xf32>
    %262 = vector.extract_strided_slice %234 {offsets = [0, 32], sizes = [16, 32], strides = [1, 1]} : vector<16x128xf32> to vector<16x32xf32>
    %263 = arith.mulf %261, %262 : vector<16x32xf32>
    %264 = arith.addf %260, %263 : vector<16x32xf32>
    %265 = arith.mulf %251, %257 : vector<16x32xf32>
    %266 = vector.extract_strided_slice %234 {offsets = [0, 64], sizes = [16, 32], strides = [1, 1]} : vector<16x128xf32> to vector<16x32xf32>
    %267 = arith.mulf %265, %266 : vector<16x32xf32>
    %268 = arith.addf %264, %267 : vector<16x32xf32>
    %269 = arith.mulf %253, %257 : vector<16x32xf32>
    %270 = vector.extract_strided_slice %234 {offsets = [0, 96], sizes = [16, 32], strides = [1, 1]} : vector<16x128xf32> to vector<16x32xf32>
    %271 = arith.mulf %269, %270 : vector<16x32xf32>
    %272 = arith.addf %268, %271 : vector<16x32xf32>
    %273 = vector.extract_strided_slice %228 {offsets = [0, 32], sizes = [16, 32], strides = [1, 1]} : vector<16x128xf32> to vector<16x32xf32>
    %274 = tpu.concatenate %273, %273, %273, %273 in 1 : vector<16x32xf32>, vector<16x32xf32>, vector<16x32xf32>, vector<16x32xf32> -> vector<16x128xf32>
    %275 = arith.mulf %274, %231 : vector<16x128xf32>
    %cst_67 = arith.constant dense<0.000000e+00> : vector<16x128xf32>
    %276 = tpu.matmul %275, %23, %cst_67 {dimension_numbers = #tpu.dot_dimension_numbers<[1], [0], [0], [1], [0, 0, 1, 1], [], []>} : vector<16x128xf32>, vector<128x128xf32>, vector<16x128xf32> -> vector<16x128xf32>
    %277 = vector.extract_strided_slice %276 {offsets = [0, 0], sizes = [16, 32], strides = [1, 1]} : vector<16x128xf32> to vector<16x32xf32>
    %278 = vector.extract_strided_slice %276 {offsets = [0, 32], sizes = [16, 32], strides = [1, 1]} : vector<16x128xf32> to vector<16x32xf32>
    %279 = vector.extract_strided_slice %276 {offsets = [0, 64], sizes = [16, 32], strides = [1, 1]} : vector<16x128xf32> to vector<16x32xf32>
    %280 = vector.extract_strided_slice %276 {offsets = [0, 96], sizes = [16, 32], strides = [1, 1]} : vector<16x128xf32> to vector<16x32xf32>
    %281 = arith.maximumf %277, %278 : vector<16x32xf32>
    %282 = arith.maximumf %281, %279 : vector<16x32xf32>
    %283 = arith.maximumf %282, %280 : vector<16x32xf32>
    %284 = arith.subf %277, %283 : vector<16x32xf32>
    %285 = math.exp %284 : vector<16x32xf32>
    %286 = arith.subf %278, %283 : vector<16x32xf32>
    %287 = math.exp %286 : vector<16x32xf32>
    %288 = arith.subf %279, %283 : vector<16x32xf32>
    %289 = math.exp %288 : vector<16x32xf32>
    %290 = arith.subf %280, %283 : vector<16x32xf32>
    %291 = math.exp %290 : vector<16x32xf32>
    %292 = arith.addf %285, %287 : vector<16x32xf32>
    %293 = arith.addf %292, %289 : vector<16x32xf32>
    %294 = arith.addf %293, %291 : vector<16x32xf32>
    %295 = tpu.reciprocal %294 {approx = true} : vector<16x32xf32> -> vector<16x32xf32>
    %296 = arith.mulf %285, %295 : vector<16x32xf32>
    %297 = vector.extract_strided_slice %234 {offsets = [0, 0], sizes = [16, 32], strides = [1, 1]} : vector<16x128xf32> to vector<16x32xf32>
    %298 = arith.mulf %296, %297 : vector<16x32xf32>
    %299 = arith.mulf %287, %295 : vector<16x32xf32>
    %300 = vector.extract_strided_slice %234 {offsets = [0, 32], sizes = [16, 32], strides = [1, 1]} : vector<16x128xf32> to vector<16x32xf32>
    %301 = arith.mulf %299, %300 : vector<16x32xf32>
    %302 = arith.addf %298, %301 : vector<16x32xf32>
    %303 = arith.mulf %289, %295 : vector<16x32xf32>
    %304 = vector.extract_strided_slice %234 {offsets = [0, 64], sizes = [16, 32], strides = [1, 1]} : vector<16x128xf32> to vector<16x32xf32>
    %305 = arith.mulf %303, %304 : vector<16x32xf32>
    %306 = arith.addf %302, %305 : vector<16x32xf32>
    %307 = arith.mulf %291, %295 : vector<16x32xf32>
    %308 = vector.extract_strided_slice %234 {offsets = [0, 96], sizes = [16, 32], strides = [1, 1]} : vector<16x128xf32> to vector<16x32xf32>
    %309 = arith.mulf %307, %308 : vector<16x32xf32>
    %310 = arith.addf %306, %309 : vector<16x32xf32>
    %311 = vector.extract_strided_slice %228 {offsets = [0, 64], sizes = [16, 32], strides = [1, 1]} : vector<16x128xf32> to vector<16x32xf32>
    %312 = tpu.concatenate %311, %311, %311, %311 in 1 : vector<16x32xf32>, vector<16x32xf32>, vector<16x32xf32>, vector<16x32xf32> -> vector<16x128xf32>
    %313 = arith.mulf %312, %231 : vector<16x128xf32>
    %cst_68 = arith.constant dense<0.000000e+00> : vector<16x128xf32>
    %314 = tpu.matmul %313, %23, %cst_68 {dimension_numbers = #tpu.dot_dimension_numbers<[1], [0], [0], [1], [0, 0, 1, 1], [], []>} : vector<16x128xf32>, vector<128x128xf32>, vector<16x128xf32> -> vector<16x128xf32>
    %315 = vector.extract_strided_slice %314 {offsets = [0, 0], sizes = [16, 32], strides = [1, 1]} : vector<16x128xf32> to vector<16x32xf32>
    %316 = vector.extract_strided_slice %314 {offsets = [0, 32], sizes = [16, 32], strides = [1, 1]} : vector<16x128xf32> to vector<16x32xf32>
    %317 = vector.extract_strided_slice %314 {offsets = [0, 64], sizes = [16, 32], strides = [1, 1]} : vector<16x128xf32> to vector<16x32xf32>
    %318 = vector.extract_strided_slice %314 {offsets = [0, 96], sizes = [16, 32], strides = [1, 1]} : vector<16x128xf32> to vector<16x32xf32>
    %319 = arith.maximumf %315, %316 : vector<16x32xf32>
    %320 = arith.maximumf %319, %317 : vector<16x32xf32>
    %321 = arith.maximumf %320, %318 : vector<16x32xf32>
    %322 = arith.subf %315, %321 : vector<16x32xf32>
    %323 = math.exp %322 : vector<16x32xf32>
    %324 = arith.subf %316, %321 : vector<16x32xf32>
    %325 = math.exp %324 : vector<16x32xf32>
    %326 = arith.subf %317, %321 : vector<16x32xf32>
    %327 = math.exp %326 : vector<16x32xf32>
    %328 = arith.subf %318, %321 : vector<16x32xf32>
    %329 = math.exp %328 : vector<16x32xf32>
    %330 = arith.addf %323, %325 : vector<16x32xf32>
    %331 = arith.addf %330, %327 : vector<16x32xf32>
    %332 = arith.addf %331, %329 : vector<16x32xf32>
    %333 = tpu.reciprocal %332 {approx = true} : vector<16x32xf32> -> vector<16x32xf32>
    %334 = arith.mulf %323, %333 : vector<16x32xf32>
    %335 = vector.extract_strided_slice %234 {offsets = [0, 0], sizes = [16, 32], strides = [1, 1]} : vector<16x128xf32> to vector<16x32xf32>
    %336 = arith.mulf %334, %335 : vector<16x32xf32>
    %337 = arith.mulf %325, %333 : vector<16x32xf32>
    %338 = vector.extract_strided_slice %234 {offsets = [0, 32], sizes = [16, 32], strides = [1, 1]} : vector<16x128xf32> to vector<16x32xf32>
    %339 = arith.mulf %337, %338 : vector<16x32xf32>
    %340 = arith.addf %336, %339 : vector<16x32xf32>
    %341 = arith.mulf %327, %333 : vector<16x32xf32>
    %342 = vector.extract_strided_slice %234 {offsets = [0, 64], sizes = [16, 32], strides = [1, 1]} : vector<16x128xf32> to vector<16x32xf32>
    %343 = arith.mulf %341, %342 : vector<16x32xf32>
    %344 = arith.addf %340, %343 : vector<16x32xf32>
    %345 = arith.mulf %329, %333 : vector<16x32xf32>
    %346 = vector.extract_strided_slice %234 {offsets = [0, 96], sizes = [16, 32], strides = [1, 1]} : vector<16x128xf32> to vector<16x32xf32>
    %347 = arith.mulf %345, %346 : vector<16x32xf32>
    %348 = arith.addf %344, %347 : vector<16x32xf32>
    %349 = vector.extract_strided_slice %228 {offsets = [0, 96], sizes = [16, 32], strides = [1, 1]} : vector<16x128xf32> to vector<16x32xf32>
    %350 = tpu.concatenate %349, %349, %349, %349 in 1 : vector<16x32xf32>, vector<16x32xf32>, vector<16x32xf32>, vector<16x32xf32> -> vector<16x128xf32>
    %351 = arith.mulf %350, %231 : vector<16x128xf32>
    %cst_69 = arith.constant dense<0.000000e+00> : vector<16x128xf32>
    %352 = tpu.matmul %351, %23, %cst_69 {dimension_numbers = #tpu.dot_dimension_numbers<[1], [0], [0], [1], [0, 0, 1, 1], [], []>} : vector<16x128xf32>, vector<128x128xf32>, vector<16x128xf32> -> vector<16x128xf32>
    %353 = vector.extract_strided_slice %352 {offsets = [0, 0], sizes = [16, 32], strides = [1, 1]} : vector<16x128xf32> to vector<16x32xf32>
    %354 = vector.extract_strided_slice %352 {offsets = [0, 32], sizes = [16, 32], strides = [1, 1]} : vector<16x128xf32> to vector<16x32xf32>
    %355 = vector.extract_strided_slice %352 {offsets = [0, 64], sizes = [16, 32], strides = [1, 1]} : vector<16x128xf32> to vector<16x32xf32>
    %356 = vector.extract_strided_slice %352 {offsets = [0, 96], sizes = [16, 32], strides = [1, 1]} : vector<16x128xf32> to vector<16x32xf32>
    %357 = arith.maximumf %353, %354 : vector<16x32xf32>
    %358 = arith.maximumf %357, %355 : vector<16x32xf32>
    %359 = arith.maximumf %358, %356 : vector<16x32xf32>
    %360 = arith.subf %353, %359 : vector<16x32xf32>
    %361 = math.exp %360 : vector<16x32xf32>
    %362 = arith.subf %354, %359 : vector<16x32xf32>
    %363 = math.exp %362 : vector<16x32xf32>
    %364 = arith.subf %355, %359 : vector<16x32xf32>
    %365 = math.exp %364 : vector<16x32xf32>
    %366 = arith.subf %356, %359 : vector<16x32xf32>
    %367 = math.exp %366 : vector<16x32xf32>
    %368 = arith.addf %361, %363 : vector<16x32xf32>
    %369 = arith.addf %368, %365 : vector<16x32xf32>
    %370 = arith.addf %369, %367 : vector<16x32xf32>
    %371 = tpu.reciprocal %370 {approx = true} : vector<16x32xf32> -> vector<16x32xf32>
    %372 = arith.mulf %361, %371 : vector<16x32xf32>
    %373 = vector.extract_strided_slice %234 {offsets = [0, 0], sizes = [16, 32], strides = [1, 1]} : vector<16x128xf32> to vector<16x32xf32>
    %374 = arith.mulf %372, %373 : vector<16x32xf32>
    %375 = arith.mulf %363, %371 : vector<16x32xf32>
    %376 = vector.extract_strided_slice %234 {offsets = [0, 32], sizes = [16, 32], strides = [1, 1]} : vector<16x128xf32> to vector<16x32xf32>
    %377 = arith.mulf %375, %376 : vector<16x32xf32>
    %378 = arith.addf %374, %377 : vector<16x32xf32>
    %379 = arith.mulf %365, %371 : vector<16x32xf32>
    %380 = vector.extract_strided_slice %234 {offsets = [0, 64], sizes = [16, 32], strides = [1, 1]} : vector<16x128xf32> to vector<16x32xf32>
    %381 = arith.mulf %379, %380 : vector<16x32xf32>
    %382 = arith.addf %378, %381 : vector<16x32xf32>
    %383 = arith.mulf %367, %371 : vector<16x32xf32>
    %384 = vector.extract_strided_slice %234 {offsets = [0, 96], sizes = [16, 32], strides = [1, 1]} : vector<16x128xf32> to vector<16x32xf32>
    %385 = arith.mulf %383, %384 : vector<16x32xf32>
    %386 = arith.addf %382, %385 : vector<16x32xf32>
    %387 = tpu.concatenate %272, %310, %348, %386 in 1 : vector<16x32xf32>, vector<16x32xf32>, vector<16x32xf32>, vector<16x32xf32> -> vector<16x128xf32>
    %cst_70 = arith.constant 0.000000e+00 : f32
    %388 = vector.broadcast %cst_70 : f32 to vector<16x128xf32>
    %389 = arith.maximumf %387, %388 : vector<16x128xf32>
    %390 = arith.addf %389, %225 : vector<16x128xf32>
    %cst_71 = arith.constant dense<0.000000e+00> : vector<16x4xf32>
    %391 = tpu.matmul %390, %21, %cst_71 {dimension_numbers = #tpu.dot_dimension_numbers<[1], [0], [0], [1], [0, 0, 1, 1], [], []>} : vector<16x128xf32>, vector<128x4xf32>, vector<16x4xf32> -> vector<16x4xf32>
    %cst_72 = arith.constant dense<0.000000e+00> : vector<16x128xf32>
    %392 = tpu.matmul %391, %22, %cst_72 {dimension_numbers = #tpu.dot_dimension_numbers<[1], [0], [0], [1], [0, 0, 1, 1], [], []>} : vector<16x4xf32>, vector<4x128xf32>, vector<16x128xf32> -> vector<16x128xf32>
    %393 = arith.subf %390, %392 : vector<16x128xf32>
    %394 = arith.mulf %393, %393 : vector<16x128xf32>
    %cst_73 = arith.constant dense<0.000000e+00> : vector<16x4xf32>
    %395 = tpu.matmul %394, %21, %cst_73 {dimension_numbers = #tpu.dot_dimension_numbers<[1], [0], [0], [1], [0, 0, 1, 1], [], []>} : vector<16x128xf32>, vector<128x4xf32>, vector<16x4xf32> -> vector<16x4xf32>
    %cst_74 = arith.constant dense<0.000000e+00> : vector<16x128xf32>
    %396 = tpu.matmul %395, %22, %cst_74 {dimension_numbers = #tpu.dot_dimension_numbers<[1], [0], [0], [1], [0, 0, 1, 1], [], []>} : vector<16x4xf32>, vector<4x128xf32>, vector<16x128xf32> -> vector<16x128xf32>
    %cst_75 = arith.constant 9.99999974E-6 : f32
    %397 = vector.broadcast %cst_75 : f32 to vector<16x128xf32>
    %398 = arith.addf %396, %397 : vector<16x128xf32>
    %399 = math.rsqrt %398 : vector<16x128xf32>
    %400 = arith.mulf %393, %399 : vector<16x128xf32>
    %401 = vector.extract_strided_slice %19 {offsets = [2, 0], sizes = [1, 128], strides = [1, 1]} : vector<3x128xf32> to vector<1x128xf32>
    %402 = vector.broadcast %401 : vector<1x128xf32> to vector<16x128xf32>
    %403 = arith.mulf %400, %402 : vector<16x128xf32>
    %404 = vector.extract_strided_slice %20 {offsets = [2, 0], sizes = [1, 128], strides = [1, 1]} : vector<3x128xf32> to vector<1x128xf32>
    %405 = vector.broadcast %404 : vector<1x128xf32> to vector<16x128xf32>
    %406 = arith.addf %403, %405 : vector<16x128xf32>
    %407 = vector.extract_strided_slice %406 {offsets = [0, 0], sizes = [16, 32], strides = [1, 1]} : vector<16x128xf32> to vector<16x32xf32>
    %408 = vector.extract_strided_slice %406 {offsets = [0, 32], sizes = [16, 32], strides = [1, 1]} : vector<16x128xf32> to vector<16x32xf32>
    %409 = arith.addf %407, %408 : vector<16x32xf32>
    %410 = vector.extract_strided_slice %406 {offsets = [0, 64], sizes = [16, 32], strides = [1, 1]} : vector<16x128xf32> to vector<16x32xf32>
    %411 = arith.addf %409, %410 : vector<16x32xf32>
    %412 = vector.extract_strided_slice %406 {offsets = [0, 96], sizes = [16, 32], strides = [1, 1]} : vector<16x128xf32> to vector<16x32xf32>
    %413 = arith.addf %411, %412 : vector<16x32xf32>
    %cst_76 = arith.constant 2.500000e-01 : f32
    %414 = vector.broadcast %cst_76 : f32 to vector<16x32xf32>
    %415 = arith.mulf %413, %414 : vector<16x32xf32>
    %c0_77 = arith.constant 0 : index
    %c0_78 = arith.constant 0 : index
    %416 = vector.load %arg14[%c0_77, %c0_78] : memref<32x1xf32, #tpu.memory_space<vmem>>, vector<32x1xf32>
    %cst_79 = arith.constant dense<0.000000e+00> : vector<16x1xf32>
    %417 = tpu.matmul %415, %416, %cst_79 {dimension_numbers = #tpu.dot_dimension_numbers<[1], [0], [0], [1], [0, 0, 1, 1], [], []>} : vector<16x32xf32>, vector<32x1xf32>, vector<16x1xf32> -> vector<16x1xf32>
    %c0_80 = arith.constant 0 : index
    %c0_81 = arith.constant 0 : index
    %418 = vector.load %arg15[%c0_80, %c0_81] : memref<32x1xf32, #tpu.memory_space<vmem>>, vector<32x1xf32>
    %cst_82 = arith.constant dense<0.000000e+00> : vector<16x1xf32>
    %419 = tpu.matmul %14, %418, %cst_82 {dimension_numbers = #tpu.dot_dimension_numbers<[1], [0], [0], [1], [0, 0, 1, 1], [], []>} : vector<16x32xf32>, vector<32x1xf32>, vector<16x1xf32> -> vector<16x1xf32>
    %420 = arith.addf %417, %419 : vector<16x1xf32>
    %c0_83 = arith.constant 0 : index
    %c0_84 = arith.constant 0 : index
    %421 = vector.load %arg16[%c0_83, %c0_84] : memref<1x1xf32, #tpu.memory_space<vmem>>, vector<1x1xf32>
    %422 = vector.broadcast %421 : vector<1x1xf32> to vector<16x1xf32>
    %423 = arith.addf %420, %422 : vector<16x1xf32>
    %424 = arith.addf %12, %415 : vector<16x32xf32>
    %425 = arith.addf %13, %14 : vector<16x32xf32>
    %426 = tpu.concatenate %12, %424, %13, %425 in 1 : vector<16x32xf32>, vector<16x32xf32>, vector<16x32xf32>, vector<16x32xf32> -> vector<16x128xf32>
    %c0_85 = arith.constant 0 : index
    %c0_86 = arith.constant 0 : index
    %427 = vector.load %arg17[%c0_85, %c0_86] : memref<16x128xf32, #tpu.memory_space<vmem>>, vector<16x128xf32>
    tpu.vector_store %arg17[%c0_85, %c0_86], %426 {strides = array<i32>} : memref<16x128xf32, #tpu.memory_space<vmem>>, vector<16x128xf32>,
    %c0_87 = arith.constant 0 : index
    %c0_88 = arith.constant 0 : index
    %428 = vector.load %arg18[%c0_87, %c0_88] : memref<16x1xf32, #tpu.memory_space<vmem>>, vector<16x1xf32>
    tpu.vector_store %arg18[%c0_87, %c0_88], %423 {strides = array<i32>} : memref<16x1xf32, #tpu.memory_space<vmem>>, vector<16x1xf32>,
    return
  }
}

</mosaic_0001>

<bundles_post_ra>
// kernel: mul.2
= control target key start
LH: loop header
LB: loop body
LE: loop exit
PB: predicated region body
PF: predicated region fallthrough
CT: control target
= control target key end

     0   :  { %s34_s0 = inlined_call_operand.vmem [shape: f32[48], index: 0, kind: input, shape index: {}]   ;;  %s35_s1 = inlined_call_operand.vmem [shape: f32[48], index: 1, kind: input, shape index: {}]   ;;  %s36_s2 = inlined_call_operand.vmem [shape: f32[48], index: 2, kind: output, shape index: {}]  }
   0x1   :  { %v3_v0 = vld [vmem:[%s34_s0] sm:$0x1] }
   0x2   :  { %v4_v1 = vld [vmem:[%s35_s1] sm:$0x1] }
   0x3   :  { %v7_v2 = vmul.f32 %v4_v1, %v3_v0 }
   0x5   :  { %9 = vst [vmem:[%s36_s2] sm:$0x1] %v7_v2 }

// kernel: model_forward.1
= control target key start
LH: loop header
LB: loop body
LE: loop exit
PB: predicated region body
PF: predicated region fallthrough
CT: control target
= control target key end

     0   :  { %s9139_s0 = inlined_call_operand.vmem [shape: f32[16,32], index: 0, kind: input, shape index: {}]   ;;  %s9140_s1 = inlined_call_operand.hbm [shape: f32[16,16], index: 1, kind: input, shape index: {}]   ;;  %s9141_s2 = inlined_call_operand.hbm [shape: f32[16,16], index: 2, kind: input, shape index: {}]   ;;  %s9142_s3 = inlined_call_operand.vmem [shape: f32[16,16], index: 3, kind: input, shape index: {}]   ;;  %s9143_s4 = inlined_call_operand.vmem [shape: f32[32,64], index: 4, kind: input, shape index: {}]   ;;  %s9144_s5 = inlined_call_operand.vmem [shape: f32[1,64], index: 5, kind: input, shape index: {}]   ;;  %s9145_s6 = inlined_call_operand.vmem [shape: f32[128,128], index: 6, kind: input, shape index: {}]   ;;  %s9146_s7 = inlined_call_operand.vmem [shape: f32[1,128], index: 7, kind: input, shape index: {}]   ;;  %s9147_s8 = inlined_call_operand.vmem [shape: f32[128,4], index: 8, kind: input, shape index: {}]   ;;  %s9148_s9 = inlined_call_operand.vmem [shape: f32[4,128], index: 9, kind: input, shape index: {}]   ;;  %s9149_s10 = inlined_call_operand.vmem [shape: f32[3,128], index: 10, kind: input, shape index: {}]   ;;  %s9150_s11 = inlined_call_operand.vmem [shape: f32[3,128], index: 11, kind: input, shape index: {}]   ;;  %s9151_s12 = inlined_call_operand.vmem [shape: f32[6,128,128], index: 12, kind: input, shape index: {}]   ;;  %s9152_s13 = inlined_call_operand.vmem [shape: f32[128,128], index: 13, kind: input, shape index: {}]   ;;  %s9153_s14 = inlined_call_operand.vmem [shape: f32[32,1], index: 14, kind: input, shape index: {}]   ;;  %s9154_s15 = inlined_call_operand.vmem [shape: f32[32,1], index: 15, kind: input, shape index: {}]   ;;  %s9155_s16 = inlined_call_operand.<no memory space> [shape: f32[1,1], index: 16, kind: input, shape index: {}]   ;;  %s9156_s17 = inlined_call_operand.vmem [shape: f32[16,128], index: 17, kind: output, shape index: {0}]   ;;  %s9157_s18 = inlined_call_operand.vmem [shape: f32[16,1], index: 18, kind: output, shape index: {1}]  }
   0x1   :  { %9195 = sst [smem:[#allocation27_spill]] %s9139_s0  ;;  %v24_v0 = vstv %s9155_s16 }
   0x2   :  { %9196 = sst [smem:[#allocation28_spill]] %s9140_s1  ;;  %25 = vst [vmem:[#allocation2] sm:$0x1] %v24_v0 }
   0x3   :  { %9197 = sst [smem:[#allocation29_spill]] %s9141_s2 }
   0x4   :  { %9198 = sst [smem:[#allocation30_spill]] %s9157_s18 }
   0x5   :  { %26 = vsyncpa [#allocation4], 0 }
   0x6   :  { %27 = vsyncpa [#allocation6], 0  ;;  %s7118_s29 = smov [#allocation3]   ;;  %s9199_s1 = sld [smem:[#allocation28_spill]] }
   0x7   :  { %s35_s30 = sshll.u32 %s7118_s29, 4  ;;  %s36_s30 = int_to_ptr.vmem [resolvable:$true] %s35_s30 }
   0xc   :  { %s7070_s20 = scalar_lea.hbm %s9199_s1, 256 }
   0xd   :  { %p7071_p0 = scmp.ne.s32.totalorder %s9199_s1, %s7070_s20  ;;  %p7074_p1 = scmp.lt.u32.totalorder %s7070_s20, %s9199_s1 }
   0xf   :  { %p7076_p2 = pnand %p7074_p1, %p7071_p0 }
  0x11   :  { %7079 = shalt.err (!%p7076_p2)
}
  0x12   :  { %s7080_s16 = scalar_lea.vmem %s36_s30, 256  ;;  %p7085_p4 = scmp.lt.s32.totalorder %s36_s30, %s36_s30 }
  0x13   :  { %p7081_p3 = scmp.ne.s32.totalorder %s36_s30, %s7080_s16  ;;  %p7086_p5 = scmp.lt.s32.totalorder %s7080_s16, %s7080_s16 }
  0x15   :  { %p7087_p6 = por %p7086_p5, %p7085_p4 }
  0x17   :  { %p7088_p7 = pnand %p7087_p6, %p7081_p3 }
  0x19   :  { %7091 = shalt.err (!%p7088_p7)
}
  0x1a   :  { %s7119_s24 = smov 128   ;;  %s7120_s25 = smov 8  }
  0x1b   :  { %41 = dma.hbm_to_vmem [thread:$0]  %s9199_s1, 256, %s36_s30, [#allocation4], %s7119_s24, %s7119_s24, %s7120_s25  }
  0x1c   :  { %s7121_s28 = smov [#allocation5]   ;;  %s9200_s20 = sld [smem:[#allocation29_spill]] }
  0x1d   :  { %s47_s29 = sshll.u32 %s7121_s28, 4  ;;  %s48_s29 = int_to_ptr.vmem [resolvable:$true] %s47_s29 }
  0x22   :  { %s7092_s21 = scalar_lea.hbm %s9200_s20, 256 }
  0x23   :  { %p7093_p8 = scmp.ne.s32.totalorder %s9200_s20, %s7092_s21  ;;  %p7096_p9 = scmp.lt.u32.totalorder %s7092_s21, %s9200_s20 }
  0x25   :  { %p7098_p10 = pnand %p7096_p9, %p7093_p8 }
  0x27   :  { %7101 = shalt.err (!%p7098_p10)
}
  0x28   :  { %s7102_s18 = scalar_lea.vmem %s48_s29, 256  ;;  %p7107_p12 = scmp.lt.s32.totalorder %s48_s29, %s48_s29 }
  0x29   :  { %p7103_p11 = scmp.ne.s32.totalorder %s48_s29, %s7102_s18  ;;  %p7108_p13 = scmp.lt.s32.totalorder %s7102_s18, %s7102_s18 }
  0x2b   :  { %p7109_p0 = por %p7108_p13, %p7107_p12 }
  0x2d   :  { %p7110_p1 = pnand %p7109_p0, %p7103_p11 }
  0x2f   :  { %7113 = shalt.err (!%p7110_p1)
}
  0x30   :  { %53 = dma.hbm_to_vmem [thread:$0]  %s9200_s20, 256, %s48_s29, [#allocation6], %s7119_s24, %s7119_s24, %s7120_s25  }
  0x31   :  { %7114 = dma.done.wait [#allocation4], 256  }
  0x32   :  { %7115 = vsyncadd [#allocation4], 4294967040 }
  0x33   :  { %7116 = dma.done.wait [#allocation6], 256  }
  0x34   :  { %7117 = vsyncadd [#allocation6], 4294967040  ;;  %vm107_vm0 = vcmask 261120   ;;  %v96_v1 = vld [vmem:[%s9143_s4] sm:$0xff]  ;;  %v97_v2 = vld [vmem:[%s9143_s4 + $0x8] sm:$0xff]  ;;  %s9201_s20 = sld [smem:[#allocation27_spill]] }
  0x35   :  { %v98_v3 = vld [vmem:[%s9143_s4 + $0x10] sm:$0xff]  ;;  %v6148_v4 = vpack.c.bf16 %v97_v2, %v96_v1  ;;  %v99_v5 = vld [vmem:[%s9143_s4 + $0x18] sm:$0xff]  ;;  %v90_v9 = vld [vmem:[#allocation3] sm:$0xff]  ;;  %vm189_vm1 = vcmask 130048   ;;  %s7123_s26 = smov 64   ;;  %s7124_s2 = smov 96  }
  0x36   :  { %v6152_v7 = vpack.c.bf16 %v99_v5, %v98_v3  ;;  %5330 = vmatprep.mubr.msk.f32.mxu1 %vm189_vm1, %v90_v9  ;;  %v4751_v10 = vld [vmem:[%s9144_s5] ss:$0 sm:$0xff]  ;;  %v91_v16 = vld [vmem:[#allocation3 + $0x8] sm:$0xff]  ;;  %v92_v17 = vld [vmem:[#allocation5] sm:$0xff]  ;;  %vm684_vm2 = vcmask 523264   ;;  %vm687_vm3 = vcmask 785408  }
  0x37   :  { %6149 = vmatprep.subr.bf16.mxu0 %v6148_v4  ;;  %v93_v18 = vld [vmem:[#allocation5 + $0x8] sm:$0xff]  ;;  %v95_v24 = vld [vmem:[%s9142_s3 + $0x8] sm:$0xff]  ;;  %v727_v41 = vld [vmem:[%s9145_s6 + $0x10] sm:$0xff]  ;;  %vm905_vm4 = vcmask 1043456   ;;  %vm898_vm5 = vcmask 31744   ;;  %vm4738_vm6 = vcmask 7168  }
  0x38   :  { %6151 = vmatpush3.bf16.msra.mxu0 %v6148_v4  ;;  %v94_v19 = vld [vmem:[%s9142_s3] sm:$0xff]  ;;  %s7122_s3 = smov 32   ;;  %v726_v40 = vld [vmem:[%s9145_s6 + $0x8] sm:$0xff]  ;;  %v728_v43 = vld [vmem:[%s9145_s6 + $0x18] sm:$0xff]  ;;  %s9256_s28 = sld [smem:[#allocation30_spill]] }
  0x39   :  { %6153 = vmatprep.subr.bf16.mxu0 %v6152_v7  ;;  %v725_v39 = vld [vmem:[%s9145_s6] sm:$0xff]  ;;  %v6184_v44 = vpack.c.bf16 %v728_v43, %v727_v41  ;;  %v730_v46 = vld [vmem:[%s9145_s6 + $0x28] sm:$0xff]  ;;  %v731_v48 = vld [vmem:[%s9145_s6 + $0x30] sm:$0xff] }
  0x3a   :  { %v7262_v6 = vld [vmem:[%s9201_s20] sm:$0xff]  ;;  %v7269_v8 = vld [vmem:[%s9201_s20 + $0x8] sm:$0xff]  ;;  %v6180_v42 = vpack.c.bf16 %v726_v40, %v725_v39  ;;  %v732_v49 = vld [vmem:[%s9145_s6 + $0x38] sm:$0xff] }
  0x3b   :  { %5316 = vmatprep.mubr.msk.f32.mxu0 %vm107_vm0, %v7262_v6  ;;  %v6168_v23 = vpack.c.bf16 %v7269_v8, %v7262_v6  ;;  %v729_v45 = vld [vmem:[%s9145_s6 + $0x20] sm:$0xff]  ;;  %v6192_v50 = vpack.c.bf16 %v732_v49, %v731_v48  ;;  %v734_v52 = vld [vmem:[%s9145_s6 + $0x48] sm:$0xff]  ;;  %v735_v54 = vld [vmem:[%s9145_s6 + $0x50] sm:$0xff] }
  0x3c   :  { %6155 = vmatpush3.bf16.msra.mxu0 %v6152_v7  ;;  %v6188_v47 = vpack.c.bf16 %v730_v46, %v729_v45  ;;  %v733_v51 = vld [vmem:[%s9145_s6 + $0x40] sm:$0xff]  ;;  %v736_v55 = vld [vmem:[%s9145_s6 + $0x58] sm:$0xff]  ;;  %v738_v58 = vld [vmem:[%s9145_s6 + $0x68] sm:$0xff] }
  0x3d   :  { %v6196_v53 = vpack.c.bf16 %v734_v52, %v733_v51  ;;  %v6200_v56 = vpack.c.bf16 %v736_v55, %v735_v54  ;;  %v737_v57 = vld [vmem:[%s9145_s6 + $0x60] sm:$0xff]  ;;  %v739_v60 = vld [vmem:[%s9145_s6 + $0x70] sm:$0xff]  ;;  %v740_v61 = vld [vmem:[%s9145_s6 + $0x78] sm:$0xff] }
  0x3e   :  { %v6204_v59 = vpack.c.bf16 %v738_v58, %v737_v57  ;;  %v6208_v62 = vpack.c.bf16 %v740_v61, %v739_v60  ;;  %v692_v63 = vld [vmem:[%s9147_s8] sm:$0xff]  ;;  %v693_v0 = vld [vmem:[%s9147_s8 + $0x8] sm:$0xff]  ;;  %v694_v1 = vld [vmem:[%s9147_s8 + $0x10] sm:$0xff] }
  0x3f   :  { %5317 = vmatmul.mubr.msk.f32.vlgmr.msra.gmra.mrb[0].mxu0 %vm107_vm0, %v7269_v8  ;;  %v7371_v2 = vpack.c.bf16 %v693_v0, %v692_v63  ;;  %v695_v3 = vld [vmem:[%s9147_s8 + $0x18] sm:$0xff]  ;;  %v696_v5 = vld [vmem:[%s9147_s8 + $0x20] sm:$0xff]  ;;  %v697_v7 = vld [vmem:[%s9147_s8 + $0x28] sm:$0xff] }
  0x40   :  { %5323 = vmatprep.mubr.msk.f32.mxu0 %vm189_vm1, %v90_v9  ;;  %v7376_v4 = vpack.c.bf16 %v695_v3, %v694_v1  ;;  %v706_v46 = vld [vmem:[%s9147_s8 + $0x70] sm:$0xff]  ;;  %v4766_v48 = vld [vmem:[%s9146_s7] ss:$0 sm:$0xff]  ;;  %v4774_v1 = vld [vmem:[%s9151_s12 + $0x88] sm:$0xff] }
  0x41   :  { %v1160_v61 = vld [vmem:[%s9151_s12] sm:$0xff] }
  0x42   :  { %v4773_v0 = vld [vmem:[%s9151_s12 + $0x80] sm:$0xff] }
  0x43   :  { %v6308_v3 = vpack.c.bf16 %v4774_v1, %v4773_v0  ;;  %v4789_v0 = vld [vmem:[%s9151_s12 + $0x100] sm:$0xff]  ;;  %v4790_v1 = vld [vmem:[%s9151_s12 + $0x108] sm:$0xff] }
 0x112   :  { %v5318_v11 = vpop.f32.mrb[0].mxu0 }
 0x113   :  { %v186_v12 = vadd.f32 %v5318_v11, %v4751_v10  ;;  %v180_v13 = vpop.f32.mrb[1].mxu0 }
 0x114   :  { %v181_v14 = vadd.f32 %v4751_v10, %v180_v13  ;;  %v7387_v10 = vpack.c.bf16 %v697_v7, %v696_v5  ;;  %v699_v13 = vld [vmem:[%s9147_s8 + $0x38] sm:$0xff]  ;;  %v4775_v5 = vld [vmem:[%s9151_s12 + $0x90] sm:$0xff] }
 0x115   :  { %v4776_v7 = vld [vmem:[%s9151_s12 + $0x98] sm:$0xff] }
 0x116   :  { %v6156_v15 = vpack.c.bf16 %v186_v12, %v181_v14  ;;  %v698_v12 = vld [vmem:[%s9147_s8 + $0x30] sm:$0xff] }
 0x118   :  { %6157 = vmatprep.subr.bf16.mxu0 %v6156_v15 }
 0x119   :  { %6159 = vmatpush3.bf16.msra.mxu0 %v6156_v15 }
 0x11a   :  { %6165 = vmatprep.subr.bf16.mxu0 %v6156_v15 }
 0x11c   :  { %5324 = vmatmul.mubr.msk.f32.vlgmr.msra.gmra.mrb[2].mxu0 %vm189_vm1, %v91_v16 }
 0x11d   :  { %6167 = vmatpush3.bf16.msra.mxu0 %v6156_v15  ;;  %5337 = vmatprep.mubr.msk.f32.mxu0 %vm189_vm1, %v92_v17  ;;  %v7398_v15 = vpack.c.bf16 %v699_v13, %v698_v12  ;;  %v701_v17 = vld [vmem:[%s9147_s8 + $0x48] sm:$0xff] }
 0x11e   :  { %v4778_v12 = vld [vmem:[%s9151_s12 + $0xa8] sm:$0xff] }
 0x120   :  { %5338 = vmatmul.mubr.msk.f32.vlgmr.msra.gmra.mrb[4].mxu0 %vm189_vm1, %v93_v18 }
 0x121   :  { %5351 = vmatprep.mubr.msk.f32.mxu0 %vm189_vm1, %v94_v19 }
 0x1ef   :  { %v5325_v20 = vpop.f32.mrb[2].mxu0 }
 0x1f0   :  { %v262_v21 = vpop.f32.mrb[3].mxu0 }
 0x1f1   :  { %v6160_v22 = vpack.c.bf16 %v5325_v20, %v262_v21  ;;  %v703_v20 = vld [vmem:[%s9147_s8 + $0x58] sm:$0xff] }
 0x1f3   :  { %6161 = vmatprep.subr.bf16.mxu1 %v6160_v22  ;;  %v7294_v25 = vpop.f32.mrb[4].mxu0 }
 0x1f4   :  { %6163 = vmatpush3.bf16.msra.mxu1 %v6160_v22  ;;  %9202 = vst [vmem:[#allocation9_spill] sm:$0xff] %v7294_v25  ;;  %v7296_v26 = vpop.f32.mrb[5].mxu0  ;;  %v704_v22 = vld [vmem:[%s9147_s8 + $0x60] sm:$0xff] }
 0x1f5   :  { %6169 = vmatprep.subr.bf16.mxu1 %v6168_v23  ;;  %9203 = vst [vmem:[#allocation10_spill] sm:$0xff] %v7296_v26 }
 0x1f7   :  { %5331 = vmatmul.mubr.msk.f32.vlgmr.msra.gmra.mrb[0].mxu1 %vm189_vm1, %v91_v16  ;;  %v700_v16 = vld [vmem:[%s9147_s8 + $0x40] sm:$0xff] }
 0x1f8   :  { %6171 = vmatpush3.bf16.msra.mxu1 %v6168_v23  ;;  %5344 = vmatprep.mubr.msk.f32.mxu1 %vm189_vm1, %v94_v19  ;;  %v7408_v18 = vpack.c.bf16 %v701_v17, %v700_v16  ;;  %v705_v23 = vld [vmem:[%s9147_s8 + $0x68] sm:$0xff]  ;;  %v1163_v16 = vld [vmem:[%s9151_s12 + $0x18] sm:$0xff] }
 0x1fb   :  { %5345 = vmatmul.mubr.msk.f32.vlgmr.msra.gmra.mrb[2].mxu1 %vm189_vm1, %v95_v24 }
 0x1fc   :  { %5358 = vmatprep.mubr.msk.f32.mxu1 %vm189_vm1, %v94_v19  ;;  %v702_v19 = vld [vmem:[%s9147_s8 + $0x50] sm:$0xff] }
 0x1fd   :  { %v7418_v21 = vpack.c.bf16 %v703_v20, %v702_v19 }
 0x1ff   :  { %9208 = vst [vmem:[#allocation15_spill] sm:$0xff] %v7418_v21 }
 0x2ca   :  { %v7298_v27 = vpop.f32.mrb[0].mxu1 }
 0x2cb   :  { %9204 = vst [vmem:[#allocation11_spill] sm:$0xff] %v7298_v27  ;;  %v7302_v28 = vadd.f32 %v7294_v25, %v7298_v27  ;;  %v7304_v29 = vpop.f32.mrb[1].mxu1 }
 0x2cc   :  { %9206 = vst [vmem:[#allocation13_spill] sm:$0xff] %v7304_v29  ;;  %v7308_v30 = vadd.f32 %v7296_v26, %v7304_v29 }
 0x2cd   :  { %9205 = vst [vmem:[#allocation12_spill] sm:$0xff] %v7302_v28 }
 0x2ce   :  { %9207 = vst [vmem:[#allocation14_spill] sm:$0xff] %v7308_v30  ;;  %v5346_v31 = vpop.f32.mrb[2].mxu1 }
 0x2cf   :  { %v499_v32 = vpop.f32.mrb[3].mxu1 }
 0x2d0   :  { %v6172_v33 = vpack.c.bf16 %v5346_v31, %v499_v32  ;;  %v6877_v34 = vpack.i.bf16 %v5346_v31, %v499_v32 }
 0x2d2   :  { %6878 = vrot.lane.b32.xlu0 %v6877_v34, %s7122_s3  ;;  %6173 = vmatprep.subr.bf16.mxu0 %v6172_v33 }
 0x2d3   :  { %6175 = vmatpush3.bf16.msra.mxu0 %v6172_v33 }
 0x2d4   :  { %6181 = vmatprep.subr.bf16.mxu0 %v6180_v42 }
 0x2d6   :  { %5352 = vmatmul.mubr.msk.f32.vlgmr.msra.gmra.mrb[6].mxu0 %vm189_vm1, %v95_v24 }
 0x2d7   :  { %6183 = vmatpush3.bf16.msra.mxu0 %v6180_v42 }
 0x2d8   :  { %6185 = vmatprep.subr.bf16.mxu0 %v6184_v44 }
 0x2db   :  { %6187 = vmatpush3.bf16.msra.mxu0 %v6184_v44 }
 0x2dc   :  { %6189 = vmatprep.subr.bf16.mxu0 %v6188_v47 }
 0x2df   :  { %6191 = vmatpush3.bf16.msra.mxu0 %v6188_v47 }
 0x2e0   :  { %6193 = vmatprep.subr.bf16.mxu0 %v6192_v50 }
 0x2e3   :  { %6195 = vmatpush3.bf16.msra.mxu0 %v6192_v50 }
 0x2e4   :  { %6197 = vmatprep.subr.bf16.mxu0 %v6196_v53 }
 0x2e7   :  { %6199 = vmatpush3.bf16.msra.mxu0 %v6196_v53 }
 0x2e8   :  { %6201 = vmatprep.subr.bf16.mxu0 %v6200_v56 }
 0x2eb   :  { %6203 = vmatpush3.bf16.msra.mxu0 %v6200_v56 }
 0x2ec   :  { %6205 = vmatprep.subr.bf16.mxu0 %v6204_v59 }
 0x2ef   :  { %6207 = vmatpush3.bf16.msra.mxu0 %v6204_v59 }
 0x2f0   :  { %6209 = vmatprep.subr.bf16.mxu0 %v6208_v62 }
 0x2f3   :  { %6211 = vmatpush3.bf16.msra.mxu0 %v6208_v62  ;;  %v1161_v62 = vld [vmem:[%s9151_s12 + $0x8] sm:$0xff] }
 0x2f4   :  { %v6276_v63 = vpack.c.bf16 %v1161_v62, %v1160_v61  ;;  %v4788_v61 = vld [vmem:[%s9151_s12 + $0xf8] sm:$0xff] }
 0x344   :  { %v6879_v31 = vpop.permute.xlu0 %6878 }
 0x345   :  { %v6881_v33 = vunpack.i.h.bf16 %v6879_v31  ;;  %v6880_v34 = vunpack.i.l.bf16 %v6879_v31 }
 0x347   :  { %v682_v40 = vsel %vm107_vm0, %v7262_v6, %v6880_v34  ;;  %v683_v41 = vsel %vm107_vm0, %v7269_v8, %v6881_v33  ;;  %v707_v6 = vld [vmem:[%s9147_s8 + $0x78] sm:$0xff]  ;;  %v7455_v8 = vld [vmem:[%s9148_s9] sm:$0xf] }
 0x348   :  { %v7447_v47 = vpack.c.bf16 %v707_v6, %v706_v46  ;;  %5431 = vmatprep.subr.msk.mxu0 %vm905_vm4, %v7455_v8  ;;  %v1167_v33 = vld [vmem:[%s9151_s12 + $0x38] sm:$0xff]  ;;  %v4783_v46 = vld [vmem:[%s9151_s12 + $0xd0] sm:$0xff] }
 0x34a   :  { %9210 = vst [vmem:[#allocation17_spill] sm:$0xff] %v7447_v47 }
 0x3a9   :  { %v5353_v35 = vpop.f32.mrb[6].mxu0 }
 0x3aa   :  { %v574_v36 = vpop.f32.mrb[7].mxu0 }
 0x3ab   :  { %v6882_v37 = vpack.i.bf16 %v5353_v35, %v574_v36  ;;  %v6176_v38 = vpack.c.bf16 %v5353_v35, %v574_v36 }
 0x3ad   :  { %6883 = vrot.lane.b32.xlu0 %v6882_v37, %s7123_s26  ;;  %6177 = vmatprep.subr.bf16.mxu1 %v6176_v38 }
 0x3ae   :  { %6179 = vmatpush3.bf16.msra.mxu1 %v6176_v38 }
 0x3af   :  { %6213 = vmatprep.subr.bf16.mxu1 %v7371_v2 }
 0x3b1   :  { %5359 = vmatmul.mubr.msk.f32.vlgmr.msra.gmra.mrb[4].mxu1 %vm189_vm1, %v95_v24  ;;  %v7428_v24 = vpack.c.bf16 %v705_v23, %v704_v22  ;;  %v1164_v22 = vld [vmem:[%s9151_s12 + $0x20] sm:$0xff]  ;;  %v1165_v23 = vld [vmem:[%s9151_s12 + $0x28] sm:$0xff] }
 0x3b2   :  { %6215 = vmatpush3.bf16.msra.mxu1 %v7371_v2  ;;  %v6284_v31 = vpack.c.bf16 %v1165_v23, %v1164_v22 }
 0x3b3   :  { %6217 = vmatprep.subr.bf16.mxu1 %v7376_v4  ;;  %9209 = vst [vmem:[#allocation16_spill] sm:$0xff] %v7428_v24 }
 0x3b6   :  { %6219 = vmatpush3.bf16.msra.mxu1 %v7376_v4 }
 0x3b7   :  { %6221 = vmatprep.subr.bf16.mxu1 %v7387_v10 }
 0x3ba   :  { %6223 = vmatpush3.bf16.msra.mxu1 %v7387_v10 }
 0x3bb   :  { %6225 = vmatprep.subr.bf16.mxu1 %v7398_v15 }
 0x3be   :  { %6227 = vmatpush3.bf16.msra.mxu1 %v7398_v15 }
 0x3bf   :  { %6229 = vmatprep.subr.bf16.mxu1 %v7408_v18 }
 0x3c2   :  { %6231 = vmatpush3.bf16.msra.mxu1 %v7408_v18 }
 0x3c3   :  { %6233 = vmatprep.subr.bf16.mxu1 %v7418_v21 }
 0x3c6   :  { %6235 = vmatpush3.bf16.msra.mxu1 %v7418_v21 }
 0x3c7   :  { %6237 = vmatprep.subr.bf16.mxu1 %v7428_v24 }
 0x3ca   :  { %6239 = vmatpush3.bf16.msra.mxu1 %v7428_v24 }
 0x3cb   :  { %6241 = vmatprep.subr.bf16.mxu1 %v7447_v47 }
 0x3ce   :  { %6243 = vmatpush3.bf16.msra.mxu1 %v7447_v47 }
 0x3cf   :  { %6245 = vmatprep.subr.bf16.mxu1 %v7371_v2 }
 0x41f   :  { %v6884_v32 = vpop.permute.xlu0 %6883 }
 0x420   :  { %v6886_v35 = vunpack.i.h.bf16 %v6884_v32  ;;  %v6885_v36 = vunpack.i.l.bf16 %v6884_v32  ;;  %v1166_v32 = vld [vmem:[%s9151_s12 + $0x30] sm:$0xff] }
 0x421   :  { %v6288_v34 = vpack.c.bf16 %v1167_v33, %v1166_v32 }
 0x422   :  { %v685_v42 = vsel %vm684_vm2, %v682_v40, %v6885_v36  ;;  %v686_v43 = vsel %vm684_vm2, %v683_v41, %v6886_v35  ;;  %v4779_v35 = vld [vmem:[%s9151_s12 + $0xb0] sm:$0xff]  ;;  %v4780_v36 = vld [vmem:[%s9151_s12 + $0xb8] sm:$0xff]  ;;  %v4781_v41 = vld [vmem:[%s9151_s12 + $0xc0] sm:$0xff] }
 0x484   :  { %v5360_v9 = vpop.f32.mrb[4].mxu1 }
 0x485   :  { %v649_v11 = vpop.f32.mrb[5].mxu1 }
 0x486   :  { %v6887_v14 = vpack.i.bf16 %v5360_v9, %v649_v11  ;;  %v6312_v9 = vpack.c.bf16 %v4776_v7, %v4775_v5  ;;  %v4777_v11 = vld [vmem:[%s9151_s12 + $0xa0] sm:$0xff]  ;;  %v1148_v7 = vlaneseq }
 0x487   :  { %v6316_v13 = vpack.c.bf16 %v4778_v12, %v4777_v11 }
 0x488   :  { %6888 = vrot.lane.b32.xlu1 %v6887_v14, %s7124_s2  ;;  %v1162_v14 = vld [vmem:[%s9151_s12 + $0x10] sm:$0xff] }
 0x489   :  { %v6280_v20 = vpack.c.bf16 %v1163_v16, %v1162_v14  ;;  %v690_v16 = vld [vmem:[%s9149_s10] sm:$0x7] }
 0x4fa   :  { %v6889_v37 = vpop.permute.xlu1 %6888 }
 0x4fb   :  { %v6891_v38 = vunpack.i.h.bf16 %v6889_v37  ;;  %v6890_v39 = vunpack.i.l.bf16 %v6889_v37  ;;  %v6320_v37 = vpack.c.bf16 %v4780_v36, %v4779_v35  ;;  %v4791_v35 = vld [vmem:[%s9151_s12 + $0x110] sm:$0xff]  ;;  %v4792_v36 = vld [vmem:[%s9151_s12 + $0x118] sm:$0xff] }
 0x4fd   :  { %v688_v44 = vsel %vm687_vm3, %v685_v42, %v6890_v39  ;;  %v689_v45 = vsel %vm687_vm3, %v686_v43, %v6891_v38  ;;  %v1168_v38 = vld [vmem:[%s9151_s12 + $0x40] sm:$0xff]  ;;  %v1169_v39 = vld [vmem:[%s9151_s12 + $0x48] sm:$0xff] }
 0x4fe   :  { %5393 = vmatprep.mubr.f32.mxu0 %v688_v44  ;;  %v6292_v40 = vpack.c.bf16 %v1169_v39, %v1168_v38  ;;  %v4782_v42 = vld [vmem:[%s9151_s12 + $0xc8] sm:$0xff]  ;;  %v1170_v44 = vld [vmem:[%s9151_s12 + $0x50] sm:$0xff]  ;;  %v6344_v39 = vpack.c.bf16 %v4792_v36, %v4791_v35 }
 0x4ff   :  { %5394 = vmatmul.mubr.f32.vlgmr.msra.gmra.mrb[8].mxu0 %v689_v45  ;;  %v6324_v43 = vpack.c.bf16 %v4782_v42, %v4781_v41  ;;  %v1171_v45 = vld [vmem:[%s9151_s12 + $0x58] sm:$0xff]  ;;  %v4795_v41 = vld [vmem:[%s9151_s12 + $0x130] sm:$0xff] }
 0x500   :  { %5432 = vmatpush3.msk.msra.mxu0 %vm905_vm4, %v7455_v8  ;;  %v6296_v6 = vpack.c.bf16 %v1171_v45, %v1170_v44  ;;  %v4796_v42 = vld [vmem:[%s9151_s12 + $0x138] sm:$0xff]  ;;  %v4797_v44 = vld [vmem:[%s9151_s12 + $0x140] sm:$0xff]  ;;  %v4798_v45 = vld [vmem:[%s9151_s12 + $0x148] sm:$0xff] }
 0x501   :  { %5471 = vmatprep.subr.msk.mxu0 %vm905_vm4, %v7455_v8 }
 0x5d2   :  { %v5395_v49 = vpop.f32.mrb[8].mxu0 }
 0x5d3   :  { %v814_v50 = vpop.f32.mrb[9].mxu0  ;;  %v820_v52 = vadd.f32 %v5395_v49, %v4766_v48  ;;  %v1172_v49 = vld [vmem:[%s9151_s12 + $0x60] sm:$0xff] }
 0x5d4   :  { %v815_v51 = vadd.f32 %v4766_v48, %v814_v50  ;;  %v4784_v48 = vld [vmem:[%s9151_s12 + $0xd8] sm:$0xff]  ;;  %v1173_v50 = vld [vmem:[%s9151_s12 + $0x68] sm:$0xff] }
 0x5d6   :  { %5428 = vmatprep.mubr.f32.mxu1 %v815_v51 }
 0x5d7   :  { %5429 = vmatmul.mubr.f32.vlgmr.msra.gmra.mrb[6].mxu1 %v820_v52 }
 0x5d8   :  { %6247 = vmatpush3.bf16.msra.mxu1 %v7371_v2 }
 0x5d9   :  { %6249 = vmatprep.subr.bf16.mxu1 %v7376_v4 }
 0x5dc   :  { %6251 = vmatpush3.bf16.msra.mxu1 %v7376_v4 }
 0x5dd   :  { %6253 = vmatprep.subr.bf16.mxu1 %v7387_v10 }
 0x5e0   :  { %6255 = vmatpush3.bf16.msra.mxu1 %v7387_v10 }
 0x5e1   :  { %6257 = vmatprep.subr.bf16.mxu1 %v7398_v15 }
 0x5e4   :  { %6259 = vmatpush3.bf16.msra.mxu1 %v7398_v15 }
 0x5e5   :  { %6261 = vmatprep.subr.bf16.mxu1 %v7408_v18 }
 0x5e8   :  { %6263 = vmatpush3.bf16.msra.mxu1 %v7408_v18 }
 0x5e9   :  { %6265 = vmatprep.subr.bf16.mxu1 %v7418_v21 }
 0x5ec   :  { %6267 = vmatpush3.bf16.msra.mxu1 %v7418_v21 }
 0x5ed   :  { %6269 = vmatprep.subr.bf16.mxu1 %v7428_v24 }
 0x5f0   :  { %6271 = vmatpush3.bf16.msra.mxu1 %v7428_v24 }
 0x5f1   :  { %6273 = vmatprep.subr.bf16.mxu1 %v7447_v47 }
 0x5f4   :  { %6275 = vmatpush3.bf16.msra.mxu1 %v7447_v47 }
 0x5f5   :  { %6309 = vmatprep.subr.bf16.mxu1 %v6308_v3 }
 0x6aa   :  { %v5430_v53 = vpop.f32.mrb[6].mxu1 }
 0x6ab   :  { %v889_v54 = vpop.f32.mrb[7].mxu1 }
 0x6ac   :  { %5433 = vmatprep.mubr.msk.f32.mxu0 %vm898_vm5, %v889_v54  ;;  %v6300_v54 = vpack.c.bf16 %v1173_v50, %v1172_v49  ;;  %v4801_v50 = vld [vmem:[%s9151_s12 + $0x160] sm:$0xff] }
 0x6ad   :  { %5434 = vmatmul.mubr.msk.f32.vlgmr.msra.gmra.mrb[10].mxu0 %vm898_vm5, %v5430_v53  ;;  %v4786_v53 = vld [vmem:[%s9151_s12 + $0xe8] sm:$0xff] }
 0x6ae   :  { %5472 = vmatpush3.msk.msra.mxu0 %vm905_vm4, %v7455_v8 }
 0x6af   :  { %6277 = vmatprep.subr.bf16.mxu0 %v6276_v63 }
 0x780   :  { %v5435_v55 = vpop.f32.mrb[10].mxu0 }
 0x781   :  { %v7485_v56 = vsub.f32 %v820_v52, %v5435_v55  ;;  %v975_v57 = vpop.f32.mrb[11].mxu0  ;;  %v4785_v52 = vld [vmem:[%s9151_s12 + $0xe0] sm:$0xff] }
 0x782   :  { %v7487_v58 = vsub.f32 %v815_v51, %v975_v57  ;;  %v6328_v51 = vpack.c.bf16 %v4784_v48, %v4783_v46  ;;  %v6332_v55 = vpack.c.bf16 %v4786_v53, %v4785_v52  ;;  %v1174_v57 = vld [vmem:[%s9151_s12 + $0x70] sm:$0xff]  ;;  %v6356_v46 = vpack.c.bf16 %v4798_v45, %v4797_v44  ;;  %v4800_v48 = vld [vmem:[%s9151_s12 + $0x158] sm:$0xff] }
 0x783   :  { %v987_v60 = vmul.f32 %v7485_v56, %v7485_v56  ;;  %v4803_v53 = vld [vmem:[%s9151_s12 + $0x170] sm:$0xff] }
 0x784   :  { %v986_v59 = vmul.f32 %v7487_v58, %v7487_v58 }
 0x786   :  { %5468 = vmatprep.mubr.f32.mxu1 %v986_v59  ;;  %v1175_v59 = vld [vmem:[%s9151_s12 + $0x78] sm:$0xff] }
 0x787   :  { %5469 = vmatmul.mubr.f32.vlgmr.msra.gmra.mrb[8].mxu1 %v987_v60  ;;  %v4787_v60 = vld [vmem:[%s9151_s12 + $0xf0] sm:$0xff]  ;;  %v6304_v62 = vpack.c.bf16 %v1175_v59, %v1174_v57  ;;  %v709_v57 = vld [vmem:[%s9152_s13] sm:$0xff]  ;;  %v710_v59 = vld [vmem:[%s9152_s13 + $0x8] sm:$0xff] }
 0x788   :  { %6311 = vmatpush3.bf16.msra.mxu1 %v6308_v3  ;;  %v6340_v3 = vpack.c.bf16 %v4790_v1, %v4789_v0  ;;  %v713_v0 = vld [vmem:[%s9152_s13 + $0x20] sm:$0xff]  ;;  %v714_v1 = vld [vmem:[%s9152_s13 + $0x28] sm:$0xff] }
 0x789   :  { %6313 = vmatprep.subr.bf16.mxu1 %v6312_v9 }
 0x78c   :  { %6315 = vmatpush3.bf16.msra.mxu1 %v6312_v9 }
 0x78d   :  { %6317 = vmatprep.subr.bf16.mxu1 %v6316_v13 }
 0x790   :  { %6319 = vmatpush3.bf16.msra.mxu1 %v6316_v13  ;;  %v7597_v13 = vshrl.u32 %v1148_v7, 7  ;;  %v716_v7 = vld [vmem:[%s9152_s13 + $0x38] sm:$0xff] }
 0x791   :  { %6321 = vmatprep.subr.bf16.mxu1 %v6320_v37 }
 0x792   :  { %9211 = vst [vmem:[#allocation18_spill] sm:$0xff] %v7597_v13  ;;  %v1150_v14 = vsub.s32 0, %v7597_v13 }
 0x794   :  { %6323 = vmatpush3.bf16.msra.mxu1 %v6320_v37 }
 0x795   :  { %6325 = vmatprep.subr.bf16.mxu1 %v6324_v43 }
 0x798   :  { %6327 = vmatpush3.bf16.msra.mxu1 %v6324_v43  ;;  %v6352_v43 = vpack.c.bf16 %v4796_v42, %v4795_v41 }
 0x799   :  { %6329 = vmatprep.subr.bf16.mxu1 %v6328_v51 }
 0x79c   :  { %6331 = vmatpush3.bf16.msra.mxu1 %v6328_v51  ;;  %v4802_v51 = vld [vmem:[%s9151_s12 + $0x168] sm:$0xff] }
 0x79d   :  { %6333 = vmatprep.subr.bf16.mxu1 %v6332_v55  ;;  %v6364_v52 = vpack.c.bf16 %v4802_v51, %v4801_v50 }
 0x7a0   :  { %6335 = vmatpush3.bf16.msra.mxu1 %v6332_v55 }
 0x85a   :  { %v5470_v17 = vpop.f32.mrb[8].mxu1 }
 0x85b   :  { %v1054_v19 = vpop.f32.mrb[9].mxu1 }
 0x85c   :  { %5473 = vmatprep.mubr.msk.f32.mxu0 %vm898_vm5, %v1054_v19  ;;  %v1151_v19 = vrot.slane %v690_v16, %v1150_v14  ;;  %v719_v16 = vld [vmem:[%s9152_s13 + $0x50] sm:$0xff] }
 0x85d   :  { %5474 = vmatmul.mubr.msk.f32.vlgmr.msra.gmra.mrb[12].mxu0 %vm898_vm5, %v5470_v17  ;;  %v691_v17 = vld [vmem:[%s9150_s11] sm:$0x7] }
 0x85e   :  { %6279 = vmatpush3.bf16.msra.mxu0 %v6276_v63  ;;  %v6336_v63 = vpack.c.bf16 %v4788_v61, %v4787_v60  ;;  %v1157_v32 = vrot.slane %v691_v17, %v1150_v14  ;;  %v711_v60 = vld [vmem:[%s9152_s13 + $0x10] sm:$0xff]  ;;  %v7669_v61 = vpack.c.bf16 %v710_v59, %v709_v57  ;;  %v720_v17 = vld [vmem:[%s9152_s13 + $0x58] sm:$0xff] }
 0x85f   :  { %6281 = vmatprep.subr.bf16.mxu0 %v6280_v20 }
 0x860   :  { %6337 = vmatprep.subr.bf16.mxu1 %v6336_v63  ;;  %9212 = vst [vmem:[#allocation19_spill] sm:$0xff] %v7669_v61 }
 0x861   :  { %6339 = vmatpush3.bf16.msra.mxu1 %v6336_v63 }
 0x862   :  { %6283 = vmatpush3.bf16.msra.mxu0 %v6280_v20  ;;  %6373 = vmatprep.subr.bf16.mxu1 %v7669_v61 }
 0x863   :  { %6285 = vmatprep.subr.bf16.mxu0 %v6284_v31 }
 0x866   :  { %6287 = vmatpush3.bf16.msra.mxu0 %v6284_v31 }
 0x867   :  { %6289 = vmatprep.subr.bf16.mxu0 %v6288_v34 }
 0x86a   :  { %6291 = vmatpush3.bf16.msra.mxu0 %v6288_v34 }
 0x86b   :  { %6293 = vmatprep.subr.bf16.mxu0 %v6292_v40 }
 0x86e   :  { %6295 = vmatpush3.bf16.msra.mxu0 %v6292_v40 }
 0x86f   :  { %6297 = vmatprep.subr.bf16.mxu0 %v6296_v6 }
 0x872   :  { %6299 = vmatpush3.bf16.msra.mxu0 %v6296_v6  ;;  %v4799_v6 = vld [vmem:[%s9151_s12 + $0x150] sm:$0xff] }
 0x873   :  { %6301 = vmatprep.subr.bf16.mxu0 %v6300_v54  ;;  %v6360_v49 = vpack.c.bf16 %v4800_v48, %v4799_v6 }
 0x876   :  { %6303 = vmatpush3.bf16.msra.mxu0 %v6300_v54  ;;  %v4804_v54 = vld [vmem:[%s9151_s12 + $0x178] sm:$0xff] }
 0x877   :  { %6305 = vmatprep.subr.bf16.mxu0 %v6304_v62  ;;  %v6368_v55 = vpack.c.bf16 %v4804_v54, %v4803_v53 }
 0x87a   :  { %6307 = vmatpush3.bf16.msra.mxu0 %v6304_v62  ;;  %v712_v62 = vld [vmem:[%s9152_s13 + $0x18] sm:$0xff] }
 0x87b   :  { %6341 = vmatprep.subr.bf16.mxu0 %v6340_v3  ;;  %v7674_v63 = vpack.c.bf16 %v712_v62, %v711_v60 }
 0x87d   :  { %9213 = vst [vmem:[#allocation20_spill] sm:$0xff] %v7674_v63 }
 0x930   :  { %v5475_v5 = vpop.f32.mrb[12].mxu0 }
 0x931   :  { %v1141_v9 = vadd.f32 1e-05, %v5475_v5  ;;  %v1135_v11 = vpop.f32.mrb[13].mxu0  ;;  %v715_v5 = vld [vmem:[%s9152_s13 + $0x30] sm:$0xff] }
 0x932   :  { %v1136_v12 = vadd.f32 1e-05, %v1135_v11  ;;  %v717_v11 = vld [vmem:[%s9152_s13 + $0x40] sm:$0xff] }
 0x933   :  { %6892 = vrsqrt.f32 %v1141_v9  ;;  %v7700_v9 = vpack.c.bf16 %v716_v7, %v715_v5 }
 0x934   :  { %6894 = vrsqrt.f32 %v1136_v12  ;;  %v718_v12 = vld [vmem:[%s9152_s13 + $0x48] sm:$0xff] }
 0x935   :  { %9215 = vst [vmem:[#allocation22_spill] sm:$0xff] %v7700_v9  ;;  %v7712_v14 = vpack.c.bf16 %v718_v12, %v717_v11 }
 0x937   :  { %9216 = vst [vmem:[#allocation23_spill] sm:$0xff] %v7712_v14 }
 0x93d   :  { %v6893_v20 = vpop.eup %6892 }
 0x93e   :  { %v6895_v22 = vpop.eup %6894  ;;  %v1147_v23 = vmul.f32 %v6893_v20, %v7485_v56  ;;  %v4793_v56 = vld [vmem:[%s9151_s12 + $0x120] sm:$0xff] }
 0x93f   :  { %v1146_v31 = vmul.f32 %v6895_v22, %v7487_v58  ;;  %v4794_v58 = vld [vmem:[%s9151_s12 + $0x128] sm:$0xff]  ;;  %v721_v20 = vld [vmem:[%s9152_s13 + $0x60] sm:$0xff] }
 0x940   :  { %v1153_v33 = vmul.f32 %v1151_v19, %v1147_v23  ;;  %v6348_v40 = vpack.c.bf16 %v4794_v58, %v4793_v56  ;;  %v722_v22 = vld [vmem:[%s9152_s13 + $0x68] sm:$0xff] }
 0x941   :  { %v1152_v34 = vmul.f32 %v1151_v19, %v1146_v31  ;;  %v7726_v19 = vpack.c.bf16 %v720_v17, %v719_v16  ;;  %v7738_v23 = vpack.c.bf16 %v722_v22, %v721_v20  ;;  %v723_v31 = vld [vmem:[%s9152_s13 + $0x70] sm:$0xff] }
 0x942   :  { %v7616_v38 = vadd.f32 %v1157_v32, %v1153_v33 }
 0x943   :  { %v7614_v37 = vadd.f32 %v1157_v32, %v1152_v34  ;;  %9217 = vst [vmem:[#allocation24_spill] sm:$0xff] %v7726_v19  ;;  %9218 = vst [vmem:[#allocation25_spill] sm:$0xff] %v7738_v23  ;;  %v724_v32 = vld [vmem:[%s9152_s13 + $0x78] sm:$0xff] }
 0x944   :  { %v7750_v33 = vpack.c.bf16 %v724_v32, %v723_v31 }
 0x945   :  { %5508 = vmatprep.mubr.f32.mxu0 %v7614_v37  ;;  %5543 = vmatprep.mubr.f32.mxu1 %v7614_v37 }
 0x946   :  { %5509 = vmatmul.mubr.f32.vlgmr.msra.gmra.mrb[14].mxu0 %v7616_v38  ;;  %5544 = vmatmul.mubr.f32.vlgmr.msra.gmra.mrb[10].mxu1 %v7616_v38  ;;  %9219 = vst [vmem:[#allocation26_spill] sm:$0xff] %v7750_v33 }
 0x947   :  { %6343 = vmatpush3.bf16.msra.mxu0 %v6340_v3  ;;  %5578 = vmatprep.mubr.f32.mxu0 %v7614_v37  ;;  %v7688_v3 = vpack.c.bf16 %v714_v1, %v713_v0 }
 0x948   :  { %6345 = vmatprep.subr.bf16.mxu0 %v6344_v39  ;;  %6375 = vmatpush3.bf16.msra.mxu1 %v7669_v61 }
 0x949   :  { %6377 = vmatprep.subr.bf16.mxu1 %v7674_v63  ;;  %9214 = vst [vmem:[#allocation21_spill] sm:$0xff] %v7688_v3 }
 0x94b   :  { %6347 = vmatpush3.bf16.msra.mxu0 %v6344_v39 }
 0x94c   :  { %6349 = vmatprep.subr.bf16.mxu0 %v6348_v40  ;;  %6379 = vmatpush3.bf16.msra.mxu1 %v7674_v63 }
 0x94d   :  { %6381 = vmatprep.subr.bf16.mxu1 %v7688_v3 }
 0x94f   :  { %6351 = vmatpush3.bf16.msra.mxu0 %v6348_v40 }
 0x950   :  { %6353 = vmatprep.subr.bf16.mxu0 %v6352_v43  ;;  %6383 = vmatpush3.bf16.msra.mxu1 %v7688_v3 }
 0x951   :  { %6385 = vmatprep.subr.bf16.mxu1 %v7700_v9 }
 0x953   :  { %6355 = vmatpush3.bf16.msra.mxu0 %v6352_v43 }
 0x954   :  { %6357 = vmatprep.subr.bf16.mxu0 %v6356_v46  ;;  %6387 = vmatpush3.bf16.msra.mxu1 %v7700_v9 }
 0x955   :  { %6389 = vmatprep.subr.bf16.mxu1 %v7712_v14 }
 0x957   :  { %6359 = vmatpush3.bf16.msra.mxu0 %v6356_v46 }
 0x958   :  { %6361 = vmatprep.subr.bf16.mxu0 %v6360_v49  ;;  %6391 = vmatpush3.bf16.msra.mxu1 %v7712_v14 }
 0x959   :  { %6393 = vmatprep.subr.bf16.mxu1 %v7726_v19 }
 0x95b   :  { %6363 = vmatpush3.bf16.msra.mxu0 %v6360_v49 }
 0x95c   :  { %6365 = vmatprep.subr.bf16.mxu0 %v6364_v52  ;;  %6395 = vmatpush3.bf16.msra.mxu1 %v7726_v19 }
 0x95d   :  { %6397 = vmatprep.subr.bf16.mxu1 %v7738_v23 }
 0x95f   :  { %6367 = vmatpush3.bf16.msra.mxu0 %v6364_v52 }
 0x960   :  { %6369 = vmatprep.subr.bf16.mxu0 %v6368_v55  ;;  %6399 = vmatpush3.bf16.msra.mxu1 %v7738_v23 }
 0x961   :  { %6401 = vmatprep.subr.bf16.mxu1 %v7750_v33 }
 0x963   :  { %6371 = vmatpush3.bf16.msra.mxu0 %v6368_v55 }
 0x964   :  { %6405 = vmatprep.subr.bf16.mxu0 %v7669_v61  ;;  %6403 = vmatpush3.bf16.msra.mxu1 %v7750_v33 }
 0x965   :  { %6437 = vmatprep.subr.bf16.mxu1 %v7669_v61 }
 0x966   :  { %5579 = vmatmul.mubr.f32.vlgmr.msra.gmra.mrb[16].mxu0 %v7616_v38 }
 0x967   :  { %6407 = vmatpush3.bf16.msra.mxu0 %v7669_v61 }
 0x968   :  { %6409 = vmatprep.subr.bf16.mxu0 %v7674_v63 }
 0x96b   :  { %6411 = vmatpush3.bf16.msra.mxu0 %v7674_v63 }
 0x96c   :  { %6413 = vmatprep.subr.bf16.mxu0 %v7688_v3 }
 0x96f   :  { %6415 = vmatpush3.bf16.msra.mxu0 %v7688_v3 }
 0x970   :  { %6417 = vmatprep.subr.bf16.mxu0 %v7700_v9 }
 0x973   :  { %6419 = vmatpush3.bf16.msra.mxu0 %v7700_v9 }
 0x974   :  { %6421 = vmatprep.subr.bf16.mxu0 %v7712_v14 }
 0x977   :  { %6423 = vmatpush3.bf16.msra.mxu0 %v7712_v14 }
 0x978   :  { %6425 = vmatprep.subr.bf16.mxu0 %v7726_v19 }
 0x97b   :  { %6427 = vmatpush3.bf16.msra.mxu0 %v7726_v19 }
 0x97c   :  { %6429 = vmatprep.subr.bf16.mxu0 %v7738_v23 }
 0x97f   :  { %6431 = vmatpush3.bf16.msra.mxu0 %v7738_v23 }
 0x980   :  { %6433 = vmatprep.subr.bf16.mxu0 %v7750_v33 }
 0x983   :  { %6435 = vmatpush3.bf16.msra.mxu0 %v7750_v33 }
 0x984   :  { %6469 = vmatprep.subr.bf16.mxu0 %v7669_v61 }
 0xa19   :  { %v5510_v34 = vpop.f32.mrb[14].mxu0  ;;  %v5545_v35 = vpop.f32.mrb[10].mxu1 }
 0xa1a   :  { %v1334_v36 = vpop.f32.mrb[11].mxu1  ;;  %1439 = vrot.lane.b32.xlu0 %v5510_v34, %s7122_s3  ;;  %v1242_v39 = vpop.f32.mrb[15].mxu0 }
 0xa1b   :  { %1437 = vrot.lane.b32.xlu1 %v1242_v39, %s7122_s3 }
 0xa1e   :  { %1449 = vrot.lane.b32.xlu0 %v1242_v39, %s7124_s2 }
 0xa1f   :  { %1443 = vrot.lane.b32.xlu1 %v1242_v39, %s7123_s26 }
 0xa22   :  { %1451 = vrot.lane.b32.xlu0 %v5510_v34, %s7124_s2 }
 0xa23   :  { %1445 = vrot.lane.b32.xlu1 %v5510_v34, %s7123_s26 }
 0xa39   :  { %v7764_v56 = vpop.f32.mrb[16].mxu0 }
 0xa3a   :  { %v7766_v58 = vpop.f32.mrb[17].mxu0 }
 0xa8c   :  { %v1440_v40 = vpop.permute.xlu0 %1439 }
 0xa8d   :  { %v1438_v41 = vpop.permute.xlu1 %1437  ;;  %v1456_v62 = vsel %vm107_vm0, %v5510_v34, %v1440_v40 }
 0xa8e   :  { %v1455_v43 = vsel %vm107_vm0, %v1242_v39, %v1438_v41 }
 0xa90   :  { %v1450_v42 = vpop.permute.xlu0 %1449 }
 0xa91   :  { %v1706_v44 = vsel %vm107_vm0, %v1450_v42, %v1242_v39  ;;  %v1444_v45 = vpop.permute.xlu1 %1443 }
 0xa92   :  { %v1957_v46 = vsel %vm107_vm0, %v1444_v45, %v1450_v42  ;;  %v2208_v6 = vsel %vm107_vm0, %v1438_v41, %v1444_v45  ;;  %v1457_v48 = vsel %vm684_vm2, %v1455_v43, %v1444_v45  ;;  %v1708_v49 = vsel %vm684_vm2, %v1706_v44, %v1438_v41 }
 0xa93   :  { %v1459_v50 = vsel %vm687_vm3, %v1457_v48, %v1450_v42  ;;  %v1710_v51 = vsel %vm687_vm3, %v1708_v49, %v1444_v45  ;;  %v1959_v52 = vsel %vm684_vm2, %v1957_v46, %v1242_v39  ;;  %v2210_v53 = vsel %vm684_vm2, %v2208_v6, %v1450_v42 }
 0xa94   :  { %v1452_v54 = vpop.permute.xlu0 %1451  ;;  %v1461_v55 = vmul.f32 %v1459_v50, %v1334_v36  ;;  %v1712_v57 = vmul.f32 %v1710_v51, %v1334_v36  ;;  %v1961_v59 = vsel %vm687_vm3, %v1959_v52, %v1438_v41  ;;  %v2212_v60 = vsel %vm687_vm3, %v2210_v53, %v1242_v39 }
 0xa95   :  { %v1707_v0 = vsel %vm107_vm0, %v1452_v54, %v5510_v34  ;;  %v1446_v1 = vpop.permute.xlu1 %1445  ;;  %v1963_v5 = vmul.f32 %v1961_v59, %v1334_v36  ;;  %v2214_v7 = vmul.f32 %v2212_v60, %v1334_v36 }
 0xa96   :  { %v1458_v11 = vsel %vm684_vm2, %v1456_v62, %v1446_v1  ;;  %v1958_v12 = vsel %vm107_vm0, %v1446_v1, %v1452_v54  ;;  %v2209_v16 = vsel %vm107_vm0, %v1440_v40, %v1446_v1  ;;  %5613 = vmatprep.mubr.f32.mxu1 %v1461_v55  ;;  %5648 = vmatprep.mubr.f32.mxu0 %v1712_v57 }
 0xa97   :  { %v1460_v17 = vsel %vm687_vm3, %v1458_v11, %v1452_v54  ;;  %v1709_v20 = vsel %vm684_vm2, %v1707_v0, %v1440_v40  ;;  %v1960_v22 = vsel %vm684_vm2, %v1958_v12, %v5510_v34  ;;  %v2211_v31 = vsel %vm684_vm2, %v2209_v16, %v1452_v54 }
 0xa98   :  { %v1462_v32 = vmul.f32 %v5545_v35, %v1460_v17  ;;  %v1711_v39 = vsel %vm687_vm3, %v1709_v20, %v1446_v1  ;;  %v1962_v36 = vsel %vm687_vm3, %v1960_v22, %v1440_v40  ;;  %v2213_v41 = vsel %vm687_vm3, %v2211_v31, %v5510_v34 }
 0xa99   :  { %v1713_v42 = vmul.f32 %v5545_v35, %v1711_v39  ;;  %v1964_v43 = vmul.f32 %v5545_v35, %v1962_v36  ;;  %v2215_v44 = vmul.f32 %v5545_v35, %v2213_v41 }
 0xa9a   :  { %5614 = vmatmul.mubr.f32.vlgmr.msra.gmra.mrb[12].mxu1 %v1462_v32 }
 0xa9b   :  { %5649 = vmatmul.mubr.f32.vlgmr.msra.gmra.mrb[18].mxu0 %v1713_v42  ;;  %6439 = vmatpush3.bf16.msra.mxu1 %v7669_v61 }
 0xa9c   :  { %6471 = vmatpush3.bf16.msra.mxu0 %v7669_v61  ;;  %5683 = vmatprep.mubr.f32.mxu1 %v1963_v5 }
 0xa9d   :  { %5718 = vmatprep.mubr.f32.mxu0 %v2214_v7  ;;  %6441 = vmatprep.subr.bf16.mxu1 %v7674_v63 }
 0xa9e   :  { %6473 = vmatprep.subr.bf16.mxu0 %v7674_v63 }
 0xa9f   :  { %6443 = vmatpush3.bf16.msra.mxu1 %v7674_v63 }
 0xaa0   :  { %6475 = vmatpush3.bf16.msra.mxu0 %v7674_v63  ;;  %6445 = vmatprep.subr.bf16.mxu1 %v7688_v3 }
 0xaa1   :  { %6477 = vmatprep.subr.bf16.mxu0 %v7688_v3 }
 0xaa3   :  { %6447 = vmatpush3.bf16.msra.mxu1 %v7688_v3 }
 0xaa4   :  { %6479 = vmatpush3.bf16.msra.mxu0 %v7688_v3  ;;  %6449 = vmatprep.subr.bf16.mxu1 %v7700_v9 }
 0xaa5   :  { %6481 = vmatprep.subr.bf16.mxu0 %v7700_v9 }
 0xaa7   :  { %6451 = vmatpush3.bf16.msra.mxu1 %v7700_v9 }
 0xaa8   :  { %6483 = vmatpush3.bf16.msra.mxu0 %v7700_v9  ;;  %6453 = vmatprep.subr.bf16.mxu1 %v7712_v14 }
 0xaa9   :  { %6485 = vmatprep.subr.bf16.mxu0 %v7712_v14 }
 0xaab   :  { %6455 = vmatpush3.bf16.msra.mxu1 %v7712_v14 }
 0xaac   :  { %6487 = vmatpush3.bf16.msra.mxu0 %v7712_v14  ;;  %6457 = vmatprep.subr.bf16.mxu1 %v7726_v19 }
 0xaad   :  { %6489 = vmatprep.subr.bf16.mxu0 %v7726_v19 }
 0xaaf   :  { %6459 = vmatpush3.bf16.msra.mxu1 %v7726_v19 }
 0xab0   :  { %6491 = vmatpush3.bf16.msra.mxu0 %v7726_v19  ;;  %6461 = vmatprep.subr.bf16.mxu1 %v7738_v23 }
 0xab1   :  { %6493 = vmatprep.subr.bf16.mxu0 %v7738_v23 }
 0xab3   :  { %6463 = vmatpush3.bf16.msra.mxu1 %v7738_v23 }
 0xab4   :  { %6495 = vmatpush3.bf16.msra.mxu0 %v7738_v23  ;;  %6465 = vmatprep.subr.bf16.mxu1 %v7750_v33 }
 0xab5   :  { %6497 = vmatprep.subr.bf16.mxu0 %v7750_v33 }
 0xab7   :  { %6467 = vmatpush3.bf16.msra.mxu1 %v7750_v33 }
 0xab8   :  { %6499 = vmatpush3.bf16.msra.mxu0 %v7750_v33  ;;  %6501 = vmatprep.subr.bf16.mxu1 %v7371_v2 }
 0xab9   :  { %5756 = vmatprep.subr.msk.mxu0 %vm905_vm4, %v7455_v8 }
 0xaba   :  { %5684 = vmatmul.mubr.f32.vlgmr.msra.gmra.mrb[14].mxu1 %v1964_v43 }
 0xabb   :  { %5719 = vmatmul.mubr.f32.vlgmr.msra.gmra.mrb[20].mxu0 %v2215_v44  ;;  %6503 = vmatpush3.bf16.msra.mxu1 %v7371_v2 }
 0xabc   :  { %6505 = vmatprep.subr.bf16.mxu1 %v7376_v4  ;;  %5757 = vmatpush3.msk.msra.mxu0 %vm905_vm4, %v7455_v8 }
 0xabd   :  { %6533 = vmatprep.subr.bf16.mxu0 %v7371_v2 }
 0xabf   :  { %6507 = vmatpush3.bf16.msra.mxu1 %v7376_v4 }
 0xac0   :  { %6509 = vmatprep.subr.bf16.mxu1 %v7387_v10 }
 0xac3   :  { %6511 = vmatpush3.bf16.msra.mxu1 %v7387_v10 }
 0xac4   :  { %6513 = vmatprep.subr.bf16.mxu1 %v7398_v15 }
 0xac7   :  { %6515 = vmatpush3.bf16.msra.mxu1 %v7398_v15 }
 0xac8   :  { %6517 = vmatprep.subr.bf16.mxu1 %v7408_v18 }
 0xacb   :  { %6519 = vmatpush3.bf16.msra.mxu1 %v7408_v18 }
 0xacc   :  { %6521 = vmatprep.subr.bf16.mxu1 %v7418_v21 }
 0xacf   :  { %6523 = vmatpush3.bf16.msra.mxu1 %v7418_v21 }
 0xad0   :  { %6525 = vmatprep.subr.bf16.mxu1 %v7428_v24 }
 0xad3   :  { %6527 = vmatpush3.bf16.msra.mxu1 %v7428_v24 }
 0xad4   :  { %6529 = vmatprep.subr.bf16.mxu1 %v7447_v47 }
 0xad7   :  { %6531 = vmatpush3.bf16.msra.mxu1 %v7447_v47 }
 0xad8   :  { %5796 = vmatprep.subr.msk.mxu1 %vm905_vm4, %v7455_v8 }
 0xb6d   :  { %v7845_v34 = vpop.f32.mrb[12].mxu1 }
 0xb6e   :  { %v7847_v35 = vpop.f32.mrb[18].mxu0  ;;  %v7849_v40 = vpop.f32.mrb[13].mxu1 }
 0xb6f   :  { %1801 = vrot.lane.b32.xlu1 %v7847_v35, %s7123_s26  ;;  %1793 = vrot.lane.b32.xlu0 %v7847_v35, %s7124_s2  ;;  %v7855_v45 = vpop.f32.mrb[19].mxu0 }
 0xb73   :  { %1809 = vrot.lane.b32.xlu1 %v7847_v35, %s7122_s3  ;;  %1799 = vrot.lane.b32.xlu0 %v7855_v45, %s7123_s26 }
 0xb77   :  { %1807 = vrot.lane.b32.xlu0 %v7855_v45, %s7122_s3  ;;  %1791 = vrot.lane.b32.xlu1 %v7855_v45, %s7124_s2 }
 0xb8d   :  { %v7865_v8 = vpop.f32.mrb[14].mxu1 }
 0xb8e   :  { %v7867_v46 = vpop.f32.mrb[20].mxu0  ;;  %v7869_v6 = vpop.f32.mrb[15].mxu1  ;;  %2060 = vrot.lane.b32.xlu0 %v7865_v8, %s7122_s3  ;;  %2044 = vrot.lane.b32.xlu1 %v7865_v8, %s7124_s2 }
 0xb8f   :  { %v7875_v48 = vpop.f32.mrb[21].mxu0 }
 0xb92   :  { %2295 = vrot.lane.b32.xlu1 %v7867_v46, %s7124_s2  ;;  %2293 = vrot.lane.b32.xlu0 %v7875_v48, %s7124_s2 }
 0xb96   :  { %2052 = vrot.lane.b32.xlu1 %v7865_v8, %s7123_s26  ;;  %2050 = vrot.lane.b32.xlu0 %v7869_v6, %s7123_s26 }
 0xb9a   :  { %2042 = vrot.lane.b32.xlu1 %v7869_v6, %s7124_s2  ;;  %2301 = vrot.lane.b32.xlu0 %v7875_v48, %s7123_s26 }
 0xb9e   :  { %2303 = vrot.lane.b32.xlu1 %v7867_v46, %s7123_s26  ;;  %2058 = vrot.lane.b32.xlu0 %v7869_v6, %s7122_s3 }
 0xba2   :  { %2309 = vrot.lane.b32.xlu1 %v7875_v48, %s7122_s3  ;;  %2311 = vrot.lane.b32.xlu0 %v7867_v46, %s7122_s3 }
 0xba6   :  { %1540 = vrot.lane.b32.xlu1 %v7849_v40, %s7124_s2  ;;  %1542 = vrot.lane.b32.xlu0 %v7845_v34, %s7124_s2 }
 0xbaa   :  { %1548 = vrot.lane.b32.xlu1 %v7849_v40, %s7123_s26  ;;  %1550 = vrot.lane.b32.xlu0 %v7845_v34, %s7123_s26 }
 0xbae   :  { %1556 = vrot.lane.b32.xlu1 %v7849_v40, %s7122_s3  ;;  %1558 = vrot.lane.b32.xlu0 %v7845_v34, %s7122_s3 }
 0xbe1   :  { %v1802_v49 = vpop.permute.xlu1 %1801  ;;  %v1794_v50 = vpop.permute.xlu0 %1793 }
 0xbe2   :  { %v1798_v51 = vmax.f32 %v7847_v35, %v1794_v50 }
 0xbe4   :  { %v1806_v52 = vmax.f32 %v1798_v51, %v1802_v49 }
 0xbe5   :  { %v1810_v53 = vpop.permute.xlu1 %1809  ;;  %v1800_v55 = vpop.permute.xlu0 %1799 }
 0xbe6   :  { %v7910_v54 = vmax.f32 %v1806_v52, %v1810_v53 }
 0xbe8   :  { %1837 = vrot.lane.b32.xlu1 %v7910_v54, %s7123_s26  ;;  %1825 = vrot.lane.b32.xlu0 %v7910_v54, %s7122_s3 }
 0xbe9   :  { %v1792_v59 = vpop.permute.xlu1 %1791  ;;  %v1808_v0 = vpop.permute.xlu0 %1807 }
 0xbea   :  { %v1797_v60 = vmax.f32 %v7855_v45, %v1792_v59 }
 0xbec   :  { %v1805_v62 = vmax.f32 %v1797_v60, %v1800_v55  ;;  %1849 = vrot.lane.b32.xlu1 %v7910_v54, %s7124_s2 }
 0xbee   :  { %v7921_v1 = vmax.f32 %v1805_v62, %v1808_v0 }
 0xbf0   :  { %1823 = vrot.lane.b32.xlu1 %v7921_v1, %s7122_s3  ;;  %1835 = vrot.lane.b32.xlu0 %v7921_v1, %s7123_s26  ;;  %v9221_v26 = vsub.f32 %v7855_v45, %v7921_v1 }
 0xbf2   :  { %v1817_v33 = vmul.f32 1.442695, %v9221_v26 }
 0xbf4   :  { %1847 = vrot.lane.b32.xlu0 %v7921_v1, %s7124_s2 }
 0xc00   :  { %v2061_v7 = vpop.permute.xlu0 %2060  ;;  %v2045_v11 = vpop.permute.xlu1 %2044 }
 0xc01   :  { %v2049_v17 = vmax.f32 %v7865_v8, %v2045_v11 }
 0xc04   :  { %v2296_v12 = vpop.permute.xlu1 %2295  ;;  %v2294_v16 = vpop.permute.xlu0 %2293 }
 0xc05   :  { %v2300_v50 = vmax.f32 %v7867_v46, %v2296_v12  ;;  %v2299_v51 = vmax.f32 %v7875_v48, %v2294_v16 }
 0xc08   :  { %v2053_v20 = vpop.permute.xlu1 %2052  ;;  %v2051_v22 = vpop.permute.xlu0 %2050 }
 0xc09   :  { %v2057_v31 = vmax.f32 %v2049_v17, %v2053_v20 }
 0xc0b   :  { %v7932_v32 = vmax.f32 %v2057_v31, %v2061_v7 }
 0xc0c   :  { %v2043_v39 = vpop.permute.xlu1 %2042  ;;  %v2302_v36 = vpop.permute.xlu0 %2301 }
 0xc0d   :  { %v2048_v42 = vmax.f32 %v7869_v6, %v2043_v39  ;;  %2076 = vrot.lane.b32.xlu1 %v7932_v32, %s7122_s3  ;;  %2100 = vrot.lane.b32.xlu0 %v7932_v32, %s7124_s2  ;;  %v2307_v53 = vmax.f32 %v2299_v51, %v2302_v36 }
 0xc0f   :  { %v2056_v43 = vmax.f32 %v2048_v42, %v2051_v22 }
 0xc10   :  { %v2304_v44 = vpop.permute.xlu1 %2303  ;;  %v2059_v49 = vpop.permute.xlu0 %2058 }
 0xc11   :  { %v7943_v52 = vmax.f32 %v2056_v43, %v2059_v49  ;;  %v2308_v55 = vmax.f32 %v2300_v50, %v2304_v44 }
 0xc14   :  { %v2310_v60 = vpop.permute.xlu1 %2309  ;;  %v2312_v62 = vpop.permute.xlu0 %2311 }
 0xc15   :  { %v7947_v0 = vmax.f32 %v2307_v53, %v2310_v60  ;;  %v7949_v7 = vmax.f32 %v2308_v55, %v2312_v62 }
 0xc17   :  { %2325 = vrot.lane.b32.xlu0 %v7947_v0, %s7122_s3  ;;  %2327 = vrot.lane.b32.xlu1 %v7949_v7, %s7122_s3 }
 0xc18   :  { %v1541_v16 = vpop.permute.xlu1 %1540  ;;  %v1543_v17 = vpop.permute.xlu0 %1542 }
 0xc19   :  { %v1546_v31 = vmax.f32 %v7849_v40, %v1541_v16  ;;  %v1547_v39 = vmax.f32 %v7845_v34, %v1543_v17 }
 0xc1b   :  { %2086 = vrot.lane.b32.xlu0 %v7943_v52, %s7123_s26  ;;  %2088 = vrot.lane.b32.xlu1 %v7932_v32, %s7123_s26 }
 0xc1c   :  { %v1549_v20 = vpop.permute.xlu1 %1548  ;;  %v1551_v22 = vpop.permute.xlu0 %1550 }
 0xc1d   :  { %v1554_v36 = vmax.f32 %v1546_v31, %v1549_v20  ;;  %v1555_v42 = vmax.f32 %v1547_v39, %v1551_v22 }
 0xc1f   :  { %2337 = vrot.lane.b32.xlu0 %v7947_v0, %s7123_s26  ;;  %2074 = vrot.lane.b32.xlu1 %v7943_v52, %s7122_s3 }
 0xc20   :  { %v1557_v43 = vpop.permute.xlu1 %1556  ;;  %v1559_v44 = vpop.permute.xlu0 %1558 }
 0xc21   :  { %v7969_v49 = vmax.f32 %v1554_v36, %v1557_v43  ;;  %v7971_v50 = vmax.f32 %v1555_v42, %v1559_v44 }
 0xc23   :  { %2098 = vrot.lane.b32.xlu0 %v7943_v52, %s7124_s2  ;;  %2339 = vrot.lane.b32.xlu1 %v7949_v7, %s7123_s26 }
 0xc27   :  { %2351 = vrot.lane.b32.xlu0 %v7949_v7, %s7124_s2  ;;  %2349 = vrot.lane.b32.xlu1 %v7947_v0, %s7124_s2 }
 0xc2b   :  { %1572 = vrot.lane.b32.xlu1 %v7969_v49, %s7122_s3  ;;  %1574 = vrot.lane.b32.xlu0 %v7971_v50, %s7122_s3 }
 0xc2f   :  { %1584 = vrot.lane.b32.xlu1 %v7969_v49, %s7123_s26  ;;  %1586 = vrot.lane.b32.xlu0 %v7971_v50, %s7123_s26 }
 0xc33   :  { %1596 = vrot.lane.b32.xlu1 %v7969_v49, %s7124_s2  ;;  %1598 = vrot.lane.b32.xlu0 %v7971_v50, %s7124_s2 }
 0xc5a   :  { %v1838_v55 = vpop.permute.xlu1 %1837  ;;  %v1826_v60 = vpop.permute.xlu0 %1825 }
 0xc5b   :  { %v1842_v62 = vsub.f32 %v7847_v35, %v1838_v55  ;;  %v1830_v16 = vsub.f32 %v7847_v35, %v1826_v60 }
 0xc5d   :  { %v1845_v17 = vmul.f32 1.442695, %v1842_v62  ;;  %v1833_v20 = vmul.f32 1.442695, %v1830_v16 }
 0xc5e   :  { %v1850_v22 = vpop.permute.xlu1 %1849 }
 0xc5f   :  { %6896 = vpow2.f32 %v1845_v17  ;;  %v1854_v31 = vsub.f32 %v7847_v35, %v1850_v22 }
 0xc60   :  { %6898 = vpow2.f32 %v1833_v20 }
 0xc61   :  { %v1857_v39 = vmul.f32 1.442695, %v1854_v31 }
 0xc62   :  { %v1824_v36 = vpop.permute.xlu1 %1823  ;;  %v1836_v42 = vpop.permute.xlu0 %1835 }
 0xc63   :  { %6900 = vpow2.f32 %v1857_v39  ;;  %v1829_v43 = vsub.f32 %v7855_v45, %v1824_v36  ;;  %v1841_v44 = vsub.f32 %v7855_v45, %v1836_v42 }
 0xc65   :  { %v1831_v53 = vmul.f32 1.442695, %v1829_v43  ;;  %v1843_v51 = vmul.f32 1.442695, %v1841_v44 }
 0xc66   :  { %v1848_v55 = vpop.permute.xlu0 %1847 }
 0xc67   :  { %6902 = vpow2.f32 %v1831_v53  ;;  %v1853_v60 = vsub.f32 %v7855_v45, %v1848_v55  ;;  %v9225_v45 = vsub.f32 %v7867_v46, %v7949_v7  ;;  %v9227_v7 = vsub.f32 %v7845_v34, %v7971_v50 }
 0xc68   :  { %6904 = vpow2.f32 %v1843_v51 }
 0xc69   :  { %v8003_v62 = vpop.eup %6896  ;;  %v1855_v16 = vmul.f32 1.442695, %v1853_v60  ;;  %v2321_v1 = vmul.f32 1.442695, %v9225_v45 }
 0xc6a   :  { %v8005_v17 = vpop.eup %6898  ;;  %1873 = vrot.lane.b32.xlu1 %v8003_v62, %s7123_s26 }
 0xc6b   :  { %6906 = vpow2.f32 %v1855_v16  ;;  %1863 = vrot.lane.b32.xlu0 %v8005_v17, %s7124_s2 }
 0xc6d   :  { %v8011_v20 = vpop.eup %6900 }
 0xc6e   :  { %1883 = vrot.lane.b32.xlu1 %v8011_v20, %s7122_s3 }
 0xc71   :  { %v8015_v53 = vpop.eup %6902 }
 0xc72   :  { %v8017_v51 = vpop.eup %6904  ;;  %1861 = vrot.lane.b32.xlu1 %v8015_v53, %s7124_s2 }
 0xc73   :  { %1871 = vrot.lane.b32.xlu0 %v8017_v51, %s7123_s26 }
 0xc75   :  { %v8023_v22 = vpop.eup %6906 }
 0xc77   :  { %1881 = vrot.lane.b32.xlu0 %v8023_v22, %s7122_s3 }
 0xc7f   :  { %v2077_v31 = vpop.permute.xlu1 %2076  ;;  %v2101_v39 = vpop.permute.xlu0 %2100 }
 0xc80   :  { %v2081_v36 = vsub.f32 %v7865_v8, %v2077_v31  ;;  %v2105_v42 = vsub.f32 %v7865_v8, %v2101_v39 }
 0xc82   :  { %v2084_v43 = vmul.f32 1.442695, %v2081_v36  ;;  %v2108_v44 = vmul.f32 1.442695, %v2105_v42 }
 0xc84   :  { %6908 = vpow2.f32 %v2084_v43 }
 0xc85   :  { %6910 = vpow2.f32 %v2108_v44 }
 0xc89   :  { %v2328_v55 = vpop.permute.xlu1 %2327  ;;  %v2326_v60 = vpop.permute.xlu0 %2325 }
 0xc8a   :  { %v2332_v16 = vsub.f32 %v7867_v46, %v2328_v55  ;;  %v2331_v12 = vsub.f32 %v7875_v48, %v2326_v60 }
 0xc8c   :  { %v2335_v11 = vmul.f32 1.442695, %v2332_v16  ;;  %v2333_v59 = vmul.f32 1.442695, %v2331_v12 }
 0xc8d   :  { %v2089_v41 = vpop.permute.xlu1 %2088  ;;  %v2087_v5 = vpop.permute.xlu0 %2086 }
 0xc8e   :  { %v8031_v57 = vpop.eup %6908  ;;  %6912 = vpow2.f32 %v2335_v11  ;;  %v2093_v31 = vsub.f32 %v7865_v8, %v2089_v41  ;;  %v2092_v39 = vsub.f32 %v7869_v6, %v2087_v5 }
 0xc8f   :  { %v8035_v36 = vpop.eup %6910  ;;  %6914 = vpow2.f32 %v2333_v59  ;;  %2114 = vrot.lane.b32.xlu1 %v8031_v57, %s7124_s2 }
 0xc90   :  { %v2096_v42 = vmul.f32 1.442695, %v2093_v31  ;;  %v2094_v43 = vmul.f32 1.442695, %v2092_v39  ;;  %2134 = vrot.lane.b32.xlu0 %v8035_v36, %s7122_s3 }
 0xc91   :  { %v2075_v12 = vpop.permute.xlu1 %2074  ;;  %v2338_v44 = vpop.permute.xlu0 %2337 }
 0xc92   :  { %6916 = vpow2.f32 %v2096_v42  ;;  %v2080_v11 = vsub.f32 %v7869_v6, %v2075_v12  ;;  %v2343_v41 = vsub.f32 %v7875_v48, %v2338_v44 }
 0xc93   :  { %6918 = vpow2.f32 %v2094_v43 }
 0xc94   :  { %v2082_v5 = vmul.f32 1.442695, %v2080_v11  ;;  %v2345_v55 = vmul.f32 1.442695, %v2343_v41 }
 0xc95   :  { %v2340_v60 = vpop.permute.xlu1 %2339  ;;  %v2099_v59 = vpop.permute.xlu0 %2098 }
 0xc96   :  { %6920 = vpow2.f32 %v2082_v5  ;;  %v2344_v16 = vsub.f32 %v7867_v46, %v2340_v60  ;;  %v2104_v31 = vsub.f32 %v7869_v6, %v2099_v59 }
 0xc97   :  { %6922 = vpow2.f32 %v2345_v55 }
 0xc98   :  { %v8045_v39 = vpop.eup %6912  ;;  %v2347_v30 = vmul.f32 1.442695, %v2344_v16  ;;  %v2106_v28 = vmul.f32 1.442695, %v2104_v31 }
 0xc99   :  { %v8047_v42 = vpop.eup %6914  ;;  %2365 = vrot.lane.b32.xlu1 %v8045_v39, %s7124_s2  ;;  %v2350_v43 = vpop.permute.xlu1 %2349 }
 0xc9a   :  { %v2352_v12 = vpop.permute.xlu0 %2351  ;;  %6924 = vpow2.f32 %v2347_v30  ;;  %v2355_v44 = vsub.f32 %v7875_v48, %v2350_v43  ;;  %2363 = vrot.lane.b32.xlu0 %v8047_v42, %s7124_s2 }
 0xc9b   :  { %v2356_v11 = vsub.f32 %v7867_v46, %v2352_v12  ;;  %6926 = vpow2.f32 %v2106_v28 }
 0xc9c   :  { %v8055_v41 = vpop.eup %6916  ;;  %v2357_v5 = vmul.f32 1.442695, %v2355_v44 }
 0xc9d   :  { %v2359_v55 = vmul.f32 1.442695, %v2356_v11  ;;  %v8057_v60 = vpop.eup %6918  ;;  %2124 = vrot.lane.b32.xlu1 %v8055_v41, %s7123_s26  ;;  %v1573_v59 = vpop.permute.xlu1 %1572 }
 0xc9e   :  { %v1575_v16 = vpop.permute.xlu0 %1574  ;;  %6928 = vpow2.f32 %v2357_v5  ;;  %v1578_v30 = vsub.f32 %v7849_v40, %v1573_v59  ;;  %2122 = vrot.lane.b32.xlu0 %v8057_v60, %s7123_s26 }
 0xc9f   :  { %v1579_v31 = vsub.f32 %v7845_v34, %v1575_v16  ;;  %6930 = vpow2.f32 %v2359_v55 }
 0xca0   :  { %v8065_v28 = vpop.eup %6920  ;;  %v1580_v43 = vmul.f32 1.442695, %v1578_v30 }
 0xca1   :  { %v1582_v12 = vmul.f32 1.442695, %v1579_v31  ;;  %v8067_v44 = vpop.eup %6922  ;;  %2112 = vrot.lane.b32.xlu1 %v8065_v28, %s7124_s2  ;;  %v1585_v11 = vpop.permute.xlu1 %1584 }
 0xca2   :  { %v1587_v29 = vpop.permute.xlu0 %1586  ;;  %6932 = vpow2.f32 %v1580_v43  ;;  %v1590_v5 = vsub.f32 %v7849_v40, %v1585_v11  ;;  %2373 = vrot.lane.b32.xlu0 %v8067_v44, %s7123_s26 }
 0xca3   :  { %v1591_v59 = vsub.f32 %v7845_v34, %v1587_v29  ;;  %6934 = vpow2.f32 %v1582_v12 }
 0xca4   :  { %v8075_v55 = vpop.eup %6924  ;;  %v1592_v16 = vmul.f32 1.442695, %v1590_v5 }
 0xca5   :  { %v1594_v30 = vmul.f32 1.442695, %v1591_v59  ;;  %v8077_v31 = vpop.eup %6926  ;;  %2375 = vrot.lane.b32.xlu1 %v8075_v55, %s7123_s26  ;;  %v1597_v27 = vpop.permute.xlu1 %1596 }
 0xca6   :  { %v1599_v25 = vpop.permute.xlu0 %1598  ;;  %6936 = vpow2.f32 %v1592_v16  ;;  %v1602_v43 = vsub.f32 %v7849_v40, %v1597_v27  ;;  %2132 = vrot.lane.b32.xlu0 %v8077_v31, %s7122_s3 }
 0xca7   :  { %v1603_v29 = vsub.f32 %v7845_v34, %v1599_v25  ;;  %6938 = vpow2.f32 %v1594_v30 }
 0xca8   :  { %v8085_v12 = vpop.eup %6928  ;;  %v1604_v11 = vmul.f32 1.442695, %v1602_v43 }
 0xca9   :  { %v1606_v5 = vmul.f32 1.442695, %v1603_v29  ;;  %v8087_v59 = vpop.eup %6930  ;;  %2383 = vrot.lane.b32.xlu1 %v8085_v12, %s7122_s3 }
 0xcaa   :  { %6940 = vpow2.f32 %v1604_v11  ;;  %2385 = vrot.lane.b32.xlu0 %v8087_v59, %s7122_s3  ;;  %v9220_v11 = vsub.f32 %v7847_v35, %v7910_v54 }
 0xcab   :  { %6942 = vpow2.f32 %v1606_v5 }
 0xcac   :  { %v8093_v27 = vpop.eup %6932  ;;  %v1819_v5 = vmul.f32 1.442695, %v9220_v11 }
 0xcad   :  { %v8095_v16 = vpop.eup %6934  ;;  %1610 = vrot.lane.b32.xlu1 %v8093_v27, %s7124_s2 }
 0xcae   :  { %1612 = vrot.lane.b32.xlu0 %v8095_v16, %s7124_s2  ;;  %6944 = vpow2.f32 %v1819_v5 }
 0xcaf   :  { %6946 = vpow2.f32 %v1817_v33 }
 0xcb0   :  { %v8101_v25 = vpop.eup %6936 }
 0xcb1   :  { %v8103_v30 = vpop.eup %6938  ;;  %1620 = vrot.lane.b32.xlu1 %v8101_v25, %s7123_s26 }
 0xcb2   :  { %1622 = vrot.lane.b32.xlu0 %v8103_v30, %s7123_s26 }
 0xcb4   :  { %v8109_v43 = vpop.eup %6940 }
 0xcb5   :  { %v8111_v29 = vpop.eup %6942  ;;  %1630 = vrot.lane.b32.xlu1 %v8109_v43, %s7122_s3 }
 0xcb6   :  { %1632 = vrot.lane.b32.xlu0 %v8111_v29, %s7122_s3 }
 0xcb8   :  { %v6945_v19 = vpop.eup %6944 }
 0xcb9   :  { %v6947_v61 = vpop.eup %6946 }
 0xcdc   :  { %v1874_v23 = vpop.permute.xlu1 %1873 }
 0xcdd   :  { %v1864_v14 = vpop.permute.xlu0 %1863 }
 0xcde   :  { %v1868_v9 = vadd.f32 %v6945_v19, %v1864_v14 }
 0xce0   :  { %v1884_v3 = vpop.permute.xlu1 %1883  ;;  %v1878_v63 = vadd.f32 %v1874_v23, %v1868_v9 }
 0xce2   :  { %v1888_v13 = vadd.f32 %v1884_v3, %v1878_v63  ;;  %v9223_v3 = vsub.f32 %v7869_v6, %v7943_v52 }
 0xce4   :  { %6948 = vrcp.f32 %v1888_v13  ;;  %v1862_v47 = vpop.permute.xlu1 %1861  ;;  %v2068_v9 = vmul.f32 1.442695, %v9223_v3 }
 0xce5   :  { %v1867_v24 = vadd.f32 %v6947_v61, %v1862_v47  ;;  %v1872_v21 = vpop.permute.xlu0 %1871  ;;  %v9222_v47 = vsub.f32 %v7865_v8, %v7932_v32 }
 0xce7   :  { %v1877_v35 = vadd.f32 %v1872_v21, %v1867_v24  ;;  %v2070_v13 = vmul.f32 1.442695, %v9222_v47  ;;  %v1568_v47 = vmul.f32 1.442695, %v9227_v7 }
 0xce9   :  { %v1882_v54 = vpop.permute.xlu0 %1881 }
 0xcea   :  { %v1887_v11 = vadd.f32 %v1882_v54, %v1877_v35 }
 0xcec   :  { %6950 = vrcp.f32 %v1887_v11 }
 0xced   :  { %6952 = vpow2.f32 %v2070_v13 }
 0xcee   :  { %v6949_v5 = vpop.eup %6948  ;;  %6954 = vpow2.f32 %v2068_v9 }
 0xcef   :  { %1919 = vrot.lane.b32.xlu1 %v6949_v5, %s7123_s26  ;;  %1899 = vrot.lane.b32.xlu0 %v6949_v5, %s7122_s3  ;;  %v1892_v26 = vmul.f32 %v6949_v5, %v6945_v19 }
 0xcf1   :  { %v8126_v14 = vmul.f32 %v7764_v56, %v1892_v26 }
 0xcf3   :  { %1939 = vrot.lane.b32.xlu1 %v6949_v5, %s7124_s2 }
 0xcf6   :  { %v6951_v63 = vpop.eup %6950 }
 0xcf7   :  { %1917 = vrot.lane.b32.xlu0 %v6951_v63, %s7123_s26  ;;  %1897 = vrot.lane.b32.xlu1 %v6951_v63, %s7122_s3  ;;  %v1891_v21 = vmul.f32 %v6951_v63, %v6947_v61  ;;  %v9224_v61 = vsub.f32 %v7875_v48, %v7947_v0  ;;  %v6953_v8 = vpop.eup %6952  ;;  %v9226_v0 = vsub.f32 %v7849_v40, %v7969_v49 }
 0xcf8   :  { %v6955_v26 = vpop.eup %6954 }
 0xcf9   :  { %v8132_v24 = vmul.f32 %v1891_v21, %v7766_v58  ;;  %v2319_v33 = vmul.f32 1.442695, %v9224_v61  ;;  %v1566_v46 = vmul.f32 1.442695, %v9226_v0 }
 0xcfb   :  { %1937 = vrot.lane.b32.xlu0 %v6951_v63, %s7124_s2  ;;  %6956 = vpow2.f32 %v2319_v33 }
 0xcfc   :  { %6958 = vpow2.f32 %v2321_v1 }
 0xd01   :  { %v2115_v19 = vpop.permute.xlu1 %2114 }
 0xd02   :  { %v2135_v23 = vpop.permute.xlu0 %2134  ;;  %v2119_v32 = vadd.f32 %v6953_v8, %v2115_v19 }
 0xd05   :  { %v6957_v3 = vpop.eup %6956 }
 0xd06   :  { %v6959_v19 = vpop.eup %6958 }
 0xd0b   :  { %v2366_v35 = vpop.permute.xlu1 %2365 }
 0xd0c   :  { %v2364_v54 = vpop.permute.xlu0 %2363 }
 0xd0d   :  { %v2369_v61 = vadd.f32 %v6957_v3, %v2364_v54 }
 0xd0f   :  { %v2125_v11 = vpop.permute.xlu1 %2124 }
 0xd10   :  { %v2129_v6 = vadd.f32 %v2125_v11, %v2119_v32  ;;  %v2123_v52 = vpop.permute.xlu0 %2122 }
 0xd12   :  { %v2139_v5 = vadd.f32 %v2135_v23, %v2129_v6  ;;  %v2370_v23 = vadd.f32 %v6959_v19, %v2366_v35 }
 0xd13   :  { %v2113_v63 = vpop.permute.xlu1 %2112 }
 0xd14   :  { %6960 = vrcp.f32 %v2139_v5  ;;  %v2118_v21 = vadd.f32 %v6955_v26, %v2113_v63  ;;  %v2374_v48 = vpop.permute.xlu0 %2373 }
 0xd15   :  { %6962 = vpow2.f32 %v1566_v46  ;;  %v2379_v1 = vadd.f32 %v2374_v48, %v2369_v61 }
 0xd16   :  { %v2128_v13 = vadd.f32 %v2123_v52, %v2118_v21  ;;  %6964 = vpow2.f32 %v1568_v47 }
 0xd17   :  { %v2376_v9 = vpop.permute.xlu1 %2375 }
 0xd18   :  { %v2133_v33 = vpop.permute.xlu0 %2132  ;;  %v2380_v32 = vadd.f32 %v2376_v9, %v2370_v23 }
 0xd19   :  { %v2138_v45 = vadd.f32 %v2133_v33, %v2128_v13 }
 0xd1b   :  { %6966 = vrcp.f32 %v2138_v45  ;;  %v2384_v11 = vpop.permute.xlu1 %2383 }
 0xd1c   :  { %v2389_v40 = vadd.f32 %v2384_v11, %v2379_v1  ;;  %v2386_v49 = vpop.permute.xlu0 %2385 }
 0xd1d   :  { %v2390_v6 = vadd.f32 %v2386_v49, %v2380_v32 }
 0xd1e   :  { %v6961_v5 = vpop.eup %6960  ;;  %6968 = vrcp.f32 %v2389_v40 }
 0xd1f   :  { %6970 = vrcp.f32 %v2390_v6  ;;  %v1611_v34 = vpop.permute.xlu1 %1610  ;;  %2190 = vrot.lane.b32.xlu0 %v6961_v5, %s7124_s2  ;;  %2150 = vrot.lane.b32.xlu1 %v6961_v5, %s7122_s3  ;;  %v2143_v50 = vmul.f32 %v6961_v5, %v6953_v8  ;;  %v6963_v52 = vpop.eup %6962 }
 0xd20   :  { %v1613_v54 = vpop.permute.xlu0 %1612  ;;  %v6965_v21 = vpop.eup %6964  ;;  %v1616_v48 = vadd.f32 %v6963_v52, %v1611_v34 }
 0xd21   :  { %v8156_v35 = vmul.f32 %v7764_v56, %v2143_v50  ;;  %v1617_v7 = vadd.f32 %v6965_v21, %v1613_v54 }
 0xd23   :  { %v1621_v63 = vpop.permute.xlu1 %1620 }
 0xd24   :  { %v1623_v0 = vpop.permute.xlu0 %1622  ;;  %v1626_v47 = vadd.f32 %v1621_v63, %v1616_v48 }
 0xd25   :  { %v6967_v46 = vpop.eup %6966  ;;  %v1627_v9 = vadd.f32 %v1623_v0, %v1617_v7 }
 0xd26   :  { %v2142_v13 = vmul.f32 %v6967_v46, %v6955_v26 }
 0xd27   :  { %v1631_v61 = vpop.permute.xlu1 %1630 }
 0xd28   :  { %v6969_v33 = vpop.eup %6968  ;;  %v1636_v23 = vadd.f32 %v1631_v61, %v1626_v47  ;;  %v1633_v45 = vpop.permute.xlu0 %1632  ;;  %v8159_v8 = vmul.f32 %v2142_v13, %v7766_v58 }
 0xd29   :  { %v6971_v1 = vpop.eup %6970  ;;  %v1637_v32 = vadd.f32 %v1633_v45, %v1627_v9  ;;  %2399 = vrot.lane.b32.xlu0 %v6969_v33, %s7122_s3  ;;  %v2393_v11 = vmul.f32 %v6969_v33, %v6957_v3 }
 0xd2a   :  { %6972 = vrcp.f32 %v1636_v23  ;;  %2401 = vrot.lane.b32.xlu1 %v6971_v1, %s7122_s3  ;;  %v2394_v40 = vmul.f32 %v6971_v1, %v6959_v19 }
 0xd2b   :  { %6974 = vrcp.f32 %v1637_v32  ;;  %v8164_v26 = vmul.f32 %v2393_v11, %v7766_v58 }
 0xd2c   :  { %v8167_v49 = vmul.f32 %v7764_v56, %v2394_v40 }
 0xd2d   :  { %2168 = vrot.lane.b32.xlu0 %v6967_v46, %s7123_s26 }
 0xd2e   :  { %2170 = vrot.lane.b32.xlu1 %v6961_v5, %s7123_s26 }
 0xd31   :  { %2419 = vrot.lane.b32.xlu0 %v6969_v33, %s7123_s26 }
 0xd32   :  { %2148 = vrot.lane.b32.xlu1 %v6967_v46, %s7122_s3 }
 0xd34   :  { %v6973_v3 = vpop.eup %6972 }
 0xd35   :  { %v6975_v6 = vpop.eup %6974  ;;  %2188 = vrot.lane.b32.xlu0 %v6967_v46, %s7124_s2  ;;  %v1640_v19 = vmul.f32 %v6973_v3, %v6963_v52 }
 0xd36   :  { %2421 = vrot.lane.b32.xlu1 %v6971_v1, %s7123_s26  ;;  %v1641_v34 = vmul.f32 %v6975_v6, %v6965_v21 }
 0xd37   :  { %v8176_v50 = vmul.f32 %v1640_v19, %v7766_v58 }
 0xd38   :  { %v8179_v54 = vmul.f32 %v7764_v56, %v1641_v34 }
 0xd39   :  { %2441 = vrot.lane.b32.xlu0 %v6971_v1, %s7124_s2 }
 0xd3a   :  { %2439 = vrot.lane.b32.xlu1 %v6969_v33, %s7124_s2 }
 0xd3d   :  { %1648 = vrot.lane.b32.xlu0 %v6975_v6, %s7122_s3 }
 0xd3e   :  { %1646 = vrot.lane.b32.xlu1 %v6973_v3, %s7122_s3 }
 0xd41   :  { %1668 = vrot.lane.b32.xlu0 %v6975_v6, %s7123_s26 }
 0xd42   :  { %1666 = vrot.lane.b32.xlu1 %v6973_v3, %s7123_s26 }
 0xd46   :  { %1686 = vrot.lane.b32.xlu1 %v6973_v3, %s7124_s2 }
 0xd4a   :  { %1688 = vrot.lane.b32.xlu1 %v6975_v6, %s7124_s2 }
 0xd61   :  { %v1920_v5 = vpop.permute.xlu1 %1919  ;;  %v1900_v52 = vpop.permute.xlu0 %1899 }
 0xd62   :  { %v1924_v63 = vmul.f32 %v8003_v62, %v1920_v5  ;;  %v1904_v21 = vmul.f32 %v8005_v17, %v1900_v52 }
 0xd64   :  { %v1926_v48 = vmul.f32 %v7764_v56, %v1924_v63  ;;  %v1906_v0 = vmul.f32 %v7764_v56, %v1904_v21 }
 0xd65   :  { %v1940_v46 = vpop.permute.xlu1 %1939 }
 0xd66   :  { %v1944_v7 = vmul.f32 %v8011_v20, %v1940_v46  ;;  %1931 = vrot.lane.b32.xlu1 %v1926_v48, %s7123_s26  ;;  %1911 = vrot.lane.b32.xlu0 %v1906_v0, %s7124_s2 }
 0xd68   :  { %v1946_v47 = vmul.f32 %v7764_v56, %v1944_v7 }
 0xd69   :  { %v1898_v13 = vpop.permute.xlu1 %1897  ;;  %v1918_v9 = vpop.permute.xlu0 %1917 }
 0xd6a   :  { %v1903_v61 = vmul.f32 %v8015_v53, %v1898_v13  ;;  %1951 = vrot.lane.b32.xlu1 %v1946_v47, %s7122_s3  ;;  %v1923_v17 = vmul.f32 %v8017_v51, %v1918_v9 }
 0xd6c   :  { %v1905_v62 = vmul.f32 %v1903_v61, %v7766_v58  ;;  %v1925_v20 = vmul.f32 %v1923_v17, %v7766_v58 }
 0xd6d   :  { %v1938_v33 = vpop.permute.xlu0 %1937 }
 0xd6e   :  { %1909 = vrot.lane.b32.xlu0 %v1905_v62, %s7124_s2  ;;  %v1943_v23 = vmul.f32 %v8023_v22, %v1938_v33 }
 0xd70   :  { %v1945_v45 = vmul.f32 %v1943_v23, %v7766_v58 }
 0xd72   :  { %1929 = vrot.lane.b32.xlu0 %v1925_v20, %s7123_s26 }
 0xd76   :  { %1949 = vrot.lane.b32.xlu0 %v1945_v45, %s7122_s3 }
 0xd91   :  { %v2151_v53 = vpop.permute.xlu1 %2150  ;;  %v2191_v1 = vpop.permute.xlu0 %2190 }
 0xd92   :  { %v2155_v32 = vmul.f32 %v8031_v57, %v2151_v53  ;;  %v2195_v11 = vmul.f32 %v8035_v36, %v2191_v1 }
 0xd94   :  { %v2157_v51 = vmul.f32 %v7764_v56, %v2155_v32  ;;  %v2197_v40 = vmul.f32 %v7764_v56, %v2195_v11 }
 0xd96   :  { %2162 = vrot.lane.b32.xlu1 %v2157_v51, %s7124_s2  ;;  %2202 = vrot.lane.b32.xlu0 %v2197_v40, %s7122_s3 }
 0xd9b   :  { %v2400_v22 = vpop.permute.xlu0 %2399 }
 0xd9c   :  { %v2402_v3 = vpop.permute.xlu1 %2401  ;;  %v2405_v6 = vmul.f32 %v8047_v42, %v2400_v22 }
 0xd9d   :  { %v2406_v19 = vmul.f32 %v8045_v39, %v2402_v3 }
 0xd9e   :  { %v2407_v34 = vmul.f32 %v2405_v6, %v7766_v58 }
 0xd9f   :  { %v2408_v57 = vmul.f32 %v7764_v56, %v2406_v19  ;;  %v2169_v5 = vpop.permute.xlu0 %2168 }
 0xda0   :  { %v2171_v36 = vpop.permute.xlu1 %2170  ;;  %v2174_v52 = vmul.f32 %v8057_v60, %v2169_v5  ;;  %2411 = vrot.lane.b32.xlu0 %v2407_v34, %s7124_s2 }
 0xda1   :  { %v2175_v63 = vmul.f32 %v8055_v41, %v2171_v36  ;;  %2413 = vrot.lane.b32.xlu1 %v2408_v57, %s7124_s2 }
 0xda2   :  { %v2176_v21 = vmul.f32 %v2174_v52, %v7766_v58 }
 0xda3   :  { %v2177_v42 = vmul.f32 %v7764_v56, %v2175_v63  ;;  %v2420_v48 = vpop.permute.xlu0 %2419 }
 0xda4   :  { %v2149_v39 = vpop.permute.xlu1 %2148  ;;  %v2425_v0 = vmul.f32 %v8067_v44, %v2420_v48  ;;  %2180 = vrot.lane.b32.xlu0 %v2176_v21, %s7123_s26 }
 0xda5   :  { %v2154_v46 = vmul.f32 %v8065_v28, %v2149_v39  ;;  %2182 = vrot.lane.b32.xlu1 %v2177_v42, %s7123_s26 }
 0xda6   :  { %v2427_v60 = vmul.f32 %v2425_v0, %v7766_v58 }
 0xda7   :  { %v2156_v41 = vmul.f32 %v2154_v46, %v7766_v58  ;;  %v2189_v7 = vpop.permute.xlu0 %2188 }
 0xda8   :  { %v2422_v47 = vpop.permute.xlu1 %2421  ;;  %v2194_v13 = vmul.f32 %v8077_v31, %v2189_v7  ;;  %2431 = vrot.lane.b32.xlu0 %v2427_v60, %s7123_s26 }
 0xda9   :  { %v2426_v9 = vmul.f32 %v8075_v55, %v2422_v47  ;;  %2160 = vrot.lane.b32.xlu1 %v2156_v41, %s7124_s2 }
 0xdaa   :  { %v2196_v44 = vmul.f32 %v2194_v13, %v7766_v58 }
 0xdab   :  { %v2428_v28 = vmul.f32 %v7764_v56, %v2426_v9  ;;  %v2442_v61 = vpop.permute.xlu0 %2441 }
 0xdac   :  { %v2440_v62 = vpop.permute.xlu1 %2439  ;;  %v2446_v17 = vmul.f32 %v8087_v59, %v2442_v61  ;;  %2200 = vrot.lane.b32.xlu0 %v2196_v44, %s7122_s3 }
 0xdad   :  { %v2445_v33 = vmul.f32 %v8085_v12, %v2440_v62  ;;  %2433 = vrot.lane.b32.xlu1 %v2428_v28, %s7123_s26 }
 0xdae   :  { %v2448_v31 = vmul.f32 %v7764_v56, %v2446_v17 }
 0xdaf   :  { %v2447_v55 = vmul.f32 %v2445_v33, %v7766_v58  ;;  %v1649_v20 = vpop.permute.xlu0 %1648 }
 0xdb0   :  { %v1647_v23 = vpop.permute.xlu1 %1646  ;;  %v1653_v45 = vmul.f32 %v8095_v16, %v1649_v20  ;;  %2453 = vrot.lane.b32.xlu0 %v2448_v31, %s7122_s3 }
 0xdb1   :  { %v1652_v53 = vmul.f32 %v8093_v27, %v1647_v23  ;;  %2451 = vrot.lane.b32.xlu1 %v2447_v55, %s7122_s3 }
 0xdb2   :  { %v1655_v59 = vmul.f32 %v7764_v56, %v1653_v45 }
 0xdb3   :  { %v1654_v12 = vmul.f32 %v1652_v53, %v7766_v58  ;;  %v1669_v1 = vpop.permute.xlu0 %1668 }
 0xdb4   :  { %v1667_v32 = vpop.permute.xlu1 %1666  ;;  %v1673_v11 = vmul.f32 %v8103_v30, %v1669_v1  ;;  %1660 = vrot.lane.b32.xlu0 %v1655_v59, %s7124_s2 }
 0xdb5   :  { %v1672_v51 = vmul.f32 %v8101_v25, %v1667_v32  ;;  %1658 = vrot.lane.b32.xlu1 %v1654_v12, %s7124_s2 }
 0xdb6   :  { %v1675_v16 = vmul.f32 %v7764_v56, %v1673_v11 }
 0xdb7   :  { %v1674_v27 = vmul.f32 %v1672_v51, %v7766_v58 }
 0xdb8   :  { %v1687_v40 = vpop.permute.xlu1 %1686  ;;  %1680 = vrot.lane.b32.xlu0 %v1675_v16, %s7123_s26 }
 0xdb9   :  { %v1692_v22 = vmul.f32 %v8109_v43, %v1687_v40  ;;  %1678 = vrot.lane.b32.xlu1 %v1674_v27, %s7123_s26 }
 0xdbb   :  { %v1694_v3 = vmul.f32 %v1692_v22, %v7766_v58 }
 0xdbc   :  { %v1689_v30 = vpop.permute.xlu1 %1688 }
 0xdbd   :  { %v1693_v6 = vmul.f32 %v8111_v29, %v1689_v30  ;;  %1698 = vrot.lane.b32.xlu1 %v1694_v3, %s7122_s3 }
 0xdbf   :  { %v1695_v25 = vmul.f32 %v7764_v56, %v1693_v6 }
 0xdc1   :  { %1700 = vrot.lane.b32.xlu0 %v1695_v25, %s7122_s3 }
 0xdd8   :  { %v1932_v19 = vpop.permute.xlu1 %1931  ;;  %v1912_v34 = vpop.permute.xlu0 %1911 }
 0xdd9   :  { %v1916_v57 = vadd.f32 %v1912_v34, %v8126_v14 }
 0xddb   :  { %v1936_v5 = vadd.f32 %v1932_v19, %v1916_v57 }
 0xddc   :  { %v1952_v36 = vpop.permute.xlu1 %1951 }
 0xddd   :  { %v1956_v43 = vadd.f32 %v1952_v36, %v1936_v5 }
 0xddf   :  { %2463 = vrot.lane.b32.xlu0 %v1956_v43, %s7122_s3 }
 0xde0   :  { %v1910_v52 = vpop.permute.xlu0 %1909 }
 0xde1   :  { %v1915_v63 = vadd.f32 %v1910_v52, %v8132_v24 }
 0xde4   :  { %v1930_v58 = vpop.permute.xlu0 %1929 }
 0xde5   :  { %v1935_v29 = vadd.f32 %v1930_v58, %v1915_v63  ;;  %v8286_v58 = vld [vmem:[%s9148_s9] sm:$0xf] }
 0xde8   :  { %v1950_v21 = vpop.permute.xlu0 %1949 }
 0xde9   :  { %v1955_v42 = vadd.f32 %v1950_v21, %v1935_v29  ;;  %v9230_v21 = vld [vmem:[#allocation17_spill] sm:$0xff] }
 0xdeb   :  { %2461 = vrot.lane.b32.xlu1 %v1955_v42, %s7122_s3 }
 0xe08   :  { %v2203_v56 = vpop.permute.xlu0 %2202  ;;  %v2163_v48 = vpop.permute.xlu1 %2162 }
 0xe09   :  { %v2167_v14 = vadd.f32 %v2163_v48, %v8156_v35 }
 0xe12   :  { %v2412_v39 = vpop.permute.xlu0 %2411 }
 0xe13   :  { %v2414_v0 = vpop.permute.xlu1 %2413  ;;  %v2417_v62 = vadd.f32 %v2412_v39, %v8164_v26 }
 0xe14   :  { %v2418_v28 = vadd.f32 %v2414_v0, %v8167_v49 }
 0xe16   :  { %v2181_v46 = vpop.permute.xlu0 %2180 }
 0xe17   :  { %v2183_v60 = vpop.permute.xlu1 %2182 }
 0xe18   :  { %v2187_v41 = vadd.f32 %v2183_v60, %v2167_v14  ;;  %v4812_v60 = vld [vmem:[%s9151_s12 + $0x188] sm:$0xff] }
 0xe1a   :  { %v2207_v7 = vadd.f32 %v2203_v56, %v2187_v41  ;;  %v2432_v47 = vpop.permute.xlu0 %2431 }
 0xe1b   :  { %v2161_v13 = vpop.permute.xlu1 %2160  ;;  %v2437_v35 = vadd.f32 %v2432_v47, %v2417_v62  ;;  %v4828_v47 = vld [vmem:[%s9151_s12 + $0x208] sm:$0xff] }
 0xe1c   :  { %v2166_v9 = vadd.f32 %v2161_v13, %v8159_v8  ;;  %2471 = vrot.lane.b32.xlu0 %v2207_v7, %s7123_s26  ;;  %v4827_v7 = vld [vmem:[%s9151_s12 + $0x200] sm:$0xff] }
 0xe1d   :  { %v6596_v13 = vpack.c.bf16 %v4828_v47, %v4827_v7 }
 0xe1e   :  { %v2186_v24 = vadd.f32 %v2181_v46, %v2166_v9  ;;  %v2201_v44 = vpop.permute.xlu0 %2200  ;;  %v4811_v46 = vld [vmem:[%s9151_s12 + $0x180] sm:$0xff]  ;;  %v4829_v9 = vld [vmem:[%s9151_s12 + $0x210] sm:$0xff] }
 0xe1f   :  { %v2434_v61 = vpop.permute.xlu1 %2433  ;;  %v6564_v41 = vpack.c.bf16 %v4812_v60, %v4811_v46  ;;  %v9231_v46 = vld [vmem:[#allocation19_spill] sm:$0xff] }
 0xe20   :  { %v2206_v17 = vadd.f32 %v2201_v44, %v2186_v24  ;;  %v2438_v33 = vadd.f32 %v2434_v61, %v2418_v28  ;;  %v4830_v24 = vld [vmem:[%s9151_s12 + $0x218] sm:$0xff]  ;;  %v4831_v28 = vld [vmem:[%s9151_s12 + $0x220] sm:$0xff]  ;;  %v4832_v61 = vld [vmem:[%s9151_s12 + $0x228] sm:$0xff] }
 0xe21   :  { %v6600_v44 = vpack.c.bf16 %v4830_v24, %v4829_v9  ;;  %v6604_v62 = vpack.c.bf16 %v4832_v61, %v4831_v28  ;;  %v7065_v24 = vld [vmem:[%s9149_s10] sm:$0x7] }
 0xe22   :  { %2469 = vrot.lane.b32.xlu1 %v2206_v17, %s7123_s26  ;;  %v2454_v31 = vpop.permute.xlu0 %2453  ;;  %v4813_v17 = vld [vmem:[%s9151_s12 + $0x190] sm:$0xff] }
 0xe23   :  { %v2452_v55 = vpop.permute.xlu1 %2451  ;;  %v2458_v20 = vadd.f32 %v2454_v31, %v2438_v33  ;;  %v4814_v33 = vld [vmem:[%s9151_s12 + $0x198] sm:$0xff] }
 0xe24   :  { %v2457_v23 = vadd.f32 %v2452_v55, %v2437_v35  ;;  %v6568_v55 = vpack.c.bf16 %v4814_v33, %v4813_v17  ;;  %v7066_v33 = vld [vmem:[%s9150_s11] sm:$0x7] }
 0xe25   :  { %2479 = vrot.lane.b32.xlu0 %v2458_v20, %s7124_s2  ;;  %v4815_v20 = vld [vmem:[%s9151_s12 + $0x1a0] sm:$0xff] }
 0xe26   :  { %2477 = vrot.lane.b32.xlu1 %v2457_v23, %s7124_s2  ;;  %v1661_v45 = vpop.permute.xlu0 %1660  ;;  %v4816_v23 = vld [vmem:[%s9151_s12 + $0x1a8] sm:$0xff] }
 0xe27   :  { %v1659_v8 = vpop.permute.xlu1 %1658  ;;  %v1665_v1 = vadd.f32 %v1661_v45, %v8179_v54  ;;  %v4817_v45 = vld [vmem:[%s9151_s12 + $0x1b0] sm:$0xff] }
 0xe28   :  { %v1664_v11 = vadd.f32 %v1659_v8, %v8176_v50  ;;  %v6572_v8 = vpack.c.bf16 %v4816_v23, %v4815_v20  ;;  %v4845_v20 = vld [vmem:[%s9151_s12 + $0x290] sm:$0xff]  ;;  %v4846_v23 = vld [vmem:[%s9151_s12 + $0x298] sm:$0xff] }
 0xe2a   :  { %v1681_v49 = vpop.permute.xlu0 %1680 }
 0xe2b   :  { %v1679_v53 = vpop.permute.xlu1 %1678  ;;  %v1685_v51 = vadd.f32 %v1681_v49, %v1665_v1  ;;  %v4819_v1 = vld [vmem:[%s9151_s12 + $0x1c0] sm:$0xff] }
 0xe2c   :  { %v1684_v16 = vadd.f32 %v1679_v53, %v1664_v11  ;;  %v4818_v53 = vld [vmem:[%s9151_s12 + $0x1b8] sm:$0xff] }
 0xe2d   :  { %v6576_v49 = vpack.c.bf16 %v4818_v53, %v4817_v45  ;;  %v4847_v45 = vld [vmem:[%s9151_s12 + $0x2a0] sm:$0xff]  ;;  %v4848_v53 = vld [vmem:[%s9151_s12 + $0x2a8] sm:$0xff] }
 0xe2f   :  { %v1699_v12 = vpop.permute.xlu1 %1698 }
 0xe30   :  { %v1704_v3 = vadd.f32 %v1699_v12, %v1684_v16  ;;  %v4834_v12 = vld [vmem:[%s9151_s12 + $0x238] sm:$0xff]  ;;  %v4836_v16 = vld [vmem:[%s9151_s12 + $0x248] sm:$0xff] }
 0xe33   :  { %v1701_v59 = vpop.permute.xlu0 %1700 }
 0xe34   :  { %v1705_v40 = vadd.f32 %v1701_v59, %v1685_v51  ;;  %v4833_v59 = vld [vmem:[%s9151_s12 + $0x230] sm:$0xff]  ;;  %v4835_v51 = vld [vmem:[%s9151_s12 + $0x240] sm:$0xff] }
 0xe51   :  { %v2464_v26 = vpop.permute.xlu0 %2463 }
 0xe52   :  { %v2484_v30 = vsel %vm107_vm0, %v1705_v40, %v2464_v26  ;;  %v6608_v26 = vpack.c.bf16 %v4834_v12, %v4833_v59  ;;  %v4821_v40 = vld [vmem:[%s9151_s12 + $0x1d0] sm:$0xff]  ;;  %v4850_v12 = vld [vmem:[%s9151_s12 + $0x2b8] sm:$0xff] }
 0xe53   :  { %v4849_v59 = vld [vmem:[%s9151_s12 + $0x2b0] sm:$0xff] }
 0xe5d   :  { %v2462_v32 = vpop.permute.xlu1 %2461 }
 0xe5e   :  { %v2483_v6 = vsel %vm107_vm0, %v1704_v3, %v2462_v32  ;;  %v4820_v32 = vld [vmem:[%s9151_s12 + $0x1c8] sm:$0xff]  ;;  %v4837_v3 = vld [vmem:[%s9151_s12 + $0x250] sm:$0xff] }
 0xe5f   :  { %v6580_v11 = vpack.c.bf16 %v4820_v32, %v4819_v1  ;;  %v6640_v1 = vpack.c.bf16 %v4850_v12, %v4849_v59  ;;  %v4851_v32 = vld [vmem:[%s9151_s12 + $0x2c0] sm:$0xff] }
 0xe8e   :  { %v2472_v27 = vpop.permute.xlu0 %2471 }
 0xe8f   :  { %v2486_v25 = vsel %vm684_vm2, %v2484_v30, %v2472_v27  ;;  %v6612_v27 = vpack.c.bf16 %v4836_v16, %v4835_v51  ;;  %v9234_v51 = vld [vmem:[#allocation21_spill] sm:$0xff] }
 0xe94   :  { %v2470_v22 = vpop.permute.xlu1 %2469 }
 0xe95   :  { %v2485_v34 = vsel %vm684_vm2, %v2483_v6, %v2470_v22  ;;  %v4822_v22 = vld [vmem:[%s9151_s12 + $0x1d8] sm:$0xff] }
 0xe96   :  { %v6584_v30 = vpack.c.bf16 %v4822_v22, %v4821_v40  ;;  %v4838_v6 = vld [vmem:[%s9151_s12 + $0x258] sm:$0xff]  ;;  %v9235_v22 = vld [vmem:[#allocation22_spill] sm:$0xff] }
 0xe97   :  { %v2480_v19 = vpop.permute.xlu0 %2479  ;;  %v4854_v40 = vld [vmem:[%s9151_s12 + $0x2d8] sm:$0xff] }
 0xe98   :  { %v2478_v57 = vpop.permute.xlu1 %2477  ;;  %v2488_v54 = vsel %vm687_vm3, %v2486_v25, %v2480_v19  ;;  %v4823_v25 = vld [vmem:[%s9151_s12 + $0x1e0] sm:$0xff]  ;;  %v4824_v19 = vld [vmem:[%s9151_s12 + $0x1e8] sm:$0xff] }
 0xe99   :  { %v2487_v50 = vsel %vm687_vm3, %v2485_v34, %v2478_v57  ;;  %v2490_v5 = vmax.f32 %v2488_v54, 0.0  ;;  %v6616_v34 = vpack.c.bf16 %v4838_v6, %v4837_v3  ;;  %v4839_v57 = vld [vmem:[%s9151_s12 + $0x260] sm:$0xff]  ;;  %v4840_v54 = vld [vmem:[%s9151_s12 + $0x268] sm:$0xff] }
 0xe9a   :  { %v2489_v36 = vmax.f32 %v2487_v50, 0.0  ;;  %v6588_v50 = vpack.c.bf16 %v4824_v19, %v4823_v25  ;;  %v4856_v6 = vld [vmem:[%s9151_s12 + $0x2e8] sm:$0xff]  ;;  %v9236_v25 = vld [vmem:[#allocation23_spill] sm:$0xff] }
 0xe9b   :  { %v2492_v43 = vadd.f32 %v2490_v5, %v7616_v38  ;;  %v9229_v38 = vld [vmem:[#allocation16_spill] sm:$0xff]  ;;  %v6620_v5 = vpack.c.bf16 %v4840_v54, %v4839_v57 }
 0xe9c   :  { %v2491_v52 = vadd.f32 %v2489_v36, %v7614_v37  ;;  %v9228_v37 = vld [vmem:[#allocation15_spill] sm:$0xff]  ;;  %v9237_v54 = vld [vmem:[#allocation24_spill] sm:$0xff] }
 0xe9d   :  { %v4825_v36 = vld [vmem:[%s9151_s12 + $0x1f0] sm:$0xff]  ;;  %v4858_v57 = vld [vmem:[%s9151_s12 + $0x2f8] sm:$0xff] }
 0xe9e   :  { %5753 = vmatprep.mubr.f32.mxu1 %v2491_v52 }
 0xe9f   :  { %5754 = vmatmul.mubr.f32.vlgmr.msra.gmra.mrb[16].mxu1 %v2492_v43 }
 0xea0   :  { %5797 = vmatpush3.msk.msra.mxu1 %vm905_vm4, %v8286_v58 }
 0xea1   :  { %6565 = vmatprep.subr.bf16.mxu1 %v6564_v41 }
 0xf72   :  { %v5755_v63 = vpop.f32.mrb[16].mxu1 }
 0xf73   :  { %v2559_v29 = vpop.f32.mrb[17].mxu1 }
 0xf74   :  { %5758 = vmatprep.mubr.msk.f32.mxu0 %vm898_vm5, %v2559_v29 }
 0xf75   :  { %5759 = vmatmul.mubr.msk.f32.vlgmr.msra.gmra.mrb[22].mxu0 %vm898_vm5, %v5755_v63  ;;  %v4842_v63 = vld [vmem:[%s9151_s12 + $0x278] sm:$0xff] }
 0xf76   :  { %6535 = vmatpush3.bf16.msra.mxu0 %v7371_v2 }
 0xf77   :  { %6537 = vmatprep.subr.bf16.mxu0 %v7376_v4 }
 0xf7a   :  { %6539 = vmatpush3.bf16.msra.mxu0 %v7376_v4 }
 0xf7b   :  { %6541 = vmatprep.subr.bf16.mxu0 %v7387_v10 }
 0xf7e   :  { %6543 = vmatpush3.bf16.msra.mxu0 %v7387_v10 }
 0xf7f   :  { %6545 = vmatprep.subr.bf16.mxu0 %v7398_v15 }
 0xf82   :  { %6547 = vmatpush3.bf16.msra.mxu0 %v7398_v15 }
 0xf83   :  { %6549 = vmatprep.subr.bf16.mxu0 %v7408_v18 }
 0xf86   :  { %6551 = vmatpush3.bf16.msra.mxu0 %v7408_v18 }
 0xf87   :  { %6553 = vmatprep.subr.bf16.mxu0 %v9228_v37 }
 0xf8a   :  { %6555 = vmatpush3.bf16.msra.mxu0 %v9228_v37 }
 0xf8b   :  { %6557 = vmatprep.subr.bf16.mxu0 %v9229_v38 }
 0xf8e   :  { %6559 = vmatpush3.bf16.msra.mxu0 %v9229_v38 }
 0xf8f   :  { %6561 = vmatprep.subr.bf16.mxu0 %v9230_v21 }
 0xf92   :  { %6563 = vmatpush3.bf16.msra.mxu0 %v9230_v21 }
 0xf93   :  { %6597 = vmatprep.subr.bf16.mxu0 %v6596_v13 }
0x1048   :  { %v5760_v42 = vpop.f32.mrb[22].mxu0 }
0x1049   :  { %v8307_v56 = vsub.f32 %v2492_v43, %v5760_v42  ;;  %v2640_v48 = vpop.f32.mrb[23].mxu0  ;;  %v4826_v43 = vld [vmem:[%s9151_s12 + $0x1f8] sm:$0xff] }
0x104a   :  { %v8309_v39 = vsub.f32 %v2491_v52, %v2640_v48  ;;  %v4841_v52 = vld [vmem:[%s9151_s12 + $0x270] sm:$0xff]  ;;  %v6592_v29 = vpack.c.bf16 %v4826_v43, %v4825_v36  ;;  %v4843_v48 = vld [vmem:[%s9151_s12 + $0x280] sm:$0xff] }
0x104b   :  { %v2652_v14 = vmul.f32 %v8307_v56, %v8307_v56  ;;  %v6624_v42 = vpack.c.bf16 %v4842_v63, %v4841_v52  ;;  %v9239_v36 = vld [vmem:[#allocation26_spill] sm:$0xff] }
0x104c   :  { %v2651_v0 = vmul.f32 %v8309_v39, %v8309_v39 }
0x104e   :  { %5793 = vmatprep.mubr.f32.mxu0 %v2651_v0  ;;  %v4844_v0 = vld [vmem:[%s9151_s12 + $0x288] sm:$0xff] }
0x104f   :  { %5794 = vmatmul.mubr.f32.vlgmr.msra.gmra.mrb[24].mxu0 %v2652_v14  ;;  %v6628_v14 = vpack.c.bf16 %v4844_v0, %v4843_v48 }
0x1050   :  { %6599 = vmatpush3.bf16.msra.mxu0 %v6596_v13  ;;  %v9232_v13 = vld [vmem:[#allocation18_spill] sm:$0xff] }
0x1051   :  { %6601 = vmatprep.subr.bf16.mxu0 %v6600_v44  ;;  %v2815_v9 = vsub.s32 1, %v9232_v13 }
0x1054   :  { %6603 = vmatpush3.bf16.msra.mxu0 %v6600_v44  ;;  %v2816_v44 = vrot.slane %v7065_v24, %v2815_v9 }
0x1055   :  { %6605 = vmatprep.subr.bf16.mxu0 %v6604_v62 }
0x1058   :  { %6607 = vmatpush3.bf16.msra.mxu0 %v6604_v62 }
0x1059   :  { %6609 = vmatprep.subr.bf16.mxu0 %v6608_v26 }
0x105c   :  { %6611 = vmatpush3.bf16.msra.mxu0 %v6608_v26  ;;  %v9233_v26 = vld [vmem:[#allocation20_spill] sm:$0xff] }
0x105d   :  { %6613 = vmatprep.subr.bf16.mxu0 %v6612_v27 }
0x1060   :  { %6615 = vmatpush3.bf16.msra.mxu0 %v6612_v27  ;;  %v4853_v27 = vld [vmem:[%s9151_s12 + $0x2d0] sm:$0xff] }
0x1061   :  { %6617 = vmatprep.subr.bf16.mxu0 %v6616_v34  ;;  %v6648_v3 = vpack.c.bf16 %v4854_v40, %v4853_v27 }
0x1064   :  { %6619 = vmatpush3.bf16.msra.mxu0 %v6616_v34  ;;  %v4857_v34 = vld [vmem:[%s9151_s12 + $0x2f0] sm:$0xff] }
0x1065   :  { %6621 = vmatprep.subr.bf16.mxu0 %v6620_v5 }
0x1068   :  { %6623 = vmatpush3.bf16.msra.mxu0 %v6620_v5  ;;  %v9238_v5 = vld [vmem:[#allocation25_spill] sm:$0xff] }
0x1069   :  { %6625 = vmatprep.subr.bf16.mxu0 %v6624_v42 }
0x106c   :  { %6627 = vmatpush3.bf16.msra.mxu0 %v6624_v42 }
0x106d   :  { %6661 = vmatprep.subr.bf16.mxu0 %v9231_v46 }
0x1122   :  { %v5795_v35 = vpop.f32.mrb[24].mxu0 }
0x1123   :  { %v2719_v31 = vpop.f32.mrb[25].mxu0 }
0x1124   :  { %5798 = vmatprep.mubr.msk.f32.mxu1 %vm898_vm5, %v2719_v31 }
0x1125   :  { %5799 = vmatmul.mubr.msk.f32.vlgmr.msra.gmra.mrb[18].mxu1 %vm898_vm5, %v5795_v35  ;;  %v2822_v35 = vrot.slane %v7066_v33, %v2815_v9 }
0x1126   :  { %6567 = vmatpush3.bf16.msra.mxu1 %v6564_v41 }
0x1127   :  { %6569 = vmatprep.subr.bf16.mxu1 %v6568_v55 }
0x112a   :  { %6571 = vmatpush3.bf16.msra.mxu1 %v6568_v55 }
0x112b   :  { %6573 = vmatprep.subr.bf16.mxu1 %v6572_v8 }
0x112e   :  { %6575 = vmatpush3.bf16.msra.mxu1 %v6572_v8 }
0x112f   :  { %6577 = vmatprep.subr.bf16.mxu1 %v6576_v49 }
0x1132   :  { %6579 = vmatpush3.bf16.msra.mxu1 %v6576_v49  ;;  %v6636_v49 = vpack.c.bf16 %v4848_v53, %v4847_v45 }
0x1133   :  { %6581 = vmatprep.subr.bf16.mxu1 %v6580_v11 }
0x1136   :  { %6583 = vmatpush3.bf16.msra.mxu1 %v6580_v11  ;;  %v4852_v11 = vld [vmem:[%s9151_s12 + $0x2c8] sm:$0xff] }
0x1137   :  { %6585 = vmatprep.subr.bf16.mxu1 %v6584_v30  ;;  %v6644_v16 = vpack.c.bf16 %v4852_v11, %v4851_v32 }
0x113a   :  { %6587 = vmatpush3.bf16.msra.mxu1 %v6584_v30  ;;  %v4855_v30 = vld [vmem:[%s9151_s12 + $0x2e0] sm:$0xff] }
0x113b   :  { %6589 = vmatprep.subr.bf16.mxu1 %v6588_v50  ;;  %v6652_v19 = vpack.c.bf16 %v4856_v6, %v4855_v30 }
0x113e   :  { %6591 = vmatpush3.bf16.msra.mxu1 %v6588_v50  ;;  %v6656_v50 = vpack.c.bf16 %v4858_v57, %v4857_v34 }
0x113f   :  { %6593 = vmatprep.subr.bf16.mxu1 %v6592_v29 }
0x1142   :  { %6595 = vmatpush3.bf16.msra.mxu1 %v6592_v29 }
0x1143   :  { %6629 = vmatprep.subr.bf16.mxu1 %v6628_v14 }
0x11f8   :  { %v5800_v60 = vpop.f32.mrb[18].mxu1 }
0x11f9   :  { %v2806_v41 = vadd.f32 1e-05, %v5800_v60  ;;  %v2800_v7 = vpop.f32.mrb[19].mxu1 }
0x11fa   :  { %v2801_v47 = vadd.f32 1e-05, %v2800_v7 }
0x11fb   :  { %6976 = vrsqrt.f32 %v2806_v41 }
0x11fc   :  { %6978 = vrsqrt.f32 %v2801_v47 }
0x1205   :  { %v6977_v28 = vpop.eup %6976 }
0x1206   :  { %v6979_v61 = vpop.eup %6978  ;;  %v2812_v62 = vmul.f32 %v6977_v28, %v8307_v56 }
0x1207   :  { %v2811_v17 = vmul.f32 %v6979_v61, %v8309_v39  ;;  %v6632_v39 = vpack.c.bf16 %v4846_v23, %v4845_v20 }
0x1208   :  { %v2818_v31 = vmul.f32 %v2816_v44, %v2812_v62 }
0x1209   :  { %v2817_v55 = vmul.f32 %v2816_v44, %v2811_v17 }
0x120a   :  { %v8437_v56 = vadd.f32 %v2822_v35, %v2818_v31 }
0x120b   :  { %v8435_v8 = vadd.f32 %v2822_v35, %v2817_v55 }
0x120d   :  { %5833 = vmatprep.mubr.f32.mxu1 %v8435_v8  ;;  %5868 = vmatprep.mubr.f32.mxu0 %v8435_v8 }
0x120e   :  { %5834 = vmatmul.mubr.f32.vlgmr.msra.gmra.mrb[20].mxu1 %v8437_v56  ;;  %5869 = vmatmul.mubr.f32.vlgmr.msra.gmra.mrb[26].mxu0 %v8437_v56 }
0x120f   :  { %6631 = vmatpush3.bf16.msra.mxu1 %v6628_v14  ;;  %5903 = vmatprep.mubr.f32.mxu1 %v8435_v8 }
0x1210   :  { %6633 = vmatprep.subr.bf16.mxu1 %v6632_v39  ;;  %6663 = vmatpush3.bf16.msra.mxu0 %v9231_v46 }
0x1211   :  { %6665 = vmatprep.subr.bf16.mxu0 %v9233_v26 }
0x1213   :  { %6635 = vmatpush3.bf16.msra.mxu1 %v6632_v39 }
0x1214   :  { %6637 = vmatprep.subr.bf16.mxu1 %v6636_v49  ;;  %6667 = vmatpush3.bf16.msra.mxu0 %v9233_v26 }
0x1215   :  { %6669 = vmatprep.subr.bf16.mxu0 %v9234_v51 }
0x1217   :  { %6639 = vmatpush3.bf16.msra.mxu1 %v6636_v49 }
0x1218   :  { %6641 = vmatprep.subr.bf16.mxu1 %v6640_v1  ;;  %6671 = vmatpush3.bf16.msra.mxu0 %v9234_v51 }
0x1219   :  { %6673 = vmatprep.subr.bf16.mxu0 %v9235_v22 }
0x121b   :  { %6643 = vmatpush3.bf16.msra.mxu1 %v6640_v1 }
0x121c   :  { %6645 = vmatprep.subr.bf16.mxu1 %v6644_v16  ;;  %6675 = vmatpush3.bf16.msra.mxu0 %v9235_v22 }
0x121d   :  { %6677 = vmatprep.subr.bf16.mxu0 %v9236_v25 }
0x121f   :  { %6647 = vmatpush3.bf16.msra.mxu1 %v6644_v16 }
0x1220   :  { %6649 = vmatprep.subr.bf16.mxu1 %v6648_v3  ;;  %6679 = vmatpush3.bf16.msra.mxu0 %v9236_v25 }
0x1221   :  { %6681 = vmatprep.subr.bf16.mxu0 %v9237_v54 }
0x1223   :  { %6651 = vmatpush3.bf16.msra.mxu1 %v6648_v3 }
0x1224   :  { %6653 = vmatprep.subr.bf16.mxu1 %v6652_v19  ;;  %6683 = vmatpush3.bf16.msra.mxu0 %v9237_v54 }
0x1225   :  { %6685 = vmatprep.subr.bf16.mxu0 %v9238_v5 }
0x1227   :  { %6655 = vmatpush3.bf16.msra.mxu1 %v6652_v19 }
0x1228   :  { %6657 = vmatprep.subr.bf16.mxu1 %v6656_v50  ;;  %6687 = vmatpush3.bf16.msra.mxu0 %v9238_v5 }
0x1229   :  { %6689 = vmatprep.subr.bf16.mxu0 %v9239_v36 }
0x122b   :  { %6659 = vmatpush3.bf16.msra.mxu1 %v6656_v50 }
0x122c   :  { %6693 = vmatprep.subr.bf16.mxu1 %v9231_v46  ;;  %6691 = vmatpush3.bf16.msra.mxu0 %v9239_v36 }
0x122d   :  { %6725 = vmatprep.subr.bf16.mxu0 %v9231_v46 }
0x122e   :  { %5904 = vmatmul.mubr.f32.vlgmr.msra.gmra.mrb[22].mxu1 %v8437_v56 }
0x122f   :  { %6695 = vmatpush3.bf16.msra.mxu1 %v9231_v46 }
0x1230   :  { %6697 = vmatprep.subr.bf16.mxu1 %v9233_v26 }
0x1233   :  { %6699 = vmatpush3.bf16.msra.mxu1 %v9233_v26 }
0x1234   :  { %6701 = vmatprep.subr.bf16.mxu1 %v9234_v51 }
0x1237   :  { %6703 = vmatpush3.bf16.msra.mxu1 %v9234_v51 }
0x1238   :  { %6705 = vmatprep.subr.bf16.mxu1 %v9235_v22 }
0x123b   :  { %6707 = vmatpush3.bf16.msra.mxu1 %v9235_v22 }
0x123c   :  { %6709 = vmatprep.subr.bf16.mxu1 %v9236_v25 }
0x123f   :  { %6711 = vmatpush3.bf16.msra.mxu1 %v9236_v25 }
0x1240   :  { %6713 = vmatprep.subr.bf16.mxu1 %v9237_v54 }
0x1243   :  { %6715 = vmatpush3.bf16.msra.mxu1 %v9237_v54 }
0x1244   :  { %6717 = vmatprep.subr.bf16.mxu1 %v9238_v5 }
0x1247   :  { %6719 = vmatpush3.bf16.msra.mxu1 %v9238_v5 }
0x1248   :  { %6721 = vmatprep.subr.bf16.mxu1 %v9239_v36 }
0x124b   :  { %6723 = vmatpush3.bf16.msra.mxu1 %v9239_v36 }
0x124c   :  { %6757 = vmatprep.subr.bf16.mxu1 %v9231_v46 }
0x12e1   :  { %v5835_v43 = vpop.f32.mrb[20].mxu1  ;;  %v5870_v52 = vpop.f32.mrb[26].mxu0 }
0x12e2   :  { %v3000_v63 = vpop.f32.mrb[27].mxu0  ;;  %3105 = vrot.lane.b32.xlu0 %v5835_v43, %s7122_s3  ;;  %v2908_v29 = vpop.f32.mrb[21].mxu1 }
0x12e3   :  { %3103 = vrot.lane.b32.xlu1 %v2908_v29, %s7122_s3 }
0x12e6   :  { %3115 = vrot.lane.b32.xlu0 %v2908_v29, %s7124_s2 }
0x12e7   :  { %3109 = vrot.lane.b32.xlu1 %v2908_v29, %s7123_s26 }
0x12ea   :  { %3117 = vrot.lane.b32.xlu0 %v5835_v43, %s7124_s2 }
0x12eb   :  { %3111 = vrot.lane.b32.xlu1 %v5835_v43, %s7123_s26 }
0x1301   :  { %v8520_v42 = vpop.f32.mrb[22].mxu1 }
0x1302   :  { %v8522_v48 = vpop.f32.mrb[23].mxu1 }
0x1354   :  { %v3106_v0 = vpop.permute.xlu0 %3105 }
0x1355   :  { %v3104_v14 = vpop.permute.xlu1 %3103  ;;  %v3122_v39 = vsel %vm107_vm0, %v5835_v43, %v3106_v0 }
0x1356   :  { %v3121_v41 = vsel %vm107_vm0, %v2908_v29, %v3104_v14 }
0x1358   :  { %v3116_v60 = vpop.permute.xlu0 %3115 }
0x1359   :  { %v3372_v7 = vsel %vm107_vm0, %v3116_v60, %v2908_v29  ;;  %v3110_v47 = vpop.permute.xlu1 %3109 }
0x135a   :  { %v3623_v9 = vsel %vm107_vm0, %v3110_v47, %v3116_v60  ;;  %v3874_v24 = vsel %vm107_vm0, %v3104_v14, %v3110_v47  ;;  %v3123_v44 = vsel %vm684_vm2, %v3121_v41, %v3110_v47  ;;  %v3374_v28 = vsel %vm684_vm2, %v3372_v7, %v3104_v14 }
0x135b   :  { %v3125_v61 = vsel %vm687_vm3, %v3123_v44, %v3116_v60  ;;  %v3376_v62 = vsel %vm687_vm3, %v3374_v28, %v3110_v47  ;;  %v3625_v17 = vsel %vm684_vm2, %v3623_v9, %v2908_v29  ;;  %v3876_v33 = vsel %vm684_vm2, %v3874_v24, %v3116_v60 }
0x135c   :  { %v3118_v35 = vpop.permute.xlu0 %3117  ;;  %v3127_v31 = vmul.f32 %v3125_v61, %v3000_v63  ;;  %v3378_v55 = vmul.f32 %v3376_v62, %v3000_v63  ;;  %v3627_v20 = vsel %vm687_vm3, %v3625_v17, %v3104_v14  ;;  %v3878_v23 = vsel %vm687_vm3, %v3876_v33, %v2908_v29 }
0x135d   :  { %v3373_v45 = vsel %vm107_vm0, %v3118_v35, %v5835_v43  ;;  %v3112_v53 = vpop.permute.xlu1 %3111  ;;  %v3629_v49 = vmul.f32 %v3627_v20, %v3000_v63  ;;  %v3880_v59 = vmul.f32 %v3878_v23, %v3000_v63 }
0x135e   :  { %v3124_v12 = vsel %vm684_vm2, %v3122_v39, %v3112_v53  ;;  %v3624_v1 = vsel %vm107_vm0, %v3112_v53, %v3118_v35  ;;  %v3875_v32 = vsel %vm107_vm0, %v3106_v0, %v3112_v53  ;;  %5938 = vmatprep.mubr.f32.mxu0 %v3127_v31  ;;  %5973 = vmatprep.mubr.f32.mxu1 %v3378_v55 }
0x135f   :  { %v3126_v11 = vsel %vm687_vm3, %v3124_v12, %v3118_v35  ;;  %v3375_v16 = vsel %vm684_vm2, %v3373_v45, %v3106_v0  ;;  %v3626_v27 = vsel %vm684_vm2, %v3624_v1, %v5835_v43  ;;  %v3877_v40 = vsel %vm684_vm2, %v3875_v32, %v3118_v35 }
0x1360   :  { %v3128_v3 = vmul.f32 %v5870_v52, %v3126_v11  ;;  %v3377_v30 = vsel %vm687_vm3, %v3375_v16, %v3112_v53  ;;  %v3628_v6 = vsel %vm687_vm3, %v3626_v27, %v3106_v0  ;;  %v3879_v19 = vsel %vm687_vm3, %v3877_v40, %v5835_v43 }
0x1361   :  { %v3379_v34 = vmul.f32 %v5870_v52, %v3377_v30  ;;  %v3630_v57 = vmul.f32 %v5870_v52, %v3628_v6  ;;  %v3881_v50 = vmul.f32 %v5870_v52, %v3879_v19 }
0x1362   :  { %5939 = vmatmul.mubr.f32.vlgmr.msra.gmra.mrb[28].mxu0 %v3128_v3 }
0x1363   :  { %5974 = vmatmul.mubr.f32.vlgmr.msra.gmra.mrb[24].mxu1 %v3379_v34  ;;  %6727 = vmatpush3.bf16.msra.mxu0 %v9231_v46 }
0x1364   :  { %6759 = vmatpush3.bf16.msra.mxu1 %v9231_v46  ;;  %6008 = vmatprep.mubr.f32.mxu0 %v3629_v49 }
0x1365   :  { %6043 = vmatprep.mubr.f32.mxu1 %v3880_v59  ;;  %6729 = vmatprep.subr.bf16.mxu0 %v9233_v26 }
0x1366   :  { %6761 = vmatprep.subr.bf16.mxu1 %v9233_v26 }
0x1367   :  { %6731 = vmatpush3.bf16.msra.mxu0 %v9233_v26 }
0x1368   :  { %6763 = vmatpush3.bf16.msra.mxu1 %v9233_v26  ;;  %6733 = vmatprep.subr.bf16.mxu0 %v9234_v51 }
0x1369   :  { %6765 = vmatprep.subr.bf16.mxu1 %v9234_v51 }
0x136b   :  { %6735 = vmatpush3.bf16.msra.mxu0 %v9234_v51 }
0x136c   :  { %6767 = vmatpush3.bf16.msra.mxu1 %v9234_v51  ;;  %6737 = vmatprep.subr.bf16.mxu0 %v9235_v22 }
0x136d   :  { %6769 = vmatprep.subr.bf16.mxu1 %v9235_v22 }
0x136f   :  { %6739 = vmatpush3.bf16.msra.mxu0 %v9235_v22 }
0x1370   :  { %6771 = vmatpush3.bf16.msra.mxu1 %v9235_v22  ;;  %6741 = vmatprep.subr.bf16.mxu0 %v9236_v25 }
0x1371   :  { %6773 = vmatprep.subr.bf16.mxu1 %v9236_v25 }
0x1373   :  { %6743 = vmatpush3.bf16.msra.mxu0 %v9236_v25 }
0x1374   :  { %6775 = vmatpush3.bf16.msra.mxu1 %v9236_v25  ;;  %6745 = vmatprep.subr.bf16.mxu0 %v9237_v54 }
0x1375   :  { %6777 = vmatprep.subr.bf16.mxu1 %v9237_v54 }
0x1377   :  { %6747 = vmatpush3.bf16.msra.mxu0 %v9237_v54 }
0x1378   :  { %6779 = vmatpush3.bf16.msra.mxu1 %v9237_v54  ;;  %6749 = vmatprep.subr.bf16.mxu0 %v9238_v5 }
0x1379   :  { %6781 = vmatprep.subr.bf16.mxu1 %v9238_v5 }
0x137b   :  { %6751 = vmatpush3.bf16.msra.mxu0 %v9238_v5 }
0x137c   :  { %6783 = vmatpush3.bf16.msra.mxu1 %v9238_v5  ;;  %6753 = vmatprep.subr.bf16.mxu0 %v9239_v36 }
0x137d   :  { %6785 = vmatprep.subr.bf16.mxu1 %v9239_v36 }
0x137f   :  { %6755 = vmatpush3.bf16.msra.mxu0 %v9239_v36 }
0x1380   :  { %6787 = vmatpush3.bf16.msra.mxu1 %v9239_v36  ;;  %6789 = vmatprep.subr.bf16.mxu0 %v7371_v2 }
0x1381   :  { %6081 = vmatprep.subr.msk.mxu1 %vm905_vm4, %v8286_v58 }
0x1382   :  { %6009 = vmatmul.mubr.f32.vlgmr.msra.gmra.mrb[30].mxu0 %v3630_v57 }
0x1383   :  { %6044 = vmatmul.mubr.f32.vlgmr.msra.gmra.mrb[26].mxu1 %v3881_v50  ;;  %6791 = vmatpush3.bf16.msra.mxu0 %v7371_v2 }
0x1384   :  { %6793 = vmatprep.subr.bf16.mxu0 %v7376_v4  ;;  %6082 = vmatpush3.msk.msra.mxu1 %vm905_vm4, %v8286_v58 }
0x1385   :  { %6821 = vmatprep.subr.bf16.mxu1 %v7371_v2 }
0x1387   :  { %6795 = vmatpush3.bf16.msra.mxu0 %v7376_v4 }
0x1388   :  { %6797 = vmatprep.subr.bf16.mxu0 %v7387_v10 }
0x138b   :  { %6799 = vmatpush3.bf16.msra.mxu0 %v7387_v10 }
0x138c   :  { %6801 = vmatprep.subr.bf16.mxu0 %v7398_v15 }
0x138f   :  { %6803 = vmatpush3.bf16.msra.mxu0 %v7398_v15 }
0x1390   :  { %6805 = vmatprep.subr.bf16.mxu0 %v7408_v18 }
0x1393   :  { %6807 = vmatpush3.bf16.msra.mxu0 %v7408_v18 }
0x1394   :  { %6809 = vmatprep.subr.bf16.mxu0 %v9228_v37 }
0x1397   :  { %6811 = vmatpush3.bf16.msra.mxu0 %v9228_v37 }
0x1398   :  { %6813 = vmatprep.subr.bf16.mxu0 %v9229_v38 }
0x139b   :  { %6815 = vmatpush3.bf16.msra.mxu0 %v9229_v38 }
0x139c   :  { %6817 = vmatprep.subr.bf16.mxu0 %v9230_v21 }
0x139f   :  { %6819 = vmatpush3.bf16.msra.mxu0 %v9230_v21 }
0x13a0   :  { %6121 = vmatprep.subr.msk.mxu0 %vm905_vm4, %v8286_v58 }
0x1435   :  { %v8601_v46 = vpop.f32.mrb[28].mxu0 }
0x1436   :  { %v8603_v26 = vpop.f32.mrb[24].mxu1  ;;  %v8605_v51 = vpop.f32.mrb[29].mxu0 }
0x1437   :  { %3467 = vrot.lane.b32.xlu1 %v8603_v26, %s7123_s26  ;;  %3459 = vrot.lane.b32.xlu0 %v8603_v26, %s7124_s2  ;;  %v8611_v22 = vpop.f32.mrb[25].mxu1 }
0x143b   :  { %3475 = vrot.lane.b32.xlu1 %v8603_v26, %s7122_s3  ;;  %3465 = vrot.lane.b32.xlu0 %v8611_v22, %s7123_s26 }
0x143f   :  { %3473 = vrot.lane.b32.xlu0 %v8611_v22, %s7122_s3  ;;  %3457 = vrot.lane.b32.xlu1 %v8611_v22, %s7124_s2 }
0x1455   :  { %v8621_v58 = vpop.f32.mrb[30].mxu0 }
0x1456   :  { %v8623_v25 = vpop.f32.mrb[26].mxu1  ;;  %v8625_v54 = vpop.f32.mrb[31].mxu0  ;;  %3726 = vrot.lane.b32.xlu0 %v8621_v58, %s7122_s3  ;;  %3710 = vrot.lane.b32.xlu1 %v8621_v58, %s7124_s2 }
0x1457   :  { %v8631_v5 = vpop.f32.mrb[27].mxu1 }
0x145a   :  { %3961 = vrot.lane.b32.xlu1 %v8623_v25, %s7124_s2  ;;  %3959 = vrot.lane.b32.xlu0 %v8631_v5, %s7124_s2 }
0x145e   :  { %3718 = vrot.lane.b32.xlu1 %v8621_v58, %s7123_s26  ;;  %3716 = vrot.lane.b32.xlu0 %v8625_v54, %s7123_s26 }
0x1462   :  { %3708 = vrot.lane.b32.xlu1 %v8625_v54, %s7124_s2  ;;  %3967 = vrot.lane.b32.xlu0 %v8631_v5, %s7123_s26 }
0x1466   :  { %3969 = vrot.lane.b32.xlu1 %v8623_v25, %s7123_s26  ;;  %3724 = vrot.lane.b32.xlu0 %v8625_v54, %s7122_s3 }
0x146a   :  { %3975 = vrot.lane.b32.xlu1 %v8631_v5, %s7122_s3  ;;  %3977 = vrot.lane.b32.xlu0 %v8623_v25, %s7122_s3 }
0x146e   :  { %3206 = vrot.lane.b32.xlu1 %v8605_v51, %s7124_s2  ;;  %3208 = vrot.lane.b32.xlu0 %v8601_v46, %s7124_s2 }
0x1472   :  { %3214 = vrot.lane.b32.xlu1 %v8605_v51, %s7123_s26  ;;  %3216 = vrot.lane.b32.xlu0 %v8601_v46, %s7123_s26 }
0x1476   :  { %3222 = vrot.lane.b32.xlu1 %v8605_v51, %s7122_s3  ;;  %3224 = vrot.lane.b32.xlu0 %v8601_v46, %s7122_s3 }
0x14a9   :  { %v3468_v36 = vpop.permute.xlu1 %3467  ;;  %v3460_v43 = vpop.permute.xlu0 %3459 }
0x14aa   :  { %v3464_v52 = vmax.f32 %v8603_v26, %v3460_v43 }
0x14ac   :  { %v3472_v63 = vmax.f32 %v3464_v52, %v3468_v36 }
0x14ad   :  { %v3476_v29 = vpop.permute.xlu1 %3475  ;;  %v3466_v14 = vpop.permute.xlu0 %3465 }
0x14ae   :  { %v8666_v0 = vmax.f32 %v3472_v63, %v3476_v29 }
0x14b0   :  { %v3482_v60 = vsub.f32 %v8603_v26, %v8666_v0  ;;  %3503 = vrot.lane.b32.xlu1 %v8666_v0, %s7123_s26  ;;  %3491 = vrot.lane.b32.xlu0 %v8666_v0, %s7122_s3 }
0x14b1   :  { %v3458_v41 = vpop.permute.xlu1 %3457  ;;  %v3474_v9 = vpop.permute.xlu0 %3473 }
0x14b2   :  { %v3463_v7 = vmax.f32 %v8611_v22, %v3458_v41 }
0x14b4   :  { %v3471_v47 = vmax.f32 %v3463_v7, %v3466_v14  ;;  %3515 = vrot.lane.b32.xlu1 %v8666_v0, %s7124_s2 }
0x14b6   :  { %v8677_v24 = vmax.f32 %v3471_v47, %v3474_v9 }
0x14b8   :  { %3489 = vrot.lane.b32.xlu1 %v8677_v24, %s7122_s3  ;;  %3501 = vrot.lane.b32.xlu0 %v8677_v24, %s7123_s26  ;;  %v3481_v44 = vsub.f32 %v8611_v22, %v8677_v24 }
0x14bc   :  { %3513 = vrot.lane.b32.xlu0 %v8677_v24, %s7124_s2 }
0x14c8   :  { %v3727_v28 = vpop.permute.xlu0 %3726  ;;  %v3711_v61 = vpop.permute.xlu1 %3710 }
0x14c9   :  { %v3715_v33 = vmax.f32 %v8621_v58, %v3711_v61 }
0x14cc   :  { %v3962_v62 = vpop.permute.xlu1 %3961  ;;  %v3960_v17 = vpop.permute.xlu0 %3959 }
0x14cd   :  { %v3966_v1 = vmax.f32 %v8623_v25, %v3962_v62  ;;  %v3965_v32 = vmax.f32 %v8631_v5, %v3960_v17 }
0x14d0   :  { %v3719_v35 = vpop.permute.xlu1 %3718  ;;  %v3717_v31 = vpop.permute.xlu0 %3716 }
0x14d1   :  { %v3723_v55 = vmax.f32 %v3715_v33, %v3719_v35 }
0x14d3   :  { %v8688_v20 = vmax.f32 %v3723_v55, %v3727_v28 }
0x14d4   :  { %v3709_v23 = vpop.permute.xlu1 %3708  ;;  %v3968_v39 = vpop.permute.xlu0 %3967 }
0x14d5   :  { %v3714_v53 = vmax.f32 %v8625_v54, %v3709_v23  ;;  %3742 = vrot.lane.b32.xlu1 %v8688_v20, %s7122_s3  ;;  %3766 = vrot.lane.b32.xlu0 %v8688_v20, %s7124_s2  ;;  %v3973_v16 = vmax.f32 %v3965_v32, %v3968_v39 }
0x14d7   :  { %v3722_v49 = vmax.f32 %v3714_v53, %v3717_v31 }
0x14d8   :  { %v3970_v59 = vpop.permute.xlu1 %3969  ;;  %v3725_v12 = vpop.permute.xlu0 %3724 }
0x14d9   :  { %v8699_v11 = vmax.f32 %v3722_v49, %v3725_v12  ;;  %v3974_v27 = vmax.f32 %v3966_v1, %v3970_v59 }
0x14dc   :  { %v3976_v3 = vpop.permute.xlu1 %3975  ;;  %v3978_v30 = vpop.permute.xlu0 %3977 }
0x14dd   :  { %v8703_v6 = vmax.f32 %v3973_v16, %v3976_v3  ;;  %v8705_v19 = vmax.f32 %v3974_v27, %v3978_v30 }
0x14df   :  { %3991 = vrot.lane.b32.xlu0 %v8703_v6, %s7122_s3  ;;  %3993 = vrot.lane.b32.xlu1 %v8705_v19, %s7122_s3 }
0x14e0   :  { %v3207_v50 = vpop.permute.xlu1 %3206  ;;  %v3209_v36 = vpop.permute.xlu0 %3208 }
0x14e1   :  { %v3212_v63 = vmax.f32 %v8605_v51, %v3207_v50  ;;  %v3213_v29 = vmax.f32 %v8601_v46, %v3209_v36 }
0x14e3   :  { %3752 = vrot.lane.b32.xlu0 %v8699_v11, %s7123_s26  ;;  %3754 = vrot.lane.b32.xlu1 %v8688_v20, %s7123_s26 }
0x14e4   :  { %v3215_v43 = vpop.permute.xlu1 %3214  ;;  %v3217_v52 = vpop.permute.xlu0 %3216 }
0x14e5   :  { %v3220_v14 = vmax.f32 %v3212_v63, %v3215_v43  ;;  %v3221_v41 = vmax.f32 %v3213_v29, %v3217_v52 }
0x14e7   :  { %4003 = vrot.lane.b32.xlu0 %v8703_v6, %s7123_s26  ;;  %3740 = vrot.lane.b32.xlu1 %v8699_v11, %s7122_s3 }
0x14e8   :  { %v3223_v7 = vpop.permute.xlu1 %3222  ;;  %v3225_v47 = vpop.permute.xlu0 %3224 }
0x14e9   :  { %v8725_v9 = vmax.f32 %v3220_v14, %v3223_v7  ;;  %v8727_v28 = vmax.f32 %v3221_v41, %v3225_v47 }
0x14eb   :  { %3764 = vrot.lane.b32.xlu0 %v8699_v11, %s7124_s2  ;;  %4005 = vrot.lane.b32.xlu1 %v8705_v19, %s7123_s26 }
0x14ef   :  { %4017 = vrot.lane.b32.xlu0 %v8705_v19, %s7124_s2  ;;  %4015 = vrot.lane.b32.xlu1 %v8703_v6, %s7124_s2 }
0x14f3   :  { %3238 = vrot.lane.b32.xlu1 %v8725_v9, %s7122_s3  ;;  %3240 = vrot.lane.b32.xlu0 %v8727_v28, %s7122_s3 }
0x14f7   :  { %3250 = vrot.lane.b32.xlu1 %v8725_v9, %s7123_s26  ;;  %3252 = vrot.lane.b32.xlu0 %v8727_v28, %s7123_s26 }
0x14fb   :  { %3262 = vrot.lane.b32.xlu1 %v8725_v9, %s7124_s2  ;;  %3264 = vrot.lane.b32.xlu0 %v8727_v28, %s7124_s2 }
0x1522   :  { %v3504_v17 = vpop.permute.xlu1 %3503  ;;  %v3492_v33 = vpop.permute.xlu0 %3491 }
0x1523   :  { %v3508_v35 = vsub.f32 %v8603_v26, %v3504_v17  ;;  %v3496_v31 = vsub.f32 %v8603_v26, %v3492_v33 }
0x1525   :  { %v3511_v55 = vmul.f32 1.442695, %v3508_v35  ;;  %v3499_v23 = vmul.f32 1.442695, %v3496_v31 }
0x1526   :  { %v3516_v39 = vpop.permute.xlu1 %3515 }
0x1527   :  { %6980 = vpow2.f32 %v3511_v55  ;;  %v3520_v53 = vsub.f32 %v8603_v26, %v3516_v39 }
0x1528   :  { %6982 = vpow2.f32 %v3499_v23 }
0x1529   :  { %v3523_v49 = vmul.f32 1.442695, %v3520_v53 }
0x152a   :  { %v3490_v59 = vpop.permute.xlu1 %3489  ;;  %v3502_v12 = vpop.permute.xlu0 %3501 }
0x152b   :  { %6984 = vpow2.f32 %v3523_v49  ;;  %v3495_v1 = vsub.f32 %v8611_v22, %v3490_v59  ;;  %v3507_v32 = vsub.f32 %v8611_v22, %v3502_v12 }
0x152d   :  { %v3497_v16 = vmul.f32 1.442695, %v3495_v1  ;;  %v3509_v27 = vmul.f32 1.442695, %v3507_v32 }
0x152e   :  { %v3514_v3 = vpop.permute.xlu0 %3513 }
0x152f   :  { %6986 = vpow2.f32 %v3497_v16  ;;  %v3519_v30 = vsub.f32 %v8611_v22, %v3514_v3 }
0x1530   :  { %6988 = vpow2.f32 %v3509_v27 }
0x1531   :  { %v8759_v50 = vpop.eup %6980  ;;  %v3521_v36 = vmul.f32 1.442695, %v3519_v30 }
0x1532   :  { %v8761_v43 = vpop.eup %6982  ;;  %3539 = vrot.lane.b32.xlu1 %v8759_v50, %s7123_s26 }
0x1533   :  { %6990 = vpow2.f32 %v3521_v36  ;;  %3529 = vrot.lane.b32.xlu0 %v8761_v43, %s7124_s2 }
0x1535   :  { %v8767_v52 = vpop.eup %6984 }
0x1536   :  { %3549 = vrot.lane.b32.xlu1 %v8767_v52, %s7122_s3 }
0x1539   :  { %v8771_v63 = vpop.eup %6986 }
0x153a   :  { %v8773_v29 = vpop.eup %6988  ;;  %3527 = vrot.lane.b32.xlu1 %v8771_v63, %s7124_s2 }
0x153b   :  { %3537 = vrot.lane.b32.xlu0 %v8773_v29, %s7123_s26 }
0x153d   :  { %v8779_v14 = vpop.eup %6990 }
0x153f   :  { %3547 = vrot.lane.b32.xlu0 %v8779_v14, %s7122_s3 }
0x1547   :  { %v3743_v41 = vpop.permute.xlu1 %3742  ;;  %v3767_v7 = vpop.permute.xlu0 %3766 }
0x1548   :  { %v3747_v47 = vsub.f32 %v8621_v58, %v3743_v41  ;;  %v3771_v17 = vsub.f32 %v8621_v58, %v3767_v7 }
0x154a   :  { %v3750_v33 = vmul.f32 1.442695, %v3747_v47  ;;  %v3774_v35 = vmul.f32 1.442695, %v3771_v17 }
0x154c   :  { %6992 = vpow2.f32 %v3750_v33 }
0x154d   :  { %6994 = vpow2.f32 %v3774_v35 }
0x1551   :  { %v3994_v31 = vpop.permute.xlu1 %3993  ;;  %v3992_v55 = vpop.permute.xlu0 %3991 }
0x1552   :  { %v3998_v23 = vsub.f32 %v8623_v25, %v3994_v31  ;;  %v3997_v39 = vsub.f32 %v8631_v5, %v3992_v55 }
0x1554   :  { %v4001_v53 = vmul.f32 1.442695, %v3998_v23  ;;  %v3999_v49 = vmul.f32 1.442695, %v3997_v39 }
0x1555   :  { %v3755_v59 = vpop.permute.xlu1 %3754  ;;  %v3753_v12 = vpop.permute.xlu0 %3752 }
0x1556   :  { %v8787_v1 = vpop.eup %6992  ;;  %6996 = vpow2.f32 %v4001_v53  ;;  %v3759_v32 = vsub.f32 %v8621_v58, %v3755_v59  ;;  %v3758_v16 = vsub.f32 %v8625_v54, %v3753_v12 }
0x1557   :  { %v8791_v27 = vpop.eup %6994  ;;  %6998 = vpow2.f32 %v3999_v49  ;;  %3780 = vrot.lane.b32.xlu1 %v8787_v1, %s7124_s2 }
0x1558   :  { %v3762_v3 = vmul.f32 1.442695, %v3759_v32  ;;  %v3760_v30 = vmul.f32 1.442695, %v3758_v16  ;;  %3800 = vrot.lane.b32.xlu0 %v8791_v27, %s7122_s3 }
0x1559   :  { %v3741_v36 = vpop.permute.xlu1 %3740  ;;  %v4004_v41 = vpop.permute.xlu0 %4003 }
0x155a   :  { %7000 = vpow2.f32 %v3762_v3  ;;  %v3746_v7 = vsub.f32 %v8625_v54, %v3741_v36  ;;  %v4009_v47 = vsub.f32 %v8631_v5, %v4004_v41 }
0x155b   :  { %7002 = vpow2.f32 %v3760_v30 }
0x155c   :  { %v3748_v17 = vmul.f32 1.442695, %v3746_v7  ;;  %v4011_v33 = vmul.f32 1.442695, %v4009_v47 }
0x155d   :  { %v4006_v35 = vpop.permute.xlu1 %4005  ;;  %v3765_v31 = vpop.permute.xlu0 %3764 }
0x155e   :  { %7004 = vpow2.f32 %v3748_v17  ;;  %v4010_v55 = vsub.f32 %v8623_v25, %v4006_v35  ;;  %v3770_v23 = vsub.f32 %v8625_v54, %v3765_v31 }
0x155f   :  { %7006 = vpow2.f32 %v4011_v33 }
0x1560   :  { %v8801_v39 = vpop.eup %6996  ;;  %v4013_v53 = vmul.f32 1.442695, %v4010_v55  ;;  %v3772_v49 = vmul.f32 1.442695, %v3770_v23 }
0x1561   :  { %v8803_v59 = vpop.eup %6998  ;;  %4031 = vrot.lane.b32.xlu1 %v8801_v39, %s7124_s2  ;;  %v4016_v12 = vpop.permute.xlu1 %4015 }
0x1562   :  { %v4018_v32 = vpop.permute.xlu0 %4017  ;;  %7008 = vpow2.f32 %v4013_v53  ;;  %v4021_v16 = vsub.f32 %v8631_v5, %v4016_v12  ;;  %4029 = vrot.lane.b32.xlu0 %v8803_v59, %s7124_s2 }
0x1563   :  { %v4022_v3 = vsub.f32 %v8623_v25, %v4018_v32  ;;  %7010 = vpow2.f32 %v3772_v49 }
0x1564   :  { %v8811_v30 = vpop.eup %7000  ;;  %v4023_v36 = vmul.f32 1.442695, %v4021_v16 }
0x1565   :  { %v4025_v41 = vmul.f32 1.442695, %v4022_v3  ;;  %v8813_v7 = vpop.eup %7002  ;;  %3790 = vrot.lane.b32.xlu1 %v8811_v30, %s7123_s26  ;;  %v3239_v47 = vpop.permute.xlu1 %3238 }
0x1566   :  { %v3241_v17 = vpop.permute.xlu0 %3240  ;;  %7012 = vpow2.f32 %v4023_v36  ;;  %v3244_v33 = vsub.f32 %v8605_v51, %v3239_v47  ;;  %3788 = vrot.lane.b32.xlu0 %v8813_v7, %s7123_s26 }
0x1567   :  { %v3245_v35 = vsub.f32 %v8601_v46, %v3241_v17  ;;  %7014 = vpow2.f32 %v4025_v41 }
0x1568   :  { %v8821_v31 = vpop.eup %7004  ;;  %v3246_v55 = vmul.f32 1.442695, %v3244_v33 }
0x1569   :  { %v3248_v23 = vmul.f32 1.442695, %v3245_v35  ;;  %v8823_v53 = vpop.eup %7006  ;;  %3778 = vrot.lane.b32.xlu1 %v8821_v31, %s7124_s2  ;;  %v3251_v49 = vpop.permute.xlu1 %3250 }
0x156a   :  { %v3253_v12 = vpop.permute.xlu0 %3252  ;;  %7016 = vpow2.f32 %v3246_v55  ;;  %v3256_v32 = vsub.f32 %v8605_v51, %v3251_v49  ;;  %4039 = vrot.lane.b32.xlu0 %v8823_v53, %s7123_s26 }
0x156b   :  { %v3257_v16 = vsub.f32 %v8601_v46, %v3253_v12  ;;  %7018 = vpow2.f32 %v3248_v23 }
0x156c   :  { %v8831_v3 = vpop.eup %7008  ;;  %v3258_v36 = vmul.f32 1.442695, %v3256_v32 }
0x156d   :  { %v3260_v41 = vmul.f32 1.442695, %v3257_v16  ;;  %v8833_v47 = vpop.eup %7010  ;;  %4041 = vrot.lane.b32.xlu1 %v8831_v3, %s7123_s26  ;;  %v3263_v17 = vpop.permute.xlu1 %3262 }
0x156e   :  { %v3265_v33 = vpop.permute.xlu0 %3264  ;;  %7020 = vpow2.f32 %v3258_v36  ;;  %v3268_v35 = vsub.f32 %v8605_v51, %v3263_v17  ;;  %3798 = vrot.lane.b32.xlu0 %v8833_v47, %s7122_s3 }
0x156f   :  { %v3269_v55 = vsub.f32 %v8601_v46, %v3265_v33  ;;  %7022 = vpow2.f32 %v3260_v41 }
0x1570   :  { %v8841_v23 = vpop.eup %7012  ;;  %v3270_v49 = vmul.f32 1.442695, %v3268_v35 }
0x1571   :  { %v3272_v12 = vmul.f32 1.442695, %v3269_v55  ;;  %v8843_v32 = vpop.eup %7014  ;;  %4049 = vrot.lane.b32.xlu1 %v8841_v23, %s7122_s3  ;;  %v3485_v55 = vmul.f32 1.442695, %v3482_v60 }
0x1572   :  { %7024 = vpow2.f32 %v3270_v49  ;;  %4051 = vrot.lane.b32.xlu0 %v8843_v32, %s7122_s3  ;;  %v3483_v49 = vmul.f32 1.442695, %v3481_v44 }
0x1573   :  { %7026 = vpow2.f32 %v3272_v12 }
0x1574   :  { %v8849_v16 = vpop.eup %7016  ;;  %7028 = vpow2.f32 %v3485_v55 }
0x1575   :  { %v8851_v36 = vpop.eup %7018  ;;  %3276 = vrot.lane.b32.xlu1 %v8849_v16, %s7124_s2  ;;  %7030 = vpow2.f32 %v3483_v49  ;;  %v9243_v49 = vsub.f32 %v8623_v25, %v8705_v19  ;;  %v9245_v19 = vsub.f32 %v8601_v46, %v8727_v28 }
0x1576   :  { %3278 = vrot.lane.b32.xlu0 %v8851_v36, %s7124_s2 }
0x1578   :  { %v8857_v41 = vpop.eup %7020 }
0x1579   :  { %v8859_v17 = vpop.eup %7022  ;;  %3286 = vrot.lane.b32.xlu1 %v8857_v41, %s7123_s26 }
0x157a   :  { %3288 = vrot.lane.b32.xlu0 %v8859_v17, %s7123_s26 }
0x157c   :  { %v8865_v33 = vpop.eup %7024 }
0x157d   :  { %v8867_v35 = vpop.eup %7026  ;;  %3296 = vrot.lane.b32.xlu1 %v8865_v33, %s7122_s3 }
0x157e   :  { %3298 = vrot.lane.b32.xlu0 %v8867_v35, %s7122_s3  ;;  %v7029_v62 = vpop.eup %7028 }
0x157f   :  { %v7031_v13 = vpop.eup %7030 }
0x15a4   :  { %v3540_v12 = vpop.permute.xlu1 %3539 }
0x15a5   :  { %v3530_v61 = vpop.permute.xlu0 %3529 }
0x15a6   :  { %v3534_v57 = vadd.f32 %v7029_v62, %v3530_v61 }
0x15a8   :  { %v3550_v34 = vpop.permute.xlu1 %3549  ;;  %v3544_v40 = vadd.f32 %v3540_v12, %v3534_v57  ;;  %v3987_v12 = vmul.f32 1.442695, %v9243_v49 }
0x15aa   :  { %v3554_v45 = vadd.f32 %v3550_v34, %v3544_v40  ;;  %v9241_v40 = vsub.f32 %v8625_v54, %v8699_v11 }
0x15ac   :  { %7032 = vrcp.f32 %v3554_v45  ;;  %v3528_v21 = vpop.permute.xlu1 %3527  ;;  %v3734_v34 = vmul.f32 1.442695, %v9241_v40 }
0x15ad   :  { %v3533_v38 = vadd.f32 %v7031_v13, %v3528_v21  ;;  %v3538_v37 = vpop.permute.xlu0 %3537  ;;  %v9240_v21 = vsub.f32 %v8621_v58, %v8688_v20 }
0x15af   :  { %v3543_v26 = vadd.f32 %v3538_v37, %v3533_v38  ;;  %v3736_v45 = vmul.f32 1.442695, %v9240_v21  ;;  %v3234_v21 = vmul.f32 1.442695, %v9245_v19 }
0x15b1   :  { %v3548_v0 = vpop.permute.xlu0 %3547 }
0x15b2   :  { %v3553_v60 = vadd.f32 %v3548_v0, %v3543_v26 }
0x15b4   :  { %7034 = vrcp.f32 %v3553_v60 }
0x15b5   :  { %7036 = vpow2.f32 %v3736_v45 }
0x15b6   :  { %v7033_v55 = vpop.eup %7032  ;;  %7038 = vpow2.f32 %v3734_v34 }
0x15b7   :  { %3585 = vrot.lane.b32.xlu1 %v7033_v55, %s7123_s26  ;;  %3565 = vrot.lane.b32.xlu0 %v7033_v55, %s7122_s3  ;;  %v3558_v22 = vmul.f32 %v7033_v55, %v7029_v62 }
0x15b9   :  { %v8882_v24 = vmul.f32 %v8520_v42, %v3558_v22 }
0x15bb   :  { %3605 = vrot.lane.b32.xlu1 %v7033_v55, %s7124_s2 }
0x15be   :  { %v7035_v44 = vpop.eup %7034 }
0x15bf   :  { %3583 = vrot.lane.b32.xlu0 %v7035_v44, %s7123_s26  ;;  %3563 = vrot.lane.b32.xlu1 %v7035_v44, %s7122_s3  ;;  %v3557_v37 = vmul.f32 %v7035_v44, %v7031_v13  ;;  %v9242_v13 = vsub.f32 %v8631_v5, %v8703_v6  ;;  %v7037_v58 = vpop.eup %7036  ;;  %v9244_v6 = vsub.f32 %v8605_v51, %v8725_v9 }
0x15c0   :  { %v7039_v22 = vpop.eup %7038 }
0x15c1   :  { %v8888_v38 = vmul.f32 %v3557_v37, %v8522_v48  ;;  %v3985_v62 = vmul.f32 1.442695, %v9242_v13  ;;  %v3232_v25 = vmul.f32 1.442695, %v9244_v6 }
0x15c3   :  { %3603 = vrot.lane.b32.xlu0 %v7035_v44, %s7124_s2  ;;  %7040 = vpow2.f32 %v3985_v62 }
0x15c4   :  { %7042 = vpow2.f32 %v3987_v12 }
0x15c9   :  { %v3781_v57 = vpop.permute.xlu1 %3780 }
0x15ca   :  { %v3801_v61 = vpop.permute.xlu0 %3800  ;;  %v3785_v20 = vadd.f32 %v7037_v58, %v3781_v57 }
0x15cd   :  { %v7041_v40 = vpop.eup %7040 }
0x15ce   :  { %v7043_v57 = vpop.eup %7042 }
0x15d3   :  { %v4032_v26 = vpop.permute.xlu1 %4031 }
0x15d4   :  { %v4030_v0 = vpop.permute.xlu0 %4029 }
0x15d5   :  { %v4035_v13 = vadd.f32 %v7041_v40, %v4030_v0 }
0x15d7   :  { %v3791_v60 = vpop.permute.xlu1 %3790 }
0x15d8   :  { %v3795_v54 = vadd.f32 %v3791_v60, %v3785_v20  ;;  %v3789_v11 = vpop.permute.xlu0 %3788 }
0x15da   :  { %v3805_v55 = vadd.f32 %v3801_v61, %v3795_v54  ;;  %v4036_v61 = vadd.f32 %v7043_v57, %v4032_v26 }
0x15db   :  { %v3779_v44 = vpop.permute.xlu1 %3778 }
0x15dc   :  { %7044 = vrcp.f32 %v3805_v55  ;;  %v3784_v37 = vadd.f32 %v7039_v22, %v3779_v44  ;;  %v4040_v5 = vpop.permute.xlu0 %4039 }
0x15dd   :  { %7046 = vpow2.f32 %v3232_v25  ;;  %v4045_v12 = vadd.f32 %v4040_v5, %v4035_v13 }
0x15de   :  { %v3794_v45 = vadd.f32 %v3789_v11, %v3784_v37  ;;  %7048 = vpow2.f32 %v3234_v21 }
0x15df   :  { %v4042_v34 = vpop.permute.xlu1 %4041 }
0x15e0   :  { %v3799_v62 = vpop.permute.xlu0 %3798  ;;  %v4046_v20 = vadd.f32 %v4042_v34, %v4036_v61 }
0x15e1   :  { %v3804_v49 = vadd.f32 %v3799_v62, %v3794_v45 }
0x15e3   :  { %7050 = vrcp.f32 %v3804_v49  ;;  %v4050_v60 = vpop.permute.xlu1 %4049 }
0x15e4   :  { %v4055_v51 = vadd.f32 %v4050_v60, %v4045_v12  ;;  %v4052_v9 = vpop.permute.xlu0 %4051 }
0x15e5   :  { %v4056_v54 = vadd.f32 %v4052_v9, %v4046_v20 }
0x15e6   :  { %v7045_v55 = vpop.eup %7044  ;;  %7052 = vrcp.f32 %v4055_v51 }
0x15e7   :  { %7054 = vrcp.f32 %v4056_v54  ;;  %v3277_v46 = vpop.permute.xlu1 %3276  ;;  %3856 = vrot.lane.b32.xlu0 %v7045_v55, %s7124_s2  ;;  %3816 = vrot.lane.b32.xlu1 %v7045_v55, %s7122_s3  ;;  %v3809_v28 = vmul.f32 %v7045_v55, %v7037_v58  ;;  %v7047_v11 = vpop.eup %7046 }
0x15e8   :  { %v3279_v0 = vpop.permute.xlu0 %3278  ;;  %v7049_v37 = vpop.eup %7048  ;;  %v3282_v5 = vadd.f32 %v7047_v11, %v3277_v46 }
0x15e9   :  { %v8912_v26 = vmul.f32 %v8520_v42, %v3809_v28  ;;  %v3283_v19 = vadd.f32 %v7049_v37, %v3279_v0 }
0x15eb   :  { %v3287_v44 = vpop.permute.xlu1 %3286 }
0x15ec   :  { %v3289_v6 = vpop.permute.xlu0 %3288  ;;  %v3292_v21 = vadd.f32 %v3287_v44, %v3282_v5 }
0x15ed   :  { %v7051_v25 = vpop.eup %7050  ;;  %v3293_v34 = vadd.f32 %v3289_v6, %v3283_v19 }
0x15ee   :  { %v3808_v45 = vmul.f32 %v7051_v25, %v7039_v22 }
0x15ef   :  { %v3297_v13 = vpop.permute.xlu1 %3296 }
0x15f0   :  { %v7053_v62 = vpop.eup %7052  ;;  %v3302_v61 = vadd.f32 %v3297_v13, %v3292_v21  ;;  %v3299_v49 = vpop.permute.xlu0 %3298  ;;  %v8915_v58 = vmul.f32 %v3808_v45, %v8522_v48 }
0x15f1   :  { %v7055_v12 = vpop.eup %7054  ;;  %v3303_v20 = vadd.f32 %v3299_v49, %v3293_v34  ;;  %4065 = vrot.lane.b32.xlu0 %v7053_v62, %s7122_s3  ;;  %v4059_v60 = vmul.f32 %v7053_v62, %v7041_v40 }
0x15f2   :  { %7056 = vrcp.f32 %v3302_v61  ;;  %4067 = vrot.lane.b32.xlu1 %v7055_v12, %s7122_s3  ;;  %v4060_v51 = vmul.f32 %v7055_v12, %v7043_v57 }
0x15f3   :  { %7058 = vrcp.f32 %v3303_v20  ;;  %v8920_v22 = vmul.f32 %v4059_v60, %v8522_v48 }
0x15f4   :  { %v8923_v9 = vmul.f32 %v8520_v42, %v4060_v51 }
0x15f5   :  { %3834 = vrot.lane.b32.xlu0 %v7051_v25, %s7123_s26 }
0x15f6   :  { %3836 = vrot.lane.b32.xlu1 %v7045_v55, %s7123_s26 }
0x15f9   :  { %4085 = vrot.lane.b32.xlu0 %v7053_v62, %s7123_s26 }
0x15fa   :  { %3814 = vrot.lane.b32.xlu1 %v7051_v25, %s7122_s3 }
0x15fc   :  { %v7057_v40 = vpop.eup %7056 }
0x15fd   :  { %v7059_v54 = vpop.eup %7058  ;;  %3854 = vrot.lane.b32.xlu0 %v7051_v25, %s7124_s2  ;;  %v3306_v57 = vmul.f32 %v7057_v40, %v7047_v11 }
0x15fe   :  { %4087 = vrot.lane.b32.xlu1 %v7055_v12, %s7123_s26  ;;  %v3307_v46 = vmul.f32 %v7059_v54, %v7049_v37 }
0x15ff   :  { %v8932_v28 = vmul.f32 %v3306_v57, %v8522_v48 }
0x1600   :  { %v8935_v0 = vmul.f32 %v8520_v42, %v3307_v46 }
0x1601   :  { %4107 = vrot.lane.b32.xlu0 %v7055_v12, %s7124_s2 }
0x1602   :  { %4105 = vrot.lane.b32.xlu1 %v7053_v62, %s7124_s2 }
0x1605   :  { %3314 = vrot.lane.b32.xlu0 %v7059_v54, %s7122_s3 }
0x1606   :  { %3312 = vrot.lane.b32.xlu1 %v7057_v40, %s7122_s3 }
0x1609   :  { %3334 = vrot.lane.b32.xlu0 %v7059_v54, %s7123_s26 }
0x160a   :  { %3332 = vrot.lane.b32.xlu1 %v7057_v40, %s7123_s26 }
0x160e   :  { %3352 = vrot.lane.b32.xlu1 %v7057_v40, %s7124_s2 }
0x1612   :  { %3354 = vrot.lane.b32.xlu1 %v7059_v54, %s7124_s2 }
0x1629   :  { %v3586_v55 = vpop.permute.xlu1 %3585  ;;  %v3566_v11 = vpop.permute.xlu0 %3565 }
0x162a   :  { %v3590_v44 = vmul.f32 %v8759_v50, %v3586_v55  ;;  %v3570_v37 = vmul.f32 %v8761_v43, %v3566_v11 }
0x162c   :  { %v3592_v5 = vmul.f32 %v8520_v42, %v3590_v44  ;;  %v3572_v6 = vmul.f32 %v8520_v42, %v3570_v37 }
0x162d   :  { %v3606_v25 = vpop.permute.xlu1 %3605 }
0x162e   :  { %v3610_v19 = vmul.f32 %v8767_v52, %v3606_v25  ;;  %3597 = vrot.lane.b32.xlu1 %v3592_v5, %s7123_s26  ;;  %3577 = vrot.lane.b32.xlu0 %v3572_v6, %s7124_s2 }
0x1630   :  { %v3612_v21 = vmul.f32 %v8520_v42, %v3610_v19 }
0x1631   :  { %v3564_v45 = vpop.permute.xlu1 %3563  ;;  %v3584_v34 = vpop.permute.xlu0 %3583 }
0x1632   :  { %v3569_v13 = vmul.f32 %v8771_v63, %v3564_v45  ;;  %3617 = vrot.lane.b32.xlu1 %v3612_v21, %s7122_s3  ;;  %v3589_v43 = vmul.f32 %v8773_v29, %v3584_v34 }
0x1634   :  { %v3571_v50 = vmul.f32 %v3569_v13, %v8522_v48  ;;  %v3591_v52 = vmul.f32 %v3589_v43, %v8522_v48 }
0x1635   :  { %v3604_v62 = vpop.permute.xlu0 %3603 }
0x1636   :  { %3575 = vrot.lane.b32.xlu0 %v3571_v50, %s7124_s2  ;;  %v3609_v61 = vmul.f32 %v8779_v14, %v3604_v62 }
0x1638   :  { %v3611_v49 = vmul.f32 %v3609_v61, %v8522_v48 }
0x163a   :  { %3595 = vrot.lane.b32.xlu0 %v3591_v52, %s7123_s26 }
0x163e   :  { %3615 = vrot.lane.b32.xlu0 %v3611_v49, %s7122_s3 }
0x1659   :  { %v3817_v63 = vpop.permute.xlu1 %3816  ;;  %v3857_v12 = vpop.permute.xlu0 %3856 }
0x165a   :  { %v3821_v20 = vmul.f32 %v8787_v1, %v3817_v63  ;;  %v3861_v60 = vmul.f32 %v8791_v27, %v3857_v12 }
0x165c   :  { %v3823_v29 = vmul.f32 %v8520_v42, %v3821_v20  ;;  %v3863_v51 = vmul.f32 %v8520_v42, %v3861_v60 }
0x165e   :  { %3828 = vrot.lane.b32.xlu1 %v3823_v29, %s7124_s2  ;;  %3868 = vrot.lane.b32.xlu0 %v3863_v51, %s7122_s3 }
0x1663   :  { %v4066_v14 = vpop.permute.xlu0 %4065 }
0x1664   :  { %v4068_v40 = vpop.permute.xlu1 %4067  ;;  %v4071_v54 = vmul.f32 %v8803_v59, %v4066_v14 }
0x1665   :  { %v4072_v57 = vmul.f32 %v8801_v39, %v4068_v40 }
0x1666   :  { %v4073_v46 = vmul.f32 %v4071_v54, %v8522_v48 }
0x1667   :  { %v4074_v1 = vmul.f32 %v8520_v42, %v4072_v57  ;;  %v3835_v55 = vpop.permute.xlu0 %3834 }
0x1668   :  { %v3837_v27 = vpop.permute.xlu1 %3836  ;;  %v3840_v11 = vmul.f32 %v8813_v7, %v3835_v55  ;;  %4077 = vrot.lane.b32.xlu0 %v4073_v46, %s7124_s2 }
0x1669   :  { %v3841_v44 = vmul.f32 %v8811_v30, %v3837_v27  ;;  %4079 = vrot.lane.b32.xlu1 %v4074_v1, %s7124_s2 }
0x166a   :  { %v3842_v37 = vmul.f32 %v3840_v11, %v8522_v48 }
0x166b   :  { %v3843_v59 = vmul.f32 %v8520_v42, %v3841_v44  ;;  %v4086_v5 = vpop.permute.xlu0 %4085 }
0x166c   :  { %v3815_v39 = vpop.permute.xlu1 %3814  ;;  %v4091_v6 = vmul.f32 %v8823_v53, %v4086_v5  ;;  %3846 = vrot.lane.b32.xlu0 %v3842_v37, %s7123_s26 }
0x166d   :  { %v3820_v25 = vmul.f32 %v8821_v31, %v3815_v39  ;;  %3848 = vrot.lane.b32.xlu1 %v3843_v59, %s7123_s26 }
0x166e   :  { %v4093_v7 = vmul.f32 %v4091_v6, %v8522_v48 }
0x166f   :  { %v3822_v30 = vmul.f32 %v3820_v25, %v8522_v48  ;;  %v3855_v19 = vpop.permute.xlu0 %3854 }
0x1670   :  { %v4088_v21 = vpop.permute.xlu1 %4087  ;;  %v3860_v45 = vmul.f32 %v8833_v47, %v3855_v19  ;;  %4097 = vrot.lane.b32.xlu0 %v4093_v7, %s7123_s26 }
0x1671   :  { %v4092_v34 = vmul.f32 %v8831_v3, %v4088_v21  ;;  %3826 = vrot.lane.b32.xlu1 %v3822_v30, %s7124_s2 }
0x1672   :  { %v3862_v53 = vmul.f32 %v3860_v45, %v8522_v48 }
0x1673   :  { %v4094_v31 = vmul.f32 %v8520_v42, %v4092_v34  ;;  %v4108_v13 = vpop.permute.xlu0 %4107 }
0x1674   :  { %v4106_v50 = vpop.permute.xlu1 %4105  ;;  %v4112_v43 = vmul.f32 %v8843_v32, %v4108_v13  ;;  %3866 = vrot.lane.b32.xlu0 %v3862_v53, %s7122_s3 }
0x1675   :  { %v4111_v62 = vmul.f32 %v8841_v23, %v4106_v50  ;;  %4099 = vrot.lane.b32.xlu1 %v4094_v31, %s7123_s26 }
0x1676   :  { %v4114_v47 = vmul.f32 %v8520_v42, %v4112_v43 }
0x1677   :  { %v4113_v3 = vmul.f32 %v4111_v62, %v8522_v48  ;;  %v3315_v52 = vpop.permute.xlu0 %3314 }
0x1678   :  { %v3313_v61 = vpop.permute.xlu1 %3312  ;;  %v3319_v49 = vmul.f32 %v8851_v36, %v3315_v52  ;;  %4119 = vrot.lane.b32.xlu0 %v4114_v47, %s7122_s3 }
0x1679   :  { %v3318_v63 = vmul.f32 %v8849_v16, %v3313_v61  ;;  %4117 = vrot.lane.b32.xlu1 %v4113_v3, %s7122_s3 }
0x167a   :  { %v3321_v32 = vmul.f32 %v8520_v42, %v3319_v49 }
0x167b   :  { %v3320_v23 = vmul.f32 %v3318_v63, %v8522_v48  ;;  %v3335_v12 = vpop.permute.xlu0 %3334 }
0x167c   :  { %v3333_v20 = vpop.permute.xlu1 %3332  ;;  %v3339_v60 = vmul.f32 %v8859_v17, %v3335_v12  ;;  %3326 = vrot.lane.b32.xlu0 %v3321_v32, %s7124_s2 }
0x167d   :  { %v3338_v29 = vmul.f32 %v8857_v41, %v3333_v20  ;;  %3324 = vrot.lane.b32.xlu1 %v3320_v23, %s7124_s2 }
0x167e   :  { %v3341_v36 = vmul.f32 %v8520_v42, %v3339_v60 }
0x167f   :  { %v3340_v16 = vmul.f32 %v3338_v29, %v8522_v48 }
0x1680   :  { %v3353_v51 = vpop.permute.xlu1 %3352  ;;  %3346 = vrot.lane.b32.xlu0 %v3341_v36, %s7123_s26 }
0x1681   :  { %v3358_v14 = vmul.f32 %v8865_v33, %v3353_v51  ;;  %3344 = vrot.lane.b32.xlu1 %v3340_v16, %s7123_s26 }
0x1683   :  { %v3360_v40 = vmul.f32 %v3358_v14, %v8522_v48 }
0x1684   :  { %v3355_v17 = vpop.permute.xlu1 %3354 }
0x1685   :  { %v3359_v54 = vmul.f32 %v8867_v35, %v3355_v17  ;;  %3364 = vrot.lane.b32.xlu1 %v3360_v40, %s7122_s3 }
0x1687   :  { %v3361_v41 = vmul.f32 %v8520_v42, %v3359_v54 }
0x1689   :  { %3366 = vrot.lane.b32.xlu0 %v3361_v41, %s7122_s3 }
0x16a0   :  { %v3598_v57 = vpop.permute.xlu1 %3597  ;;  %v3578_v46 = vpop.permute.xlu0 %3577 }
0x16a1   :  { %v3582_v1 = vadd.f32 %v3578_v46, %v8882_v24 }
0x16a3   :  { %v3602_v55 = vadd.f32 %v3598_v57, %v3582_v1 }
0x16a4   :  { %v3618_v27 = vpop.permute.xlu1 %3617 }
0x16a5   :  { %v3622_v33 = vadd.f32 %v3618_v27, %v3602_v55 }
0x16a7   :  { %4129 = vrot.lane.b32.xlu0 %v3622_v33, %s7122_s3 }
0x16a8   :  { %v3576_v11 = vpop.permute.xlu0 %3575 }
0x16a9   :  { %v3581_v44 = vadd.f32 %v3576_v11, %v8888_v38 }
0x16ac   :  { %v3596_v48 = vpop.permute.xlu0 %3595 }
0x16ad   :  { %v3601_v35 = vadd.f32 %v3596_v48, %v3581_v44 }
0x16b0   :  { %v3616_v37 = vpop.permute.xlu0 %3615 }
0x16b1   :  { %v3621_v59 = vadd.f32 %v3616_v37, %v3601_v35  ;;  %v7067_v35 = vld [vmem:[%s9148_s9] sm:$0xf] }
0x16b3   :  { %4127 = vrot.lane.b32.xlu1 %v3621_v59, %s7122_s3 }
0x16d0   :  { %v3869_v42 = vpop.permute.xlu0 %3868  ;;  %v3829_v5 = vpop.permute.xlu1 %3828 }
0x16d1   :  { %v3833_v24 = vadd.f32 %v3829_v5, %v8912_v26 }
0x16da   :  { %v4078_v39 = vpop.permute.xlu0 %4077 }
0x16db   :  { %v4080_v6 = vpop.permute.xlu1 %4079  ;;  %v4083_v50 = vadd.f32 %v4078_v39, %v8920_v22 }
0x16dc   :  { %v4084_v31 = vadd.f32 %v4080_v6, %v8923_v9  ;;  %v9247_v9 = vld [vmem:[#allocation9_spill] sm:$0xff] }
0x16dd   :  { %v4524_v6 = vld [vmem:[%s9154_s15 + $0x8] sm:$0xff] }
0x16de   :  { %v3847_v25 = vpop.permute.xlu0 %3846 }
0x16df   :  { %v3849_v7 = vpop.permute.xlu1 %3848 }
0x16e0   :  { %v3853_v30 = vadd.f32 %v3849_v7, %v3833_v24  ;;  %v4526_v7 = vld [vmem:[%s9154_s15 + $0x18] sm:$0xff] }
0x16e2   :  { %v3873_v19 = vadd.f32 %v3869_v42, %v3853_v30  ;;  %v4098_v21 = vpop.permute.xlu0 %4097 }
0x16e3   :  { %v3827_v45 = vpop.permute.xlu1 %3826  ;;  %v4103_v26 = vadd.f32 %v4098_v21, %v4083_v50  ;;  %v9251_v50 = vld [vmem:[#allocation18_spill] sm:$0xff] }
0x16e4   :  { %v3832_v34 = vadd.f32 %v3827_v45, %v8915_v58  ;;  %4137 = vrot.lane.b32.xlu0 %v3873_v19, %s7123_s26  ;;  %v9246_v58 = vld [vmem:[#allocation10_spill] sm:$0xff] }
0x16e6   :  { %v3852_v38 = vadd.f32 %v3847_v25, %v3832_v34  ;;  %v3867_v53 = vpop.permute.xlu0 %3866  ;;  %v4525_v25 = vld [vmem:[%s9154_s15 + $0x10] sm:$0xff] }
0x16e7   :  { %v4100_v13 = vpop.permute.xlu1 %4099  ;;  %v6856_v21 = vpack.c.bf16 %v4526_v7, %v4525_v25 }
0x16e8   :  { %v3872_v43 = vadd.f32 %v3867_v53, %v3852_v38  ;;  %v4104_v62 = vadd.f32 %v4100_v13, %v4084_v31 }
0x16ea   :  { %4135 = vrot.lane.b32.xlu1 %v3872_v43, %s7123_s26  ;;  %v4120_v47 = vpop.permute.xlu0 %4119  ;;  %v4481_v43 = vsub.s32 2, %v9251_v50 }
0x16eb   :  { %v4118_v3 = vpop.permute.xlu1 %4117  ;;  %v4124_v52 = vadd.f32 %v4120_v47, %v4104_v62  ;;  %v7068_v62 = vld [vmem:[%s9149_s10] sm:$0x7] }
0x16ec   :  { %v4123_v61 = vadd.f32 %v4118_v3, %v4103_v26  ;;  %v4482_v26 = vrot.slane %v7068_v62, %v4481_v43 }
0x16ed   :  { %4145 = vrot.lane.b32.xlu0 %v4124_v52, %s7124_s2 }
0x16ee   :  { %4143 = vrot.lane.b32.xlu1 %v4123_v61, %s7124_s2  ;;  %v3327_v49 = vpop.permute.xlu0 %3326  ;;  %v7069_v61 = vld [vmem:[%s9150_s11] sm:$0x7] }
0x16ef   :  { %v3325_v22 = vpop.permute.xlu1 %3324  ;;  %v3331_v60 = vadd.f32 %v3327_v49, %v8935_v0 }
0x16f0   :  { %v3330_v36 = vadd.f32 %v3325_v22, %v8932_v28  ;;  %v4520_v22 = vld [vmem:[%s9153_s14 + $0x8] sm:$0xff] }
0x16f1   :  { %4529 = vrot.lane.b32.xlu0 %v9246_v58, %s7124_s2  ;;  %v4488_v58 = vrot.slane %v7069_v61, %v4481_v43 }
0x16f2   :  { %v3347_v32 = vpop.permute.xlu0 %3346 }
0x16f3   :  { %v3345_v63 = vpop.permute.xlu1 %3344  ;;  %v3351_v16 = vadd.f32 %v3347_v32, %v3331_v60  ;;  %v4522_v60 = vld [vmem:[%s9153_s14 + $0x18] sm:$0xff] }
0x16f4   :  { %v3350_v51 = vadd.f32 %v3345_v63, %v3330_v36 }
0x16f5   :  { %4531 = vrot.lane.b32.xlu0 %v9247_v9, %s7124_s2  ;;  %v4519_v9 = vld [vmem:[%s9153_s14] sm:$0xff] }
0x16f6   :  { %v6860_v63 = vpack.c.bf16 %v4520_v22, %v4519_v9 }
0x16f7   :  { %v3365_v12 = vpop.permute.xlu1 %3364 }
0x16f8   :  { %v3370_v54 = vadd.f32 %v3365_v12, %v3350_v51  ;;  %v9253_v51 = vld [vmem:[#allocation13_spill] sm:$0xff] }
0x16fb   :  { %v3367_v23 = vpop.permute.xlu0 %3366 }
0x16fc   :  { %v3371_v40 = vadd.f32 %v3367_v23, %v3351_v16  ;;  %v9252_v16 = vld [vmem:[#allocation11_spill] sm:$0xff] }
0x1719   :  { %v4130_v20 = vpop.permute.xlu0 %4129 }
0x171a   :  { %v4150_v41 = vsel %vm107_vm0, %v3371_v40, %v4130_v20  ;;  %v4521_v20 = vld [vmem:[%s9153_s14 + $0x10] sm:$0xff] }
0x1725   :  { %v4128_v29 = vpop.permute.xlu1 %4127 }
0x1726   :  { %v4149_v57 = vsel %vm107_vm0, %v3370_v54, %v4128_v29  ;;  %v6864_v29 = vpack.c.bf16 %v4522_v60, %v4521_v20 }
0x1756   :  { %v4138_v14 = vpop.permute.xlu0 %4137 }
0x1757   :  { %v4152_v46 = vsel %vm684_vm2, %v4150_v41, %v4138_v14 }
0x175c   :  { %v4136_v17 = vpop.permute.xlu1 %4135 }
0x175d   :  { %v4151_v55 = vsel %vm684_vm2, %v4149_v57, %v4136_v17 }
0x175f   :  { %v4146_v1 = vpop.permute.xlu0 %4145 }
0x1760   :  { %v4144_v27 = vpop.permute.xlu1 %4143  ;;  %v4154_v0 = vsel %vm687_vm3, %v4152_v46, %v4146_v1 }
0x1761   :  { %v4153_v28 = vsel %vm687_vm3, %v4151_v55, %v4144_v27  ;;  %v4156_v33 = vmax.f32 %v4154_v0, 0.0 }
0x1762   :  { %v4155_v11 = vmax.f32 %v4153_v28, 0.0 }
0x1763   :  { %v4158_v48 = vadd.f32 %v4156_v33, %v8437_v56  ;;  %v4530_v45 = vpop.permute.xlu0 %4529 }
0x1764   :  { %v4157_v44 = vadd.f32 %v4155_v11, %v8435_v8  ;;  %v9248_v8 = vld [vmem:[#allocation15_spill] sm:$0xff] }
0x1766   :  { %6078 = vmatprep.mubr.f32.mxu0 %v4157_v44 }
0x1767   :  { %6079 = vmatmul.mubr.f32.vlgmr.msra.gmra.mrb[32].mxu0 %v4158_v48  ;;  %v4532_v34 = vpop.permute.xlu0 %4531 }
0x1768   :  { %6122 = vmatpush3.msk.msra.mxu0 %vm905_vm4, %v7067_v35 }
0x183a   :  { %v6080_v37 = vpop.f32.mrb[32].mxu0 }
0x183b   :  { %v4225_v59 = vpop.f32.mrb[33].mxu0 }
0x183c   :  { %6083 = vmatprep.mubr.msk.f32.mxu1 %vm898_vm5, %v4225_v59 }
0x183d   :  { %6084 = vmatmul.mubr.msk.f32.vlgmr.msra.gmra.mrb[28].mxu1 %vm898_vm5, %v6080_v37  ;;  %v9255_v37 = vld [vmem:[#allocation14_spill] sm:$0xff] }
0x183e   :  { %6823 = vmatpush3.bf16.msra.mxu1 %v7371_v2  ;;  %v9249_v2 = vld [vmem:[#allocation16_spill] sm:$0xff] }
0x183f   :  { %6825 = vmatprep.subr.bf16.mxu1 %v7376_v4 }
0x1842   :  { %6827 = vmatpush3.bf16.msra.mxu1 %v7376_v4  ;;  %v9250_v4 = vld [vmem:[#allocation17_spill] sm:$0xff] }
0x1843   :  { %6829 = vmatprep.subr.bf16.mxu1 %v7387_v10 }
0x1846   :  { %6831 = vmatpush3.bf16.msra.mxu1 %v7387_v10 }
0x1847   :  { %6833 = vmatprep.subr.bf16.mxu1 %v7398_v15 }
0x184a   :  { %6835 = vmatpush3.bf16.msra.mxu1 %v7398_v15 }
0x184b   :  { %6837 = vmatprep.subr.bf16.mxu1 %v7408_v18 }
0x184e   :  { %6839 = vmatpush3.bf16.msra.mxu1 %v7408_v18  ;;  %v4523_v18 = vld [vmem:[%s9154_s15] sm:$0xff] }
0x184f   :  { %6841 = vmatprep.subr.bf16.mxu1 %v9248_v8  ;;  %v6852_v24 = vpack.c.bf16 %v4524_v6, %v4523_v18 }
0x1851   :  { %6853 = vmatprep.subr.bf16.mxu0 %v6852_v24 }
0x1852   :  { %6843 = vmatpush3.bf16.msra.mxu1 %v9248_v8 }
0x1853   :  { %6845 = vmatprep.subr.bf16.mxu1 %v9249_v2 }
0x1856   :  { %6847 = vmatpush3.bf16.msra.mxu1 %v9249_v2 }
0x1857   :  { %6849 = vmatprep.subr.bf16.mxu1 %v9250_v4 }
0x185a   :  { %6851 = vmatpush3.bf16.msra.mxu1 %v9250_v4 }
0x1910   :  { %v6085_v10 = vpop.f32.mrb[28].mxu1 }
0x1911   :  { %v4316_v56 = vsub.f32 %v4158_v48, %v6085_v10  ;;  %v4306_v42 = vpop.f32.mrb[29].mxu1 }
0x1912   :  { %v4315_v15 = vsub.f32 %v4157_v44, %v4306_v42  ;;  %v9254_v44 = vld [vmem:[#allocation12_spill] sm:$0xff] }
0x1913   :  { %v4318_v39 = vmul.f32 %v4316_v56, %v4316_v56 }
0x1914   :  { %v4317_v5 = vmul.f32 %v4315_v15, %v4315_v15 }
0x1916   :  { %6118 = vmatprep.mubr.f32.mxu1 %v4317_v5 }
0x1917   :  { %6119 = vmatmul.mubr.f32.vlgmr.msra.gmra.mrb[30].mxu1 %v4318_v39 }
0x19ea   :  { %v6120_v30 = vpop.f32.mrb[30].mxu1 }
0x19eb   :  { %v4385_v19 = vpop.f32.mrb[31].mxu1 }
0x19ec   :  { %6123 = vmatprep.mubr.msk.f32.mxu0 %vm898_vm5, %v4385_v19 }
0x19ed   :  { %6124 = vmatmul.mubr.msk.f32.vlgmr.msra.gmra.mrb[34].mxu0 %vm898_vm5, %v6120_v30 }
0x19ee   :  { %6855 = vmatpush3.bf16.msra.mxu0 %v6852_v24  ;;  %6134 = vmatprep.mubr.msk.f32.mxu0 %vm107_vm0, %v4530_v45  ;;  %v4869_v24 = vld [vmem:[#allocation2] ss:$0 sm:$0xff] }
0x19ef   :  { %6857 = vmatprep.subr.bf16.mxu0 %v6856_v21 }
0x19f2   :  { %6859 = vmatpush3.bf16.msra.mxu0 %v6856_v21 }
0x19f3   :  { %6861 = vmatprep.subr.bf16.mxu0 %v6860_v63 }
0x19f5   :  { %6135 = vmatmul.mubr.msk.f32.vlgmr.msra.gmra.mrb[36].mxu0 %vm107_vm0, %v4532_v34 }
0x19f6   :  { %6863 = vmatpush3.bf16.msra.mxu0 %v6860_v63 }
0x19f7   :  { %6865 = vmatprep.subr.bf16.mxu0 %v6864_v29 }
0x19fa   :  { %6867 = vmatpush3.bf16.msra.mxu0 %v6864_v29 }
0x1ac0   :  { %v6125_v38 = vpop.f32.mrb[34].mxu0 }
0x1ac1   :  { %v4472_v53 = vadd.f32 1e-05, %v6125_v38  ;;  %v4466_v31 = vpop.f32.mrb[35].mxu0 }
0x1ac2   :  { %v4467_v13 = vadd.f32 1e-05, %v4466_v31 }
0x1ac3   :  { %7060 = vrsqrt.f32 %v4472_v53 }
0x1ac4   :  { %7062 = vrsqrt.f32 %v4467_v13 }
0x1acd   :  { %v7061_v47 = vpop.eup %7060 }
0x1ace   :  { %v7063_v3 = vpop.eup %7062  ;;  %v4478_v52 = vmul.f32 %v7061_v47, %v4316_v56 }
0x1acf   :  { %v4477_v49 = vmul.f32 %v7063_v3, %v4315_v15 }
0x1ad0   :  { %v4484_v32 = vmul.f32 %v4482_v26, %v4478_v52 }
0x1ad1   :  { %v4483_v12 = vmul.f32 %v4482_v26, %v4477_v49 }
0x1ad2   :  { %v4490_v23 = vadd.f32 %v4488_v58, %v4484_v32 }
0x1ad3   :  { %v4489_v36 = vadd.f32 %v4488_v58, %v4483_v12 }
0x1ad4   :  { %4503 = vrot.lane.b32.xlu0 %v4490_v23, %s7123_s26  ;;  %4495 = vrot.lane.b32.xlu1 %v4490_v23, %s7124_s2 }
0x1ad8   :  { %4511 = vrot.lane.b32.xlu0 %v4490_v23, %s7122_s3  ;;  %4493 = vrot.lane.b32.xlu1 %v4489_v36, %s7124_s2 }
0x1adc   :  { %4718 = vrot.lane.b32.xlu0 %v9252_v16, %s7122_s3  ;;  %4501 = vrot.lane.b32.xlu1 %v4489_v36, %s7123_s26 }
0x1ae0   :  { %4509 = vrot.lane.b32.xlu1 %v4489_v36, %s7122_s3 }
0x1ae4   :  { %4716 = vrot.lane.b32.xlu1 %v9253_v51, %s7122_s3 }
0x1b46   :  { %v4496_v14 = vpop.permute.xlu1 %4495  ;;  %v4504_v40 = vpop.permute.xlu0 %4503 }
0x1b47   :  { %v4500_v17 = vadd.f32 %v4496_v14, %v4490_v23 }
0x1b49   :  { %v4508_v54 = vadd.f32 %v4504_v40, %v4500_v17 }
0x1b4a   :  { %v4494_v41 = vpop.permute.xlu1 %4493  ;;  %v4512_v57 = vpop.permute.xlu0 %4511 }
0x1b4b   :  { %v4516_v46 = vadd.f32 %v4512_v57, %v4508_v54  ;;  %v4499_v27 = vadd.f32 %v4494_v41, %v4489_v36 }
0x1b4d   :  { %v4518_v1 = vmul.f32 0.25, %v4516_v46 }
0x1b4e   :  { %v4502_v55 = vpop.permute.xlu1 %4501  ;;  %v4719_v59 = vpop.permute.xlu0 %4718 }
0x1b4f   :  { %v4703_v0 = vadd.f32 %v9252_v16, %v4518_v1  ;;  %v4507_v28 = vadd.f32 %v4502_v55, %v4499_v27 }
0x1b51   :  { %4710 = vrot.lane.b32.xlu0 %v4703_v0, %s7122_s3 }
0x1b52   :  { %v4510_v33 = vpop.permute.xlu1 %4509 }
0x1b53   :  { %v4515_v11 = vadd.f32 %v4510_v33, %v4507_v28 }
0x1b55   :  { %v4517_v48 = vmul.f32 0.25, %v4515_v11  ;;  %4726 = vrot.lane.b32.xlu0 %v9254_v44, %s7123_s26 }
0x1b56   :  { %v4717_v4 = vpop.permute.xlu1 %4716 }
0x1b57   :  { %v4702_v35 = vadd.f32 %v4517_v48, %v9253_v51  ;;  %6145 = vmatprep.mubr.msk.f32.mxu0 %vm107_vm0, %v4517_v48 }
0x1b58   :  { %6146 = vmatmul.mubr.msk.f32.vlgmr.msra.gmra.mrb[36].mxu0 %vm107_vm0, %v4518_v1 }
0x1b59   :  { %4708 = vrot.lane.b32.xlu1 %v4702_v35, %s7122_s3 }
0x1b5d   :  { %4724 = vrot.lane.b32.xlu1 %v9255_v37, %s7123_s26 }
0x1bc3   :  { %v4711_v8 = vpop.permute.xlu0 %4710 }
0x1bc4   :  { %v4731_v2 = vsel %vm107_vm0, %v9252_v16, %v4711_v8 }
0x1bc5   :  { %v4733_v10 = vsel %vm684_vm2, %v4731_v2, %v4719_v59 }
0x1bc7   :  { %v4727_v56 = vpop.permute.xlu0 %4726 }
0x1bc8   :  { %v4735_v42 = vsel %vm687_vm3, %v4733_v10, %v4727_v56 }
0x1bc9   :  { %4737 = vst [vmem:[%s9156_s17 + $0x8] sm:$0xff] %v4735_v42 }
0x1bcb   :  { %v4709_v15 = vpop.permute.xlu1 %4708 }
0x1bcc   :  { %v4730_v5 = vsel %vm107_vm0, %v9253_v51, %v4709_v15 }
0x1bcd   :  { %v4732_v39 = vsel %vm684_vm2, %v4730_v5, %v4717_v4 }
0x1bcf   :  { %v4725_v18 = vpop.permute.xlu1 %4724 }
0x1bd0   :  { %v4734_v6 = vsel %vm687_vm3, %v4732_v39, %v4725_v18 }
0x1bd1   :  { %4736 = vst [vmem:[%s9156_s17] sm:$0xff] %v4734_v6 }
0x1c2b   :  { %v6147_v25 = vpop.f32.mrb[36].mxu0 }
0x1c2c   :  { %v4701_v7 = vadd.f32 %v6147_v25, %v4869_v24  ;;  %v4684_v30 = vpop.f32.mrb[37].mxu0 }
0x1c2d   :  { %v4700_v19 = vadd.f32 %v4869_v24, %v4684_v30 }
0x1c2e   :  { %4740 = vst.msk [vmem:[%s9256_s28 + $0x8] sm:$0xff] %vm4738_vm6, %v4701_v7 }
0x1c2f   :  { %4739 = vst.msk [vmem:[%s9256_s28] sm:$0xff] %vm4738_vm6, %v4700_v19 }
0x1c30   :  { %4749 = vsyncpa [#allocation4], 1 }
0x1c31   :  { %4750 = vsyncpa [#allocation6], 1 }

</bundles_post_ra>
